<compile_context>
chip_gen: v7x
topology: tpu7x:2x2x1
jax: 0.10.0
libtpu: 0.0.40
codegen_flags: <defaults>
</compile_context>

<pallas_src>
import functools
import numpy as np
import jax
import jax.numpy as jnp
from jax import lax
from jax.experimental import pallas as pl
from jax.experimental.pallas import tpu as pltpu


# ----------------------------- Pallas kernel --------------------------------
def encoder_layer_kernel(
    x_ref,
    wq_ref, bq_ref, wkv_ref, bkv_ref, wo_ref, bo_ref,
    ln1_g_ref, ln1_b_ref,
    wf1_ref, bf1_ref, wf2_ref, bf2_ref,
    ln2_g_ref, ln2_b_ref,
    out_ref, attn_ref,
    k_sc, v_sc,
    *, n_heads: int, head_dim: int, block_q: int, s_actual: int, eps: float,
):
    # Grid = (batch, query-block).  The query-block axis is "arbitrary": for
    # every batch element, qb runs 0..n-1 in order, so K/V computed at qb == 0
    # stay valid in scratch for all subsequent query blocks of that batch.
    S_pad = x_ref.shape[1]
    H = n_heads * head_dim
    qb = pl.program_id(1)
    row0 = pl.multiple_of(qb * block_q, block_q)

    # ---- K/V projection: once per batch element, into persistent scratch ----
    @pl.when(qb == 0)
    def _():
        x_bf = x_ref[0].astype(jnp.bfloat16)                               # (S, H)
        kv = jnp.dot(x_bf, wkv_ref[...],
                     preferred_element_type=jnp.float32) + bkv_ref[...]    # (S, 2H)
        kv_bf = kv.astype(jnp.bfloat16)
        # Per-head static lane slices stored in (n_heads, S, head_dim) layout.
        # Done once per batch element, amortized over all query blocks.
        # TODO(synk): for head_dim < 128, consider packing 2 heads per MXU pass.
        for h in range(n_heads):
            k_sc[h] = kv_bf[:, h * head_dim:(h + 1) * head_dim]
            v_sc[h] = kv_bf[:, H + h * head_dim:H + (h + 1) * head_dim]

    # ---- per-block Q projection (only block_q rows, not the full sequence) ----
    x_q = x_ref[0, pl.ds(row0, block_q), :]                                # (bq, H) f32
    q = jnp.dot(x_q.astype(jnp.bfloat16), wq_ref[...],
                preferred_element_type=jnp.float32) + bq_ref[...]          # (bq, H) f32
    q = q * (1.0 / float(np.sqrt(head_dim)))                               # fold 1/sqrt(hd)
    q3 = q.reshape(block_q, n_heads, head_dim).astype(jnp.bfloat16)        # (bq, nh, hd)

    # ---- head-batched scaled dot-product attention ----
    energy = jnp.einsum("qhd,hkd->hqk", q3, k_sc[...],
                        preferred_element_type=jnp.float32)                # (nh, bq, S)
    if s_actual < S_pad:
        key_idx = lax.broadcasted_iota(jnp.int32, (1, 1, S_pad), 2)
        energy = jnp.where(key_idx < s_actual, energy, -1e30)              # mask padding
    energy = energy - jnp.max(energy, axis=-1, keepdims=True)
    p = jnp.exp(energy)
    denom = jnp.sum(p, axis=-1, keepdims=True)
    attn = p * pl.reciprocal(denom, approx=False)       # exact: attn is a visible output
    attn_bf = attn.astype(jnp.bfloat16)
    attn_ref[0] = attn_bf                                                  # bf16 writeback

    ctx = jnp.einsum("hqk,hkd->qhd", attn_bf, v_sc[...],
                     preferred_element_type=jnp.float32)                   # (bq, nh, hd)
    ctx = ctx.reshape(block_q, H)                                          # concat heads

    # ---- output projection + residual + LayerNorm 1 ----
    attn_out = jnp.dot(ctx.astype(jnp.bfloat16), wo_ref[...],
                       preferred_element_type=jnp.float32) + bo_ref[...]
    res1 = x_q + attn_out                                                  # dropout == id
    mu1 = jnp.mean(res1, axis=-1, keepdims=True)
    var1 = jnp.mean((res1 - mu1) ** 2, axis=-1, keepdims=True)
    src1 = (res1 - mu1) * lax.rsqrt(var1 + eps) * ln1_g_ref[...] + ln1_b_ref[...]

    # ---- position-wise feed-forward + residual + LayerNorm 2 ----
    h1 = jnp.dot(src1.astype(jnp.bfloat16), wf1_ref[...],
                 preferred_element_type=jnp.float32) + bf1_ref[...]
    h1 = jnp.maximum(h1, 0.0)                                              # relu
    ff = jnp.dot(h1.astype(jnp.bfloat16), wf2_ref[...],
                 preferred_element_type=jnp.float32) + bf2_ref[...]
    res2 = src1 + ff
    mu2 = jnp.mean(res2, axis=-1, keepdims=True)
    var2 = jnp.mean((res2 - mu2) ** 2, axis=-1, keepdims=True)
    src2 = (res2 - mu2) * lax.rsqrt(var2 + eps) * ln2_g_ref[...] + ln2_b_ref[...]

    out_ref[0] = src2


# ------------------------------- wrapper -------------------------------------
def encoder_layer(x, params, *, n_heads: int, block_q: int | None = None,
                  attn_dtype=jnp.bfloat16):
    B, S, H = x.shape
    assert H % n_heads == 0
    head_dim = H // n_heads
    pf_dim = params["wf1"].shape[1]
    f32, bf16 = jnp.float32, jnp.bfloat16

    # --- pad the sequence to a lane/sublane-friendly multiple (128) ---
    S_pad = S if S <= 128 else int(-(-S // 128) * 128)
    x_in = x if S_pad == S else jnp.pad(x, ((0, 0), (0, S_pad - S), (0, 0)))

    # --- per-generation VMEM budget (v7x: 64 MiB/TC, v5e/v6e: 128 MiB) ---
    try:
        vmem_cap = int(pltpu.get_tpu_info().vmem_capacity_bytes)
    except Exception:
        vmem_cap = 64 * 2**20  # conservative default (v7x per-core)

    # --- query-block size derived from the budget ---
    if block_q is None:
        if S_pad <= 128:
            block_q = S_pad
        else:
            block_q = 128
            attn_blk = n_heads * 256 * S_pad * jnp.dtype(attn_dtype).itemsize
            if (S_pad % 256 == 0 and vmem_cap >= 96 * 2**20
                    and 2 * attn_blk <= 24 * 2**20):
                block_q = 256   # fills the 256-wide MXU (v6e) when it still fits
    assert S_pad % block_q == 0
    n_qblk = S_pad // block_q

    # --- parameters: fused K/V weights; bf16 weights, f32 biases / LN ---
    wq = params["wq"].astype(bf16)
    bq = params["bq"].astype(f32)
    wkv = jnp.concatenate([params["wk"], params["wv"]], axis=1).astype(bf16)
    bkv = jnp.concatenate([params["bk"], params["bv"]], axis=1).astype(f32)
    plist = [
        wq, bq, wkv, bkv,
        params["wo"].astype(bf16), params["bo"].astype(f32),
        params["ln1_g"].astype(f32), params["ln1_b"].astype(f32),
        params["wf1"].astype(bf16), params["bf1"].astype(f32),
        params["wf2"].astype(bf16), params["bf2"].astype(f32),
        params["ln2_g"].astype(f32), params["ln2_b"].astype(f32),
    ]
    # TODO(synk): optionally cast wf1/wf2 to fp8 for the v7x MXU (flag-gated).

    def _bsz(shape, dtype):
        return int(np.prod(shape)) * jnp.dtype(dtype).itemsize

    weight_bytes = sum(_bsz(p.shape, p.dtype) for p in plist)
    attn_isz = jnp.dtype(attn_dtype).itemsize

    block_bytes = (
        2 * _bsz((1, S_pad, H), f32)                       # x (double-buffered)
        + weight_bytes                                      # constants, single-buffered
        + 2 * _bsz((1, block_q, H), f32)                    # main output
        + 2 * n_heads * block_q * S_pad * attn_isz          # attn output (bf16)
        + 2 * _bsz((n_heads, S_pad, head_dim), bf16)        # K/V scratch
    )
    compute_bytes = (
        _bsz((S_pad, 2 * H), f32)                           # K/V projection temp
        + 3 * _bsz((n_heads, block_q, S_pad), f32)          # energy / p / attn
        + 2 * _bsz((block_q, pf_dim), f32)                  # FFN hidden
        + 4 * _bsz((block_q, H), f32)
    )
    vmem_limit = max(32 * 2**20, 2 * (block_bytes + compute_bytes))
    vmem_limit = int(min(vmem_limit, int(0.85 * vmem_cap)))

    flops = 2 * B * S_pad * (3 * H * H + 2 * S_pad * H + H * H + 2 * H * pf_dim)
    transcendentals = B * (n_heads * S_pad * S_pad + 2 * S_pad)
    bytes_accessed = (2 * _bsz((B, S_pad, H), f32) + weight_bytes
                      + B * n_heads * S_pad * S_pad * attn_isz)
    cost = pl.CostEstimate(flops=flops, transcendentals=transcendentals,
                           bytes_accessed=bytes_accessed)

    kernel = functools.partial(
        encoder_layer_kernel, n_heads=n_heads, head_dim=head_dim,
        block_q=block_q, s_actual=S, eps=1e-5,
    )

    out_shape = (
        jax.ShapeDtypeStruct((B, S_pad, H), f32),
        jax.ShapeDtypeStruct((B, n_heads, S_pad, S_pad), attn_dtype),
    )
    out_specs = (
        pl.BlockSpec((1, block_q, H), lambda b, q: (b, q, 0)),
        pl.BlockSpec((1, n_heads, block_q, S_pad), lambda b, q: (b, 0, q, 0)),
    )
    scratch_shapes = [
        pltpu.VMEM((n_heads, S_pad, head_dim), bf16),   # K scratch (per batch)
        pltpu.VMEM((n_heads, S_pad, head_dim), bf16),   # V scratch (per batch)
    ]

    def _run(single_buffer_consts: bool):
        def const_spec(a):
            nd = a.ndim
            idx = lambda b, q, _nd=nd: (0,) * _nd
            if single_buffer_consts:
                # Constant index map -> double-buffering buys nothing.
                return pl.BlockSpec(a.shape, idx, pipeline_mode=pl.Buffered(1))
            return pl.BlockSpec(a.shape, idx)

        in_specs = ([pl.BlockSpec((1, S_pad, H), lambda b, q: (b, 0, 0))]
                    + [const_spec(a) for a in plist])
        return pl.pallas_call(
            kernel,
            out_shape=out_shape,
            grid=(B, n_qblk),
            in_specs=in_specs,
            out_specs=out_specs,
            scratch_shapes=scratch_shapes,
            compiler_params=pltpu.CompilerParams(
                dimension_semantics=("parallel", "arbitrary"),
                vmem_limit_bytes=vmem_limit,
            ),
            cost_estimate=cost,
        )(x_in, *plist)

    try:
        out, attn = _run(True)
    except Exception:
        # Fallback for jax versions that reject pipeline_mode on pallas_call specs.
        out, attn = _run(False)

    if S_pad != S:
        out = out[:, :S, :]
        attn = attn[:, :, :S, :S]
    return out, attn


# --------------------------- pure-JAX reference -------------------------------
def encoder_layer_ref(x, params, *, n_heads: int):
    B, S, H = x.shape
    hd = H // n_heads

    def lin(a, w, b):
        return a @ w + b

    q = lin(x, params["wq"], params["bq"]).reshape(B, S, n_heads, hd).transpose(0, 2, 1, 3)
    k = lin(x, params["wk"], params["bk"]).reshape(B, S, n_heads, hd).transpose(0, 2, 1, 3)
    v = lin(x, params["wv"], params["bv"]).reshape(B, S, n_heads, hd).transpose(0, 2, 1, 3)
    energy = jnp.einsum("bhqd,bhkd->bhqk", q, k) / np.sqrt(hd)
    attn = jax.nn.softmax(energy, axis=-1)
    ctx = jnp.einsum("bhqk,bhkd->bhqd", attn, v).transpose(0, 2, 1, 3).reshape(B, S, H)
    attn_out = lin(ctx, params["wo"], params["bo"])

    def ln(a, g, b):
        mu = a.mean(-1, keepdims=True)
        var = ((a - mu) ** 2).mean(-1, keepdims=True)
        return (a - mu) / jnp.sqrt(var + 1e-5) * g + b

    src1 = ln(x + attn_out, params["ln1_g"], params["ln1_b"])
    ff = lin(jax.nn.relu(lin(src1, params["wf1"], params["bf1"])), params["wf2"], params["bf2"])
    src2 = ln(src1 + ff, params["ln2_g"], params["ln2_b"])
    return src2, attn


# --------------------------------- main ---------------------------------------
if __name__ == "__main__":
    B, S, H, NH, PF = 2, 8, 32, 4, 64

    key = jax.random.PRNGKey(0)
    ks = jax.random.split(key, 17)

    def w(k, shape, scale=0.1):
        return (scale * jax.random.normal(k, shape)).astype(jnp.float32)

    params = {
        "wq": w(ks[0], (H, H)),  "bq": w(ks[1], (1, H)),
        "wk": w(ks[2], (H, H)),  "bk": w(ks[3], (1, H)),
        "wv": w(ks[4], (H, H)),  "bv": w(ks[5], (1, H)),
        "wo": w(ks[6], (H, H)),  "bo": w(ks[7], (1, H)),
        "ln1_g": 1.0 + w(ks[8], (1, H)),  "ln1_b": w(ks[9], (1, H)),
        "wf1": w(ks[10], (H, PF)), "bf1": w(ks[11], (1, PF)),
        "wf2": w(ks[12], (PF, H)), "bf2": w(ks[13], (1, H)),
        "ln2_g": 1.0 + w(ks[14], (1, H)), "ln2_b": w(ks[15], (1, H)),
    }

    x = jax.random.normal(ks[16], (B, S, H), dtype=jnp.float32)

    out, attn = encoder_layer(x, params, n_heads=NH)
    out = jax.block_until_ready(out)
    attn = jax.block_until_ready(attn)

    out_ref, attn_ref = encoder_layer_ref(x, params, n_heads=NH)
    # bf16 matmuls (f32 accumulation) + bf16 attn output vs. f32 reference.
    np.testing.assert_allclose(np.asarray(out), np.asarray(out_ref),
                               rtol=3e-2, atol=3e-2)
    np.testing.assert_allclose(np.asarray(attn.astype(jnp.float32)),
                               np.asarray(attn_ref), rtol=3e-2, atol=3e-2)

    print("KERNEL_OK")
</pallas_src>

<mosaic_0001>
module attributes {stable_mosaic.version = 11 : i64} {
  func.func @encoder_layer_kernel(%arg0: i32, %arg1: i32, %arg2: memref<1x8x32xf32, #tpu.memory_space<vmem>>, %arg3: memref<32x32xbf16, #tpu.memory_space<vmem>>, %arg4: memref<1x32xf32, #tpu.memory_space<vmem>>, %arg5: memref<32x64xbf16, #tpu.memory_space<vmem>>, %arg6: memref<1x64xf32, #tpu.memory_space<vmem>>, %arg7: memref<32x32xbf16, #tpu.memory_space<vmem>>, %arg8: memref<1x32xf32, #tpu.memory_space<vmem>>, %arg9: memref<1x32xf32, #tpu.memory_space<vmem>>, %arg10: memref<1x32xf32, #tpu.memory_space<vmem>>, %arg11: memref<32x64xbf16, #tpu.memory_space<vmem>>, %arg12: memref<1x64xf32, #tpu.memory_space<vmem>>, %arg13: memref<64x32xbf16, #tpu.memory_space<vmem>>, %arg14: memref<1x32xf32, #tpu.memory_space<vmem>>, %arg15: memref<1x32xf32, #tpu.memory_space<vmem>>, %arg16: memref<1x32xf32, #tpu.memory_space<vmem>>, %arg17: memref<1x8x32xf32, #tpu.memory_space<vmem>>, %arg18: memref<1x4x8x8xbf16, #tpu.memory_space<vmem>>, %arg19: memref<4x8x8xbf16, #tpu.memory_space<vmem>>, %arg20: memref<4x8x8xbf16, #tpu.memory_space<vmem>>) attributes {dimension_semantics = [#tpu.dimension_semantics<parallel>, #tpu.dimension_semantics<arbitrary>], iteration_bounds = array<i64: 2, 1>, scalar_prefetch = 0 : i64, scratch_operands = 2 : i64, tpu.core_type = #tpu.core_type<tc>, window_params = [{transform_indices = @transform_0, window_bounds = array<i64: 1, 8, 32>}, {pipeline_mode = #tpu.pipeline_mode<synchronous>, transform_indices = @transform_1, window_bounds = array<i64: 32, 32>}, {pipeline_mode = #tpu.pipeline_mode<synchronous>, transform_indices = @transform_2, window_bounds = array<i64: 1, 32>}, {pipeline_mode = #tpu.pipeline_mode<synchronous>, transform_indices = @transform_3, window_bounds = array<i64: 32, 64>}, {pipeline_mode = #tpu.pipeline_mode<synchronous>, transform_indices = @transform_4, window_bounds = array<i64: 1, 64>}, {pipeline_mode = #tpu.pipeline_mode<synchronous>, transform_indices = @transform_5, window_bounds = array<i64: 32, 32>}, {pipeline_mode = #tpu.pipeline_mode<synchronous>, transform_indices = @transform_6, window_bounds = array<i64: 1, 32>}, {pipeline_mode = #tpu.pipeline_mode<synchronous>, transform_indices = @transform_7, window_bounds = array<i64: 1, 32>}, {pipeline_mode = #tpu.pipeline_mode<synchronous>, transform_indices = @transform_8, window_bounds = array<i64: 1, 32>}, {pipeline_mode = #tpu.pipeline_mode<synchronous>, transform_indices = @transform_9, window_bounds = array<i64: 32, 64>}, {pipeline_mode = #tpu.pipeline_mode<synchronous>, transform_indices = @transform_10, window_bounds = array<i64: 1, 64>}, {pipeline_mode = #tpu.pipeline_mode<synchronous>, transform_indices = @transform_11, window_bounds = array<i64: 64, 32>}, {pipeline_mode = #tpu.pipeline_mode<synchronous>, transform_indices = @transform_12, window_bounds = array<i64: 1, 32>}, {pipeline_mode = #tpu.pipeline_mode<synchronous>, transform_indices = @transform_13, window_bounds = array<i64: 1, 32>}, {pipeline_mode = #tpu.pipeline_mode<synchronous>, transform_indices = @transform_14, window_bounds = array<i64: 1, 32>}, {transform_indices = @transform_15, window_bounds = array<i64: 1, 8, 32>}, {transform_indices = @transform_16, window_bounds = array<i64: 1, 4, 8, 8>}]} {
    %c8_i32 = arith.constant 8 : i32
    %0 = arith.muli %arg1, %c8_i32 : i32
    %1 = tpu.assume_multiple %0, 8 : i32
    %c0_i32 = arith.constant 0 : i32
    %2 = arith.cmpi eq, %arg1, %c0_i32 : i32
    %3 = arith.extui %2 : i1 to i32
    %c0_i32_0 = arith.constant 0 : i32
    %4 = arith.cmpi ne, %3, %c0_i32_0 : i32
    scf.if %4 {
      %c0_58 = arith.constant 0 : index
      %c0_59 = arith.constant 0 : index
      %c0_60 = arith.constant 0 : index
      %111 = vector.load %arg2[%c0_58, %c0_59, %c0_60] : memref<1x8x32xf32, #tpu.memory_space<vmem>>, vector<1x8x32xf32>
      %112 = vector.shape_cast %111 : vector<1x8x32xf32> to vector<8x32xf32>
      %113 = arith.truncf %112 : vector<8x32xf32> to vector<8x32xbf16>
      %c0_61 = arith.constant 0 : index
      %c0_62 = arith.constant 0 : index
      %114 = vector.load %arg5[%c0_61, %c0_62] : memref<32x64xbf16, #tpu.memory_space<vmem>>, vector<32x64xbf16>
      %cst_63 = arith.constant dense<0.000000e+00> : vector<8x64xf32>
      %115 = tpu.matmul %113, %114, %cst_63 {dimension_numbers = #tpu.dot_dimension_numbers<[1], [0], [0], [1], [0, 0, 1, 1], [], []>} : vector<8x32xbf16>, vector<32x64xbf16>, vector<8x64xf32> -> vector<8x64xf32>
      %c0_64 = arith.constant 0 : index
      %c0_65 = arith.constant 0 : index
      %116 = vector.load %arg6[%c0_64, %c0_65] : memref<1x64xf32, #tpu.memory_space<vmem>>, vector<1x64xf32>
      %117 = vector.broadcast %116 : vector<1x64xf32> to vector<8x64xf32>
      %118 = arith.addf %115, %117 : vector<8x64xf32>
      %119 = arith.truncf %118 : vector<8x64xf32> to vector<8x64xbf16>
      %120 = vector.extract_strided_slice %119 {offsets = [0, 0], sizes = [8, 8], strides = [1, 1]} : vector<8x64xbf16> to vector<8x8xbf16>
      %c0_66 = arith.constant 0 : index
      %c0_67 = arith.constant 0 : index
      %c0_68 = arith.constant 0 : index
      %121 = vector.load %arg19[%c0_66, %c0_67, %c0_68] : memref<4x8x8xbf16, #tpu.memory_space<vmem>>, vector<1x8x8xbf16>
      %122 = vector.shape_cast %121 : vector<1x8x8xbf16> to vector<8x8xbf16>
      %123 = vector.shape_cast %120 : vector<8x8xbf16> to vector<1x8x8xbf16>
      tpu.vector_store %arg19[%c0_66, %c0_67, %c0_68], %123 {strides = array<i32>} : memref<4x8x8xbf16, #tpu.memory_space<vmem>>, vector<1x8x8xbf16>,
      %124 = vector.extract_strided_slice %119 {offsets = [0, 32], sizes = [8, 8], strides = [1, 1]} : vector<8x64xbf16> to vector<8x8xbf16>
      %c0_69 = arith.constant 0 : index
      %c0_70 = arith.constant 0 : index
      %c0_71 = arith.constant 0 : index
      %125 = vector.load %arg20[%c0_69, %c0_70, %c0_71] : memref<4x8x8xbf16, #tpu.memory_space<vmem>>, vector<1x8x8xbf16>
      %126 = vector.shape_cast %125 : vector<1x8x8xbf16> to vector<8x8xbf16>
      %127 = vector.shape_cast %124 : vector<8x8xbf16> to vector<1x8x8xbf16>
      tpu.vector_store %arg20[%c0_69, %c0_70, %c0_71], %127 {strides = array<i32>} : memref<4x8x8xbf16, #tpu.memory_space<vmem>>, vector<1x8x8xbf16>,
      %128 = vector.extract_strided_slice %119 {offsets = [0, 8], sizes = [8, 8], strides = [1, 1]} : vector<8x64xbf16> to vector<8x8xbf16>
      %c1 = arith.constant 1 : index
      %c0_72 = arith.constant 0 : index
      %c0_73 = arith.constant 0 : index
      %129 = vector.load %arg19[%c1, %c0_72, %c0_73] : memref<4x8x8xbf16, #tpu.memory_space<vmem>>, vector<1x8x8xbf16>
      %130 = vector.shape_cast %129 : vector<1x8x8xbf16> to vector<8x8xbf16>
      %131 = vector.shape_cast %128 : vector<8x8xbf16> to vector<1x8x8xbf16>
      tpu.vector_store %arg19[%c1, %c0_72, %c0_73], %131 {strides = array<i32>} : memref<4x8x8xbf16, #tpu.memory_space<vmem>>, vector<1x8x8xbf16>,
      %132 = vector.extract_strided_slice %119 {offsets = [0, 40], sizes = [8, 8], strides = [1, 1]} : vector<8x64xbf16> to vector<8x8xbf16>
      %c1_74 = arith.constant 1 : index
      %c0_75 = arith.constant 0 : index
      %c0_76 = arith.constant 0 : index
      %133 = vector.load %arg20[%c1_74, %c0_75, %c0_76] : memref<4x8x8xbf16, #tpu.memory_space<vmem>>, vector<1x8x8xbf16>
      %134 = vector.shape_cast %133 : vector<1x8x8xbf16> to vector<8x8xbf16>
      %135 = vector.shape_cast %132 : vector<8x8xbf16> to vector<1x8x8xbf16>
      tpu.vector_store %arg20[%c1_74, %c0_75, %c0_76], %135 {strides = array<i32>} : memref<4x8x8xbf16, #tpu.memory_space<vmem>>, vector<1x8x8xbf16>,
      %136 = vector.extract_strided_slice %119 {offsets = [0, 16], sizes = [8, 8], strides = [1, 1]} : vector<8x64xbf16> to vector<8x8xbf16>
      %c2 = arith.constant 2 : index
      %c0_77 = arith.constant 0 : index
      %c0_78 = arith.constant 0 : index
      %137 = vector.load %arg19[%c2, %c0_77, %c0_78] : memref<4x8x8xbf16, #tpu.memory_space<vmem>>, vector<1x8x8xbf16>
      %138 = vector.shape_cast %137 : vector<1x8x8xbf16> to vector<8x8xbf16>
      %139 = vector.shape_cast %136 : vector<8x8xbf16> to vector<1x8x8xbf16>
      tpu.vector_store %arg19[%c2, %c0_77, %c0_78], %139 {strides = array<i32>} : memref<4x8x8xbf16, #tpu.memory_space<vmem>>, vector<1x8x8xbf16>,
      %140 = vector.extract_strided_slice %119 {offsets = [0, 48], sizes = [8, 8], strides = [1, 1]} : vector<8x64xbf16> to vector<8x8xbf16>
      %c2_79 = arith.constant 2 : index
      %c0_80 = arith.constant 0 : index
      %c0_81 = arith.constant 0 : index
      %141 = vector.load %arg20[%c2_79, %c0_80, %c0_81] : memref<4x8x8xbf16, #tpu.memory_space<vmem>>, vector<1x8x8xbf16>
      %142 = vector.shape_cast %141 : vector<1x8x8xbf16> to vector<8x8xbf16>
      %143 = vector.shape_cast %140 : vector<8x8xbf16> to vector<1x8x8xbf16>
      tpu.vector_store %arg20[%c2_79, %c0_80, %c0_81], %143 {strides = array<i32>} : memref<4x8x8xbf16, #tpu.memory_space<vmem>>, vector<1x8x8xbf16>,
      %144 = vector.extract_strided_slice %119 {offsets = [0, 24], sizes = [8, 8], strides = [1, 1]} : vector<8x64xbf16> to vector<8x8xbf16>
      %c3 = arith.constant 3 : index
      %c0_82 = arith.constant 0 : index
      %c0_83 = arith.constant 0 : index
      %145 = vector.load %arg19[%c3, %c0_82, %c0_83] : memref<4x8x8xbf16, #tpu.memory_space<vmem>>, vector<1x8x8xbf16>
      %146 = vector.shape_cast %145 : vector<1x8x8xbf16> to vector<8x8xbf16>
      %147 = vector.shape_cast %144 : vector<8x8xbf16> to vector<1x8x8xbf16>
      tpu.vector_store %arg19[%c3, %c0_82, %c0_83], %147 {strides = array<i32>} : memref<4x8x8xbf16, #tpu.memory_space<vmem>>, vector<1x8x8xbf16>,
      %148 = vector.extract_strided_slice %119 {offsets = [0, 56], sizes = [8, 8], strides = [1, 1]} : vector<8x64xbf16> to vector<8x8xbf16>
      %c3_84 = arith.constant 3 : index
      %c0_85 = arith.constant 0 : index
      %c0_86 = arith.constant 0 : index
      %149 = vector.load %arg20[%c3_84, %c0_85, %c0_86] : memref<4x8x8xbf16, #tpu.memory_space<vmem>>, vector<1x8x8xbf16>
      %150 = vector.shape_cast %149 : vector<1x8x8xbf16> to vector<8x8xbf16>
      %151 = vector.shape_cast %148 : vector<8x8xbf16> to vector<1x8x8xbf16>
      tpu.vector_store %arg20[%c3_84, %c0_85, %c0_86], %151 {strides = array<i32>} : memref<4x8x8xbf16, #tpu.memory_space<vmem>>, vector<1x8x8xbf16>,
    } else {
    }
    %c0 = arith.constant 0 : index
    %5 = arith.index_cast %1 : i32 to index
    %c0_1 = arith.constant 0 : index
    %6 = vector.load %arg2[%c0, %5, %c0_1] : memref<1x8x32xf32, #tpu.memory_space<vmem>>, vector<1x8x32xf32>
    %7 = vector.shape_cast %6 : vector<1x8x32xf32> to vector<8x32xf32>
    %8 = arith.truncf %7 : vector<8x32xf32> to vector<8x32xbf16>
    %c0_2 = arith.constant 0 : index
    %c0_3 = arith.constant 0 : index
    %9 = vector.load %arg3[%c0_2, %c0_3] : memref<32x32xbf16, #tpu.memory_space<vmem>>, vector<32x32xbf16>
    %cst = arith.constant dense<0.000000e+00> : vector<8x32xf32>
    %10 = tpu.matmul %8, %9, %cst {dimension_numbers = #tpu.dot_dimension_numbers<[1], [0], [0], [1], [0, 0, 1, 1], [], []>} : vector<8x32xbf16>, vector<32x32xbf16>, vector<8x32xf32> -> vector<8x32xf32>
    %c0_4 = arith.constant 0 : index
    %c0_5 = arith.constant 0 : index
    %11 = vector.load %arg4[%c0_4, %c0_5] : memref<1x32xf32, #tpu.memory_space<vmem>>, vector<1x32xf32>
    %12 = vector.broadcast %11 : vector<1x32xf32> to vector<8x32xf32>
    %13 = arith.addf %10, %12 : vector<8x32xf32>
    %cst_6 = arith.constant 0.353553385 : f32
    %14 = vector.broadcast %cst_6 : f32 to vector<8x32xf32>
    %15 = arith.mulf %13, %14 : vector<8x32xf32>
    %16 = vector.shape_cast %15 : vector<8x32xf32> to vector<8x4x8xf32>
    %17 = arith.truncf %16 : vector<8x4x8xf32> to vector<8x4x8xbf16>
    %c0_7 = arith.constant 0 : index
    %c0_8 = arith.constant 0 : index
    %c0_9 = arith.constant 0 : index
    %18 = vector.load %arg19[%c0_7, %c0_8, %c0_9] : memref<4x8x8xbf16, #tpu.memory_space<vmem>>, vector<4x8x8xbf16>
    "tpu.trace_start"() <{level = 10 : i32, message = "qhd,hkd->hqk"}> : () -> ()
    %cst_10 = arith.constant dense<0.000000e+00> : vector<4x8x8xf32>
    %19 = tpu.matmul %17, %18, %cst_10 {dimension_numbers = #tpu.dot_dimension_numbers<[2], [2], [0], [1], [0, 1, 0, 0, 1, 1], [1], [0]>} : vector<8x4x8xbf16>, vector<4x8x8xbf16>, vector<4x8x8xf32> -> vector<4x8x8xf32>
    "tpu.trace_stop"() : () -> ()
    %cst_11 = arith.constant dense<0xFF800000> : vector<4x8xf32>
    %20 = vector.multi_reduction <maximumf>, %19, %cst_11 [2] : vector<4x8x8xf32> to vector<4x8xf32>
    %21 = vector.shape_cast %20 : vector<4x8xf32> to vector<4x8x1xf32>
    %22 = vector.broadcast %21 : vector<4x8x1xf32> to vector<4x8x8xf32>
    %23 = arith.subf %19, %22 : vector<4x8x8xf32>
    %24 = math.exp %23 : vector<4x8x8xf32>
    %cst_12 = arith.constant dense<0.000000e+00> : vector<4x8xf32>
    %25 = vector.multi_reduction <add>, %24, %cst_12 [2] : vector<4x8x8xf32> to vector<4x8xf32>
    %26 = vector.shape_cast %25 : vector<4x8xf32> to vector<4x8x1xf32>
    %27 = tpu.reciprocal %26 : vector<4x8x1xf32> -> vector<4x8x1xf32>
    %28 = vector.broadcast %27 : vector<4x8x1xf32> to vector<4x8x8xf32>
    %29 = arith.mulf %24, %28 : vector<4x8x8xf32>
    %30 = arith.truncf %29 : vector<4x8x8xf32> to vector<4x8x8xbf16>
    %c0_13 = arith.constant 0 : index
    %c0_14 = arith.constant 0 : index
    %c0_15 = arith.constant 0 : index
    %c0_16 = arith.constant 0 : index
    %31 = vector.load %arg18[%c0_13, %c0_14, %c0_15, %c0_16] : memref<1x4x8x8xbf16, #tpu.memory_space<vmem>>, vector<1x4x8x8xbf16>
    %32 = vector.shape_cast %31 : vector<1x4x8x8xbf16> to vector<4x8x8xbf16>
    %33 = vector.shape_cast %30 : vector<4x8x8xbf16> to vector<1x4x8x8xbf16>
    tpu.vector_store %arg18[%c0_13, %c0_14, %c0_15, %c0_16], %33 {strides = array<i32>} : memref<1x4x8x8xbf16, #tpu.memory_space<vmem>>, vector<1x4x8x8xbf16>,
    %c0_17 = arith.constant 0 : index
    %c0_18 = arith.constant 0 : index
    %c0_19 = arith.constant 0 : index
    %34 = vector.load %arg20[%c0_17, %c0_18, %c0_19] : memref<4x8x8xbf16, #tpu.memory_space<vmem>>, vector<4x8x8xbf16>
    "tpu.trace_start"() <{level = 10 : i32, message = "hqk,hkd->qhd"}> : () -> ()
    %cst_20 = arith.constant dense<0.000000e+00> : vector<4x8x8xf32>
    %35 = tpu.matmul %34, %30, %cst_20 {dimension_numbers = #tpu.dot_dimension_numbers<[1], [2], [2], [1], [0, 0, 0, 2, 1, 1], [0], [0]>} : vector<4x8x8xbf16>, vector<4x8x8xbf16>, vector<4x8x8xf32> -> vector<4x8x8xf32>
    %36 = tpu.transpose %35, [2, 0, 1] : vector<4x8x8xf32> -> vector<8x4x8xf32>
    "tpu.trace_stop"() : () -> ()
    %37 = vector.shape_cast %36 : vector<8x4x8xf32> to vector<8x32xf32>
    %38 = arith.truncf %37 : vector<8x32xf32> to vector<8x32xbf16>
    %c0_21 = arith.constant 0 : index
    %c0_22 = arith.constant 0 : index
    %39 = vector.load %arg7[%c0_21, %c0_22] : memref<32x32xbf16, #tpu.memory_space<vmem>>, vector<32x32xbf16>
    %cst_23 = arith.constant dense<0.000000e+00> : vector<8x32xf32>
    %40 = tpu.matmul %38, %39, %cst_23 {dimension_numbers = #tpu.dot_dimension_numbers<[1], [0], [0], [1], [0, 0, 1, 1], [], []>} : vector<8x32xbf16>, vector<32x32xbf16>, vector<8x32xf32> -> vector<8x32xf32>
    %c0_24 = arith.constant 0 : index
    %c0_25 = arith.constant 0 : index
    %41 = vector.load %arg8[%c0_24, %c0_25] : memref<1x32xf32, #tpu.memory_space<vmem>>, vector<1x32xf32>
    %42 = vector.broadcast %41 : vector<1x32xf32> to vector<8x32xf32>
    %43 = arith.addf %40, %42 : vector<8x32xf32>
    %44 = arith.addf %7, %43 : vector<8x32xf32>
    %cst_26 = arith.constant dense<0.000000e+00> : vector<8xf32>
    %45 = vector.multi_reduction <add>, %44, %cst_26 [1] : vector<8x32xf32> to vector<8xf32>
    %46 = vector.shape_cast %45 : vector<8xf32> to vector<8x1xf32>
    %cst_27 = arith.constant 3.200000e+01 : f32
    %47 = vector.broadcast %cst_27 : f32 to vector<8x1xf32>
    %48 = arith.divf %46, %47 : vector<8x1xf32>
    %49 = vector.broadcast %48 : vector<8x1xf32> to vector<8x32xf32>
    %50 = arith.subf %44, %49 : vector<8x32xf32>
    %51 = arith.mulf %50, %50 : vector<8x32xf32>
    %cst_28 = arith.constant dense<0.000000e+00> : vector<8xf32>
    %52 = vector.multi_reduction <add>, %51, %cst_28 [1] : vector<8x32xf32> to vector<8xf32>
    %53 = vector.shape_cast %52 : vector<8xf32> to vector<8x1xf32>
    %cst_29 = arith.constant 3.200000e+01 : f32
    %54 = vector.broadcast %cst_29 : f32 to vector<8x1xf32>
    %55 = arith.divf %53, %54 : vector<8x1xf32>
    %56 = vector.broadcast %48 : vector<8x1xf32> to vector<8x32xf32>
    %57 = arith.subf %44, %56 : vector<8x32xf32>
    %cst_30 = arith.constant 9.99999974E-6 : f32
    %58 = vector.broadcast %cst_30 : f32 to vector<8x1xf32>
    %59 = arith.addf %55, %58 : vector<8x1xf32>
    %60 = math.rsqrt %59 : vector<8x1xf32>
    %61 = vector.broadcast %60 : vector<8x1xf32> to vector<8x32xf32>
    %62 = arith.mulf %57, %61 : vector<8x32xf32>
    %c0_31 = arith.constant 0 : index
    %c0_32 = arith.constant 0 : index
    %63 = vector.load %arg9[%c0_31, %c0_32] : memref<1x32xf32, #tpu.memory_space<vmem>>, vector<1x32xf32>
    %64 = vector.broadcast %63 : vector<1x32xf32> to vector<8x32xf32>
    %65 = arith.mulf %62, %64 : vector<8x32xf32>
    %c0_33 = arith.constant 0 : index
    %c0_34 = arith.constant 0 : index
    %66 = vector.load %arg10[%c0_33, %c0_34] : memref<1x32xf32, #tpu.memory_space<vmem>>, vector<1x32xf32>
    %67 = vector.broadcast %66 : vector<1x32xf32> to vector<8x32xf32>
    %68 = arith.addf %65, %67 : vector<8x32xf32>
    %69 = arith.truncf %68 : vector<8x32xf32> to vector<8x32xbf16>
    %c0_35 = arith.constant 0 : index
    %c0_36 = arith.constant 0 : index
    %70 = vector.load %arg11[%c0_35, %c0_36] : memref<32x64xbf16, #tpu.memory_space<vmem>>, vector<32x64xbf16>
    %cst_37 = arith.constant dense<0.000000e+00> : vector<8x64xf32>
    %71 = tpu.matmul %69, %70, %cst_37 {dimension_numbers = #tpu.dot_dimension_numbers<[1], [0], [0], [1], [0, 0, 1, 1], [], []>} : vector<8x32xbf16>, vector<32x64xbf16>, vector<8x64xf32> -> vector<8x64xf32>
    %c0_38 = arith.constant 0 : index
    %c0_39 = arith.constant 0 : index
    %72 = vector.load %arg12[%c0_38, %c0_39] : memref<1x64xf32, #tpu.memory_space<vmem>>, vector<1x64xf32>
    %73 = vector.broadcast %72 : vector<1x64xf32> to vector<8x64xf32>
    %74 = arith.addf %71, %73 : vector<8x64xf32>
    %cst_40 = arith.constant 0.000000e+00 : f32
    %75 = vector.broadcast %cst_40 : f32 to vector<8x64xf32>
    %76 = arith.maximumf %74, %75 : vector<8x64xf32>
    %77 = arith.truncf %76 : vector<8x64xf32> to vector<8x64xbf16>
    %c0_41 = arith.constant 0 : index
    %c0_42 = arith.constant 0 : index
    %78 = vector.load %arg13[%c0_41, %c0_42] : memref<64x32xbf16, #tpu.memory_space<vmem>>, vector<64x32xbf16>
    %cst_43 = arith.constant dense<0.000000e+00> : vector<8x32xf32>
    %79 = tpu.matmul %77, %78, %cst_43 {dimension_numbers = #tpu.dot_dimension_numbers<[1], [0], [0], [1], [0, 0, 1, 1], [], []>} : vector<8x64xbf16>, vector<64x32xbf16>, vector<8x32xf32> -> vector<8x32xf32>
    %c0_44 = arith.constant 0 : index
    %c0_45 = arith.constant 0 : index
    %80 = vector.load %arg14[%c0_44, %c0_45] : memref<1x32xf32, #tpu.memory_space<vmem>>, vector<1x32xf32>
    %81 = vector.broadcast %80 : vector<1x32xf32> to vector<8x32xf32>
    %82 = arith.addf %79, %81 : vector<8x32xf32>
    %83 = arith.addf %68, %82 : vector<8x32xf32>
    %cst_46 = arith.constant dense<0.000000e+00> : vector<8xf32>
    %84 = vector.multi_reduction <add>, %83, %cst_46 [1] : vector<8x32xf32> to vector<8xf32>
    %85 = vector.shape_cast %84 : vector<8xf32> to vector<8x1xf32>
    %cst_47 = arith.constant 3.200000e+01 : f32
    %86 = vector.broadcast %cst_47 : f32 to vector<8x1xf32>
    %87 = arith.divf %85, %86 : vector<8x1xf32>
    %88 = vector.broadcast %87 : vector<8x1xf32> to vector<8x32xf32>
    %89 = arith.subf %83, %88 : vector<8x32xf32>
    %90 = arith.mulf %89, %89 : vector<8x32xf32>
    %cst_48 = arith.constant dense<0.000000e+00> : vector<8xf32>
    %91 = vector.multi_reduction <add>, %90, %cst_48 [1] : vector<8x32xf32> to vector<8xf32>
    %92 = vector.shape_cast %91 : vector<8xf32> to vector<8x1xf32>
    %cst_49 = arith.constant 3.200000e+01 : f32
    %93 = vector.broadcast %cst_49 : f32 to vector<8x1xf32>
    %94 = arith.divf %92, %93 : vector<8x1xf32>
    %95 = vector.broadcast %87 : vector<8x1xf32> to vector<8x32xf32>
    %96 = arith.subf %83, %95 : vector<8x32xf32>
    %cst_50 = arith.constant 9.99999974E-6 : f32
    %97 = vector.broadcast %cst_50 : f32 to vector<8x1xf32>
    %98 = arith.addf %94, %97 : vector<8x1xf32>
    %99 = math.rsqrt %98 : vector<8x1xf32>
    %100 = vector.broadcast %99 : vector<8x1xf32> to vector<8x32xf32>
    %101 = arith.mulf %96, %100 : vector<8x32xf32>
    %c0_51 = arith.constant 0 : index
    %c0_52 = arith.constant 0 : index
    %102 = vector.load %arg15[%c0_51, %c0_52] : memref<1x32xf32, #tpu.memory_space<vmem>>, vector<1x32xf32>
    %103 = vector.broadcast %102 : vector<1x32xf32> to vector<8x32xf32>
    %104 = arith.mulf %101, %103 : vector<8x32xf32>
    %c0_53 = arith.constant 0 : index
    %c0_54 = arith.constant 0 : index
    %105 = vector.load %arg16[%c0_53, %c0_54] : memref<1x32xf32, #tpu.memory_space<vmem>>, vector<1x32xf32>
    %106 = vector.broadcast %105 : vector<1x32xf32> to vector<8x32xf32>
    %107 = arith.addf %104, %106 : vector<8x32xf32>
    %c0_55 = arith.constant 0 : index
    %c0_56 = arith.constant 0 : index
    %c0_57 = arith.constant 0 : index
    %108 = vector.load %arg17[%c0_55, %c0_56, %c0_57] : memref<1x8x32xf32, #tpu.memory_space<vmem>>, vector<1x8x32xf32>
    %109 = vector.shape_cast %108 : vector<1x8x32xf32> to vector<8x32xf32>
    %110 = vector.shape_cast %107 : vector<8x32xf32> to vector<1x8x32xf32>
    tpu.vector_store %arg17[%c0_55, %c0_56, %c0_57], %110 {strides = array<i32>} : memref<1x8x32xf32, #tpu.memory_space<vmem>>, vector<1x8x32xf32>,
    return
  }
  func.func @transform_0(%arg0: i32, %arg1: i32) -> (i32, i32, i32) {
    %c0_i32 = arith.constant 0 : i32
    %c0_i32_0 = arith.constant 0 : i32
    %c0_i32_1 = arith.constant 0 : i32
    return %arg0, %c0_i32, %c0_i32_0 : i32, i32, i32
  }
  func.func @transform_1(%arg0: i32, %arg1: i32) -> (i32, i32) {
    %c0_i32 = arith.constant 0 : i32
    %c0_i32_0 = arith.constant 0 : i32
    %c0_i32_1 = arith.constant 0 : i32
    return %c0_i32, %c0_i32_0 : i32, i32
  }
  func.func @transform_2(%arg0: i32, %arg1: i32) -> (i32, i32) {
    %c0_i32 = arith.constant 0 : i32
    %c0_i32_0 = arith.constant 0 : i32
    %c0_i32_1 = arith.constant 0 : i32
    return %c0_i32, %c0_i32_0 : i32, i32
  }
  func.func @transform_3(%arg0: i32, %arg1: i32) -> (i32, i32) {
    %c0_i32 = arith.constant 0 : i32
    %c0_i32_0 = arith.constant 0 : i32
    %c0_i32_1 = arith.constant 0 : i32
    return %c0_i32, %c0_i32_0 : i32, i32
  }
  func.func @transform_4(%arg0: i32, %arg1: i32) -> (i32, i32) {
    %c0_i32 = arith.constant 0 : i32
    %c0_i32_0 = arith.constant 0 : i32
    %c0_i32_1 = arith.constant 0 : i32
    return %c0_i32, %c0_i32_0 : i32, i32
  }
  func.func @transform_5(%arg0: i32, %arg1: i32) -> (i32, i32) {
    %c0_i32 = arith.constant 0 : i32
    %c0_i32_0 = arith.constant 0 : i32
    %c0_i32_1 = arith.constant 0 : i32
    return %c0_i32, %c0_i32_0 : i32, i32
  }
  func.func @transform_6(%arg0: i32, %arg1: i32) -> (i32, i32) {
    %c0_i32 = arith.constant 0 : i32
    %c0_i32_0 = arith.constant 0 : i32
    %c0_i32_1 = arith.constant 0 : i32
    return %c0_i32, %c0_i32_0 : i32, i32
  }
  func.func @transform_7(%arg0: i32, %arg1: i32) -> (i32, i32) {
    %c0_i32 = arith.constant 0 : i32
    %c0_i32_0 = arith.constant 0 : i32
    %c0_i32_1 = arith.constant 0 : i32
    return %c0_i32, %c0_i32_0 : i32, i32
  }
  func.func @transform_8(%arg0: i32, %arg1: i32) -> (i32, i32) {
    %c0_i32 = arith.constant 0 : i32
    %c0_i32_0 = arith.constant 0 : i32
    %c0_i32_1 = arith.constant 0 : i32
    return %c0_i32, %c0_i32_0 : i32, i32
  }
  func.func @transform_9(%arg0: i32, %arg1: i32) -> (i32, i32) {
    %c0_i32 = arith.constant 0 : i32
    %c0_i32_0 = arith.constant 0 : i32
    %c0_i32_1 = arith.constant 0 : i32
    return %c0_i32, %c0_i32_0 : i32, i32
  }
  func.func @transform_10(%arg0: i32, %arg1: i32) -> (i32, i32) {
    %c0_i32 = arith.constant 0 : i32
    %c0_i32_0 = arith.constant 0 : i32
    %c0_i32_1 = arith.constant 0 : i32
    return %c0_i32, %c0_i32_0 : i32, i32
  }
  func.func @transform_11(%arg0: i32, %arg1: i32) -> (i32, i32) {
    %c0_i32 = arith.constant 0 : i32
    %c0_i32_0 = arith.constant 0 : i32
    %c0_i32_1 = arith.constant 0 : i32
    return %c0_i32, %c0_i32_0 : i32, i32
  }
  func.func @transform_12(%arg0: i32, %arg1: i32) -> (i32, i32) {
    %c0_i32 = arith.constant 0 : i32
    %c0_i32_0 = arith.constant 0 : i32
    %c0_i32_1 = arith.constant 0 : i32
    return %c0_i32, %c0_i32_0 : i32, i32
  }
  func.func @transform_13(%arg0: i32, %arg1: i32) -> (i32, i32) {
    %c0_i32 = arith.constant 0 : i32
    %c0_i32_0 = arith.constant 0 : i32
    %c0_i32_1 = arith.constant 0 : i32
    return %c0_i32, %c0_i32_0 : i32, i32
  }
  func.func @transform_14(%arg0: i32, %arg1: i32) -> (i32, i32) {
    %c0_i32 = arith.constant 0 : i32
    %c0_i32_0 = arith.constant 0 : i32
    %c0_i32_1 = arith.constant 0 : i32
    return %c0_i32, %c0_i32_0 : i32, i32
  }
  func.func @transform_15(%arg0: i32, %arg1: i32) -> (i32, i32, i32) {
    %c0_i32 = arith.constant 0 : i32
    %c0_i32_0 = arith.constant 0 : i32
    return %arg0, %arg1, %c0_i32 : i32, i32, i32
  }
  func.func @transform_16(%arg0: i32, %arg1: i32) -> (i32, i32, i32, i32) {
    %c0_i32 = arith.constant 0 : i32
    %c0_i32_0 = arith.constant 0 : i32
    %c0_i32_1 = arith.constant 0 : i32
    return %arg0, %c0_i32, %arg1, %c0_i32_0 : i32, i32, i32, i32
  }
}

module attributes {stable_mosaic.version = 11 : i64} {
  func.func @encoder_layer_kernel(%arg0: i32, %arg1: i32, %arg2: memref<1x8x32xf32, #tpu.memory_space<vmem>>, %arg3: memref<32x32xbf16, #tpu.memory_space<vmem>>, %arg4: memref<1x32xf32, #tpu.memory_space<vmem>>, %arg5: memref<32x64xbf16, #tpu.memory_space<vmem>>, %arg6: memref<1x64xf32, #tpu.memory_space<vmem>>, %arg7: memref<32x32xbf16, #tpu.memory_space<vmem>>, %arg8: memref<1x32xf32, #tpu.memory_space<vmem>>, %arg9: memref<1x32xf32, #tpu.memory_space<vmem>>, %arg10: memref<1x32xf32, #tpu.memory_space<vmem>>, %arg11: memref<32x64xbf16, #tpu.memory_space<vmem>>, %arg12: memref<1x64xf32, #tpu.memory_space<vmem>>, %arg13: memref<64x32xbf16, #tpu.memory_space<vmem>>, %arg14: memref<1x32xf32, #tpu.memory_space<vmem>>, %arg15: memref<1x32xf32, #tpu.memory_space<vmem>>, %arg16: memref<1x32xf32, #tpu.memory_space<vmem>>, %arg17: memref<1x8x32xf32, #tpu.memory_space<vmem>>, %arg18: memref<1x4x8x8xbf16, #tpu.memory_space<vmem>>, %arg19: memref<4x8x8xbf16, #tpu.memory_space<vmem>>, %arg20: memref<4x8x8xbf16, #tpu.memory_space<vmem>>) attributes {dimension_semantics = [#tpu.dimension_semantics<parallel>, #tpu.dimension_semantics<arbitrary>], iteration_bounds = array<i64: 2, 1>, scalar_prefetch = 0 : i64, scratch_operands = 2 : i64, tpu.core_type = #tpu.core_type<tc>, window_params = [{transform_indices = @transform_0, window_bounds = array<i64: 1, 8, 32>}, {pipeline_mode = #tpu.pipeline_mode<synchronous>, transform_indices = @transform_1, window_bounds = array<i64: 32, 32>}, {pipeline_mode = #tpu.pipeline_mode<synchronous>, transform_indices = @transform_2, window_bounds = array<i64: 1, 32>}, {pipeline_mode = #tpu.pipeline_mode<synchronous>, transform_indices = @transform_3, window_bounds = array<i64: 32, 64>}, {pipeline_mode = #tpu.pipeline_mode<synchronous>, transform_indices = @transform_4, window_bounds = array<i64: 1, 64>}, {pipeline_mode = #tpu.pipeline_mode<synchronous>, transform_indices = @transform_5, window_bounds = array<i64: 32, 32>}, {pipeline_mode = #tpu.pipeline_mode<synchronous>, transform_indices = @transform_6, window_bounds = array<i64: 1, 32>}, {pipeline_mode = #tpu.pipeline_mode<synchronous>, transform_indices = @transform_7, window_bounds = array<i64: 1, 32>}, {pipeline_mode = #tpu.pipeline_mode<synchronous>, transform_indices = @transform_8, window_bounds = array<i64: 1, 32>}, {pipeline_mode = #tpu.pipeline_mode<synchronous>, transform_indices = @transform_9, window_bounds = array<i64: 32, 64>}, {pipeline_mode = #tpu.pipeline_mode<synchronous>, transform_indices = @transform_10, window_bounds = array<i64: 1, 64>}, {pipeline_mode = #tpu.pipeline_mode<synchronous>, transform_indices = @transform_11, window_bounds = array<i64: 64, 32>}, {pipeline_mode = #tpu.pipeline_mode<synchronous>, transform_indices = @transform_12, window_bounds = array<i64: 1, 32>}, {pipeline_mode = #tpu.pipeline_mode<synchronous>, transform_indices = @transform_13, window_bounds = array<i64: 1, 32>}, {pipeline_mode = #tpu.pipeline_mode<synchronous>, transform_indices = @transform_14, window_bounds = array<i64: 1, 32>}, {transform_indices = @transform_15, window_bounds = array<i64: 1, 8, 32>}, {transform_indices = @transform_16, window_bounds = array<i64: 1, 4, 8, 8>}]} {
    %c8_i32 = arith.constant 8 : i32
    %0 = arith.muli %arg1, %c8_i32 : i32
    %1 = tpu.assume_multiple %0, 8 : i32
    %c0_i32 = arith.constant 0 : i32
    %2 = arith.cmpi eq, %arg1, %c0_i32 : i32
    %3 = arith.extui %2 : i1 to i32
    %c0_i32_0 = arith.constant 0 : i32
    %4 = arith.cmpi ne, %3, %c0_i32_0 : i32
    scf.if %4 {
      %c0_58 = arith.constant 0 : index
      %c0_59 = arith.constant 0 : index
      %c0_60 = arith.constant 0 : index
      %111 = vector.load %arg2[%c0_58, %c0_59, %c0_60] : memref<1x8x32xf32, #tpu.memory_space<vmem>>, vector<1x8x32xf32>
      %112 = vector.shape_cast %111 : vector<1x8x32xf32> to vector<8x32xf32>
      %113 = arith.truncf %112 : vector<8x32xf32> to vector<8x32xbf16>
      %c0_61 = arith.constant 0 : index
      %c0_62 = arith.constant 0 : index
      %114 = vector.load %arg5[%c0_61, %c0_62] : memref<32x64xbf16, #tpu.memory_space<vmem>>, vector<32x64xbf16>
      %cst_63 = arith.constant dense<0.000000e+00> : vector<8x64xf32>
      %115 = tpu.matmul %113, %114, %cst_63 {dimension_numbers = #tpu.dot_dimension_numbers<[1], [0], [0], [1], [0, 0, 1, 1], [], []>} : vector<8x32xbf16>, vector<32x64xbf16>, vector<8x64xf32> -> vector<8x64xf32>
      %c0_64 = arith.constant 0 : index
      %c0_65 = arith.constant 0 : index
      %116 = vector.load %arg6[%c0_64, %c0_65] : memref<1x64xf32, #tpu.memory_space<vmem>>, vector<1x64xf32>
      %117 = vector.broadcast %116 : vector<1x64xf32> to vector<8x64xf32>
      %118 = arith.addf %115, %117 : vector<8x64xf32>
      %119 = arith.truncf %118 : vector<8x64xf32> to vector<8x64xbf16>
      %120 = vector.extract_strided_slice %119 {offsets = [0, 0], sizes = [8, 8], strides = [1, 1]} : vector<8x64xbf16> to vector<8x8xbf16>
      %c0_66 = arith.constant 0 : index
      %c0_67 = arith.constant 0 : index
      %c0_68 = arith.constant 0 : index
      %121 = vector.load %arg19[%c0_66, %c0_67, %c0_68] : memref<4x8x8xbf16, #tpu.memory_space<vmem>>, vector<1x8x8xbf16>
      %122 = vector.shape_cast %121 : vector<1x8x8xbf16> to vector<8x8xbf16>
      %123 = vector.shape_cast %120 : vector<8x8xbf16> to vector<1x8x8xbf16>
      tpu.vector_store %arg19[%c0_66, %c0_67, %c0_68], %123 {strides = array<i32>} : memref<4x8x8xbf16, #tpu.memory_space<vmem>>, vector<1x8x8xbf16>,
      %124 = vector.extract_strided_slice %119 {offsets = [0, 32], sizes = [8, 8], strides = [1, 1]} : vector<8x64xbf16> to vector<8x8xbf16>
      %c0_69 = arith.constant 0 : index
      %c0_70 = arith.constant 0 : index
      %c0_71 = arith.constant 0 : index
      %125 = vector.load %arg20[%c0_69, %c0_70, %c0_71] : memref<4x8x8xbf16, #tpu.memory_space<vmem>>, vector<1x8x8xbf16>
      %126 = vector.shape_cast %125 : vector<1x8x8xbf16> to vector<8x8xbf16>
      %127 = vector.shape_cast %124 : vector<8x8xbf16> to vector<1x8x8xbf16>
      tpu.vector_store %arg20[%c0_69, %c0_70, %c0_71], %127 {strides = array<i32>} : memref<4x8x8xbf16, #tpu.memory_space<vmem>>, vector<1x8x8xbf16>,
      %128 = vector.extract_strided_slice %119 {offsets = [0, 8], sizes = [8, 8], strides = [1, 1]} : vector<8x64xbf16> to vector<8x8xbf16>
      %c1 = arith.constant 1 : index
      %c0_72 = arith.constant 0 : index
      %c0_73 = arith.constant 0 : index
      %129 = vector.load %arg19[%c1, %c0_72, %c0_73] : memref<4x8x8xbf16, #tpu.memory_space<vmem>>, vector<1x8x8xbf16>
      %130 = vector.shape_cast %129 : vector<1x8x8xbf16> to vector<8x8xbf16>
      %131 = vector.shape_cast %128 : vector<8x8xbf16> to vector<1x8x8xbf16>
      tpu.vector_store %arg19[%c1, %c0_72, %c0_73], %131 {strides = array<i32>} : memref<4x8x8xbf16, #tpu.memory_space<vmem>>, vector<1x8x8xbf16>,
      %132 = vector.extract_strided_slice %119 {offsets = [0, 40], sizes = [8, 8], strides = [1, 1]} : vector<8x64xbf16> to vector<8x8xbf16>
      %c1_74 = arith.constant 1 : index
      %c0_75 = arith.constant 0 : index
      %c0_76 = arith.constant 0 : index
      %133 = vector.load %arg20[%c1_74, %c0_75, %c0_76] : memref<4x8x8xbf16, #tpu.memory_space<vmem>>, vector<1x8x8xbf16>
      %134 = vector.shape_cast %133 : vector<1x8x8xbf16> to vector<8x8xbf16>
      %135 = vector.shape_cast %132 : vector<8x8xbf16> to vector<1x8x8xbf16>
      tpu.vector_store %arg20[%c1_74, %c0_75, %c0_76], %135 {strides = array<i32>} : memref<4x8x8xbf16, #tpu.memory_space<vmem>>, vector<1x8x8xbf16>,
      %136 = vector.extract_strided_slice %119 {offsets = [0, 16], sizes = [8, 8], strides = [1, 1]} : vector<8x64xbf16> to vector<8x8xbf16>
      %c2 = arith.constant 2 : index
      %c0_77 = arith.constant 0 : index
      %c0_78 = arith.constant 0 : index
      %137 = vector.load %arg19[%c2, %c0_77, %c0_78] : memref<4x8x8xbf16, #tpu.memory_space<vmem>>, vector<1x8x8xbf16>
      %138 = vector.shape_cast %137 : vector<1x8x8xbf16> to vector<8x8xbf16>
      %139 = vector.shape_cast %136 : vector<8x8xbf16> to vector<1x8x8xbf16>
      tpu.vector_store %arg19[%c2, %c0_77, %c0_78], %139 {strides = array<i32>} : memref<4x8x8xbf16, #tpu.memory_space<vmem>>, vector<1x8x8xbf16>,
      %140 = vector.extract_strided_slice %119 {offsets = [0, 48], sizes = [8, 8], strides = [1, 1]} : vector<8x64xbf16> to vector<8x8xbf16>
      %c2_79 = arith.constant 2 : index
      %c0_80 = arith.constant 0 : index
      %c0_81 = arith.constant 0 : index
      %141 = vector.load %arg20[%c2_79, %c0_80, %c0_81] : memref<4x8x8xbf16, #tpu.memory_space<vmem>>, vector<1x8x8xbf16>
      %142 = vector.shape_cast %141 : vector<1x8x8xbf16> to vector<8x8xbf16>
      %143 = vector.shape_cast %140 : vector<8x8xbf16> to vector<1x8x8xbf16>
      tpu.vector_store %arg20[%c2_79, %c0_80, %c0_81], %143 {strides = array<i32>} : memref<4x8x8xbf16, #tpu.memory_space<vmem>>, vector<1x8x8xbf16>,
      %144 = vector.extract_strided_slice %119 {offsets = [0, 24], sizes = [8, 8], strides = [1, 1]} : vector<8x64xbf16> to vector<8x8xbf16>
      %c3 = arith.constant 3 : index
      %c0_82 = arith.constant 0 : index
      %c0_83 = arith.constant 0 : index
      %145 = vector.load %arg19[%c3, %c0_82, %c0_83] : memref<4x8x8xbf16, #tpu.memory_space<vmem>>, vector<1x8x8xbf16>
      %146 = vector.shape_cast %145 : vector<1x8x8xbf16> to vector<8x8xbf16>
      %147 = vector.shape_cast %144 : vector<8x8xbf16> to vector<1x8x8xbf16>
      tpu.vector_store %arg19[%c3, %c0_82, %c0_83], %147 {strides = array<i32>} : memref<4x8x8xbf16, #tpu.memory_space<vmem>>, vector<1x8x8xbf16>,
      %148 = vector.extract_strided_slice %119 {offsets = [0, 56], sizes = [8, 8], strides = [1, 1]} : vector<8x64xbf16> to vector<8x8xbf16>
      %c3_84 = arith.constant 3 : index
      %c0_85 = arith.constant 0 : index
      %c0_86 = arith.constant 0 : index
      %149 = vector.load %arg20[%c3_84, %c0_85, %c0_86] : memref<4x8x8xbf16, #tpu.memory_space<vmem>>, vector<1x8x8xbf16>
      %150 = vector.shape_cast %149 : vector<1x8x8xbf16> to vector<8x8xbf16>
      %151 = vector.shape_cast %148 : vector<8x8xbf16> to vector<1x8x8xbf16>
      tpu.vector_store %arg20[%c3_84, %c0_85, %c0_86], %151 {strides = array<i32>} : memref<4x8x8xbf16, #tpu.memory_space<vmem>>, vector<1x8x8xbf16>,
    } else {
    }
    %c0 = arith.constant 0 : index
    %5 = arith.index_cast %1 : i32 to index
    %c0_1 = arith.constant 0 : index
    %6 = vector.load %arg2[%c0, %5, %c0_1] : memref<1x8x32xf32, #tpu.memory_space<vmem>>, vector<1x8x32xf32>
    %7 = vector.shape_cast %6 : vector<1x8x32xf32> to vector<8x32xf32>
    %8 = arith.truncf %7 : vector<8x32xf32> to vector<8x32xbf16>
    %c0_2 = arith.constant 0 : index
    %c0_3 = arith.constant 0 : index
    %9 = vector.load %arg3[%c0_2, %c0_3] : memref<32x32xbf16, #tpu.memory_space<vmem>>, vector<32x32xbf16>
    %cst = arith.constant dense<0.000000e+00> : vector<8x32xf32>
    %10 = tpu.matmul %8, %9, %cst {dimension_numbers = #tpu.dot_dimension_numbers<[1], [0], [0], [1], [0, 0, 1, 1], [], []>} : vector<8x32xbf16>, vector<32x32xbf16>, vector<8x32xf32> -> vector<8x32xf32>
    %c0_4 = arith.constant 0 : index
    %c0_5 = arith.constant 0 : index
    %11 = vector.load %arg4[%c0_4, %c0_5] : memref<1x32xf32, #tpu.memory_space<vmem>>, vector<1x32xf32>
    %12 = vector.broadcast %11 : vector<1x32xf32> to vector<8x32xf32>
    %13 = arith.addf %10, %12 : vector<8x32xf32>
    %cst_6 = arith.constant 0.353553385 : f32
    %14 = vector.broadcast %cst_6 : f32 to vector<8x32xf32>
    %15 = arith.mulf %13, %14 : vector<8x32xf32>
    %16 = vector.shape_cast %15 : vector<8x32xf32> to vector<8x4x8xf32>
    %17 = arith.truncf %16 : vector<8x4x8xf32> to vector<8x4x8xbf16>
    %c0_7 = arith.constant 0 : index
    %c0_8 = arith.constant 0 : index
    %c0_9 = arith.constant 0 : index
    %18 = vector.load %arg19[%c0_7, %c0_8, %c0_9] : memref<4x8x8xbf16, #tpu.memory_space<vmem>>, vector<4x8x8xbf16>
    "tpu.trace_start"() <{level = 10 : i32, message = "qhd,hkd->hqk"}> : () -> ()
    %cst_10 = arith.constant dense<0.000000e+00> : vector<4x8x8xf32>
    %19 = tpu.matmul %17, %18, %cst_10 {dimension_numbers = #tpu.dot_dimension_numbers<[2], [2], [0], [1], [0, 1, 0, 0, 1, 1], [1], [0]>} : vector<8x4x8xbf16>, vector<4x8x8xbf16>, vector<4x8x8xf32> -> vector<4x8x8xf32>
    "tpu.trace_stop"() : () -> ()
    %cst_11 = arith.constant dense<0xFF800000> : vector<4x8xf32>
    %20 = vector.multi_reduction <maximumf>, %19, %cst_11 [2] : vector<4x8x8xf32> to vector<4x8xf32>
    %21 = vector.shape_cast %20 : vector<4x8xf32> to vector<4x8x1xf32>
    %22 = vector.broadcast %21 : vector<4x8x1xf32> to vector<4x8x8xf32>
    %23 = arith.subf %19, %22 : vector<4x8x8xf32>
    %24 = math.exp %23 : vector<4x8x8xf32>
    %cst_12 = arith.constant dense<0.000000e+00> : vector<4x8xf32>
    %25 = vector.multi_reduction <add>, %24, %cst_12 [2] : vector<4x8x8xf32> to vector<4x8xf32>
    %26 = vector.shape_cast %25 : vector<4x8xf32> to vector<4x8x1xf32>
    %27 = tpu.reciprocal %26 : vector<4x8x1xf32> -> vector<4x8x1xf32>
    %28 = vector.broadcast %27 : vector<4x8x1xf32> to vector<4x8x8xf32>
    %29 = arith.mulf %24, %28 : vector<4x8x8xf32>
    %30 = arith.truncf %29 : vector<4x8x8xf32> to vector<4x8x8xbf16>
    %c0_13 = arith.constant 0 : index
    %c0_14 = arith.constant 0 : index
    %c0_15 = arith.constant 0 : index
    %c0_16 = arith.constant 0 : index
    %31 = vector.load %arg18[%c0_13, %c0_14, %c0_15, %c0_16] : memref<1x4x8x8xbf16, #tpu.memory_space<vmem>>, vector<1x4x8x8xbf16>
    %32 = vector.shape_cast %31 : vector<1x4x8x8xbf16> to vector<4x8x8xbf16>
    %33 = vector.shape_cast %30 : vector<4x8x8xbf16> to vector<1x4x8x8xbf16>
    tpu.vector_store %arg18[%c0_13, %c0_14, %c0_15, %c0_16], %33 {strides = array<i32>} : memref<1x4x8x8xbf16, #tpu.memory_space<vmem>>, vector<1x4x8x8xbf16>,
    %c0_17 = arith.constant 0 : index
    %c0_18 = arith.constant 0 : index
    %c0_19 = arith.constant 0 : index
    %34 = vector.load %arg20[%c0_17, %c0_18, %c0_19] : memref<4x8x8xbf16, #tpu.memory_space<vmem>>, vector<4x8x8xbf16>
    "tpu.trace_start"() <{level = 10 : i32, message = "hqk,hkd->qhd"}> : () -> ()
    %cst_20 = arith.constant dense<0.000000e+00> : vector<4x8x8xf32>
    %35 = tpu.matmul %34, %30, %cst_20 {dimension_numbers = #tpu.dot_dimension_numbers<[1], [2], [2], [1], [0, 0, 0, 2, 1, 1], [0], [0]>} : vector<4x8x8xbf16>, vector<4x8x8xbf16>, vector<4x8x8xf32> -> vector<4x8x8xf32>
    %36 = tpu.transpose %35, [2, 0, 1] : vector<4x8x8xf32> -> vector<8x4x8xf32>
    "tpu.trace_stop"() : () -> ()
    %37 = vector.shape_cast %36 : vector<8x4x8xf32> to vector<8x32xf32>
    %38 = arith.truncf %37 : vector<8x32xf32> to vector<8x32xbf16>
    %c0_21 = arith.constant 0 : index
    %c0_22 = arith.constant 0 : index
    %39 = vector.load %arg7[%c0_21, %c0_22] : memref<32x32xbf16, #tpu.memory_space<vmem>>, vector<32x32xbf16>
    %cst_23 = arith.constant dense<0.000000e+00> : vector<8x32xf32>
    %40 = tpu.matmul %38, %39, %cst_23 {dimension_numbers = #tpu.dot_dimension_numbers<[1], [0], [0], [1], [0, 0, 1, 1], [], []>} : vector<8x32xbf16>, vector<32x32xbf16>, vector<8x32xf32> -> vector<8x32xf32>
    %c0_24 = arith.constant 0 : index
    %c0_25 = arith.constant 0 : index
    %41 = vector.load %arg8[%c0_24, %c0_25] : memref<1x32xf32, #tpu.memory_space<vmem>>, vector<1x32xf32>
    %42 = vector.broadcast %41 : vector<1x32xf32> to vector<8x32xf32>
    %43 = arith.addf %40, %42 : vector<8x32xf32>
    %44 = arith.addf %7, %43 : vector<8x32xf32>
    %cst_26 = arith.constant dense<0.000000e+00> : vector<8xf32>
    %45 = vector.multi_reduction <add>, %44, %cst_26 [1] : vector<8x32xf32> to vector<8xf32>
    %46 = vector.shape_cast %45 : vector<8xf32> to vector<8x1xf32>
    %cst_27 = arith.constant 3.200000e+01 : f32
    %47 = vector.broadcast %cst_27 : f32 to vector<8x1xf32>
    %48 = arith.divf %46, %47 : vector<8x1xf32>
    %49 = vector.broadcast %48 : vector<8x1xf32> to vector<8x32xf32>
    %50 = arith.subf %44, %49 : vector<8x32xf32>
    %51 = arith.mulf %50, %50 : vector<8x32xf32>
    %cst_28 = arith.constant dense<0.000000e+00> : vector<8xf32>
    %52 = vector.multi_reduction <add>, %51, %cst_28 [1] : vector<8x32xf32> to vector<8xf32>
    %53 = vector.shape_cast %52 : vector<8xf32> to vector<8x1xf32>
    %cst_29 = arith.constant 3.200000e+01 : f32
    %54 = vector.broadcast %cst_29 : f32 to vector<8x1xf32>
    %55 = arith.divf %53, %54 : vector<8x1xf32>
    %56 = vector.broadcast %48 : vector<8x1xf32> to vector<8x32xf32>
    %57 = arith.subf %44, %56 : vector<8x32xf32>
    %cst_30 = arith.constant 9.99999974E-6 : f32
    %58 = vector.broadcast %cst_30 : f32 to vector<8x1xf32>
    %59 = arith.addf %55, %58 : vector<8x1xf32>
    %60 = math.rsqrt %59 : vector<8x1xf32>
    %61 = vector.broadcast %60 : vector<8x1xf32> to vector<8x32xf32>
    %62 = arith.mulf %57, %61 : vector<8x32xf32>
    %c0_31 = arith.constant 0 : index
    %c0_32 = arith.constant 0 : index
    %63 = vector.load %arg9[%c0_31, %c0_32] : memref<1x32xf32, #tpu.memory_space<vmem>>, vector<1x32xf32>
    %64 = vector.broadcast %63 : vector<1x32xf32> to vector<8x32xf32>
    %65 = arith.mulf %62, %64 : vector<8x32xf32>
    %c0_33 = arith.constant 0 : index
    %c0_34 = arith.constant 0 : index
    %66 = vector.load %arg10[%c0_33, %c0_34] : memref<1x32xf32, #tpu.memory_space<vmem>>, vector<1x32xf32>
    %67 = vector.broadcast %66 : vector<1x32xf32> to vector<8x32xf32>
    %68 = arith.addf %65, %67 : vector<8x32xf32>
    %69 = arith.truncf %68 : vector<8x32xf32> to vector<8x32xbf16>
    %c0_35 = arith.constant 0 : index
    %c0_36 = arith.constant 0 : index
    %70 = vector.load %arg11[%c0_35, %c0_36] : memref<32x64xbf16, #tpu.memory_space<vmem>>, vector<32x64xbf16>
    %cst_37 = arith.constant dense<0.000000e+00> : vector<8x64xf32>
    %71 = tpu.matmul %69, %70, %cst_37 {dimension_numbers = #tpu.dot_dimension_numbers<[1], [0], [0], [1], [0, 0, 1, 1], [], []>} : vector<8x32xbf16>, vector<32x64xbf16>, vector<8x64xf32> -> vector<8x64xf32>
    %c0_38 = arith.constant 0 : index
    %c0_39 = arith.constant 0 : index
    %72 = vector.load %arg12[%c0_38, %c0_39] : memref<1x64xf32, #tpu.memory_space<vmem>>, vector<1x64xf32>
    %73 = vector.broadcast %72 : vector<1x64xf32> to vector<8x64xf32>
    %74 = arith.addf %71, %73 : vector<8x64xf32>
    %cst_40 = arith.constant 0.000000e+00 : f32
    %75 = vector.broadcast %cst_40 : f32 to vector<8x64xf32>
    %76 = arith.maximumf %74, %75 : vector<8x64xf32>
    %77 = arith.truncf %76 : vector<8x64xf32> to vector<8x64xbf16>
    %c0_41 = arith.constant 0 : index
    %c0_42 = arith.constant 0 : index
    %78 = vector.load %arg13[%c0_41, %c0_42] : memref<64x32xbf16, #tpu.memory_space<vmem>>, vector<64x32xbf16>
    %cst_43 = arith.constant dense<0.000000e+00> : vector<8x32xf32>
    %79 = tpu.matmul %77, %78, %cst_43 {dimension_numbers = #tpu.dot_dimension_numbers<[1], [0], [0], [1], [0, 0, 1, 1], [], []>} : vector<8x64xbf16>, vector<64x32xbf16>, vector<8x32xf32> -> vector<8x32xf32>
    %c0_44 = arith.constant 0 : index
    %c0_45 = arith.constant 0 : index
    %80 = vector.load %arg14[%c0_44, %c0_45] : memref<1x32xf32, #tpu.memory_space<vmem>>, vector<1x32xf32>
    %81 = vector.broadcast %80 : vector<1x32xf32> to vector<8x32xf32>
    %82 = arith.addf %79, %81 : vector<8x32xf32>
    %83 = arith.addf %68, %82 : vector<8x32xf32>
    %cst_46 = arith.constant dense<0.000000e+00> : vector<8xf32>
    %84 = vector.multi_reduction <add>, %83, %cst_46 [1] : vector<8x32xf32> to vector<8xf32>
    %85 = vector.shape_cast %84 : vector<8xf32> to vector<8x1xf32>
    %cst_47 = arith.constant 3.200000e+01 : f32
    %86 = vector.broadcast %cst_47 : f32 to vector<8x1xf32>
    %87 = arith.divf %85, %86 : vector<8x1xf32>
    %88 = vector.broadcast %87 : vector<8x1xf32> to vector<8x32xf32>
    %89 = arith.subf %83, %88 : vector<8x32xf32>
    %90 = arith.mulf %89, %89 : vector<8x32xf32>
    %cst_48 = arith.constant dense<0.000000e+00> : vector<8xf32>
    %91 = vector.multi_reduction <add>, %90, %cst_48 [1] : vector<8x32xf32> to vector<8xf32>
    %92 = vector.shape_cast %91 : vector<8xf32> to vector<8x1xf32>
    %cst_49 = arith.constant 3.200000e+01 : f32
    %93 = vector.broadcast %cst_49 : f32 to vector<8x1xf32>
    %94 = arith.divf %92, %93 : vector<8x1xf32>
    %95 = vector.broadcast %87 : vector<8x1xf32> to vector<8x32xf32>
    %96 = arith.subf %83, %95 : vector<8x32xf32>
    %cst_50 = arith.constant 9.99999974E-6 : f32
    %97 = vector.broadcast %cst_50 : f32 to vector<8x1xf32>
    %98 = arith.addf %94, %97 : vector<8x1xf32>
    %99 = math.rsqrt %98 : vector<8x1xf32>
    %100 = vector.broadcast %99 : vector<8x1xf32> to vector<8x32xf32>
    %101 = arith.mulf %96, %100 : vector<8x32xf32>
    %c0_51 = arith.constant 0 : index
    %c0_52 = arith.constant 0 : index
    %102 = vector.load %arg15[%c0_51, %c0_52] : memref<1x32xf32, #tpu.memory_space<vmem>>, vector<1x32xf32>
    %103 = vector.broadcast %102 : vector<1x32xf32> to vector<8x32xf32>
    %104 = arith.mulf %101, %103 : vector<8x32xf32>
    %c0_53 = arith.constant 0 : index
    %c0_54 = arith.constant 0 : index
    %105 = vector.load %arg16[%c0_53, %c0_54] : memref<1x32xf32, #tpu.memory_space<vmem>>, vector<1x32xf32>
    %106 = vector.broadcast %105 : vector<1x32xf32> to vector<8x32xf32>
    %107 = arith.addf %104, %106 : vector<8x32xf32>
    %c0_55 = arith.constant 0 : index
    %c0_56 = arith.constant 0 : index
    %c0_57 = arith.constant 0 : index
    %108 = vector.load %arg17[%c0_55, %c0_56, %c0_57] : memref<1x8x32xf32, #tpu.memory_space<vmem>>, vector<1x8x32xf32>
    %109 = vector.shape_cast %108 : vector<1x8x32xf32> to vector<8x32xf32>
    %110 = vector.shape_cast %107 : vector<8x32xf32> to vector<1x8x32xf32>
    tpu.vector_store %arg17[%c0_55, %c0_56, %c0_57], %110 {strides = array<i32>} : memref<1x8x32xf32, #tpu.memory_space<vmem>>, vector<1x8x32xf32>,
    return
  }
  func.func @transform_0(%arg0: i32, %arg1: i32) -> (i32, i32, i32) {
    %c0_i32 = arith.constant 0 : i32
    %c0_i32_0 = arith.constant 0 : i32
    %c0_i32_1 = arith.constant 0 : i32
    return %arg0, %c0_i32, %c0_i32_0 : i32, i32, i32
  }
  func.func @transform_1(%arg0: i32, %arg1: i32) -> (i32, i32) {
    %c0_i32 = arith.constant 0 : i32
    %c0_i32_0 = arith.constant 0 : i32
    %c0_i32_1 = arith.constant 0 : i32
    return %c0_i32, %c0_i32_0 : i32, i32
  }
  func.func @transform_2(%arg0: i32, %arg1: i32) -> (i32, i32) {
    %c0_i32 = arith.constant 0 : i32
    %c0_i32_0 = arith.constant 0 : i32
    %c0_i32_1 = arith.constant 0 : i32
    return %c0_i32, %c0_i32_0 : i32, i32
  }
  func.func @transform_3(%arg0: i32, %arg1: i32) -> (i32, i32) {
    %c0_i32 = arith.constant 0 : i32
    %c0_i32_0 = arith.constant 0 : i32
    %c0_i32_1 = arith.constant 0 : i32
    return %c0_i32, %c0_i32_0 : i32, i32
  }
  func.func @transform_4(%arg0: i32, %arg1: i32) -> (i32, i32) {
    %c0_i32 = arith.constant 0 : i32
    %c0_i32_0 = arith.constant 0 : i32
    %c0_i32_1 = arith.constant 0 : i32
    return %c0_i32, %c0_i32_0 : i32, i32
  }
  func.func @transform_5(%arg0: i32, %arg1: i32) -> (i32, i32) {
    %c0_i32 = arith.constant 0 : i32
    %c0_i32_0 = arith.constant 0 : i32
    %c0_i32_1 = arith.constant 0 : i32
    return %c0_i32, %c0_i32_0 : i32, i32
  }
  func.func @transform_6(%arg0: i32, %arg1: i32) -> (i32, i32) {
    %c0_i32 = arith.constant 0 : i32
    %c0_i32_0 = arith.constant 0 : i32
    %c0_i32_1 = arith.constant 0 : i32
    return %c0_i32, %c0_i32_0 : i32, i32
  }
  func.func @transform_7(%arg0: i32, %arg1: i32) -> (i32, i32) {
    %c0_i32 = arith.constant 0 : i32
    %c0_i32_0 = arith.constant 0 : i32
    %c0_i32_1 = arith.constant 0 : i32
    return %c0_i32, %c0_i32_0 : i32, i32
  }
  func.func @transform_8(%arg0: i32, %arg1: i32) -> (i32, i32) {
    %c0_i32 = arith.constant 0 : i32
    %c0_i32_0 = arith.constant 0 : i32
    %c0_i32_1 = arith.constant 0 : i32
    return %c0_i32, %c0_i32_0 : i32, i32
  }
  func.func @transform_9(%arg0: i32, %arg1: i32) -> (i32, i32) {
    %c0_i32 = arith.constant 0 : i32
    %c0_i32_0 = arith.constant 0 : i32
    %c0_i32_1 = arith.constant 0 : i32
    return %c0_i32, %c0_i32_0 : i32, i32
  }
  func.func @transform_10(%arg0: i32, %arg1: i32) -> (i32, i32) {
    %c0_i32 = arith.constant 0 : i32
    %c0_i32_0 = arith.constant 0 : i32
    %c0_i32_1 = arith.constant 0 : i32
    return %c0_i32, %c0_i32_0 : i32, i32
  }
  func.func @transform_11(%arg0: i32, %arg1: i32) -> (i32, i32) {
    %c0_i32 = arith.constant 0 : i32
    %c0_i32_0 = arith.constant 0 : i32
    %c0_i32_1 = arith.constant 0 : i32
    return %c0_i32, %c0_i32_0 : i32, i32
  }
  func.func @transform_12(%arg0: i32, %arg1: i32) -> (i32, i32) {
    %c0_i32 = arith.constant 0 : i32
    %c0_i32_0 = arith.constant 0 : i32
    %c0_i32_1 = arith.constant 0 : i32
    return %c0_i32, %c0_i32_0 : i32, i32
  }
  func.func @transform_13(%arg0: i32, %arg1: i32) -> (i32, i32) {
    %c0_i32 = arith.constant 0 : i32
    %c0_i32_0 = arith.constant 0 : i32
    %c0_i32_1 = arith.constant 0 : i32
    return %c0_i32, %c0_i32_0 : i32, i32
  }
  func.func @transform_14(%arg0: i32, %arg1: i32) -> (i32, i32) {
    %c0_i32 = arith.constant 0 : i32
    %c0_i32_0 = arith.constant 0 : i32
    %c0_i32_1 = arith.constant 0 : i32
    return %c0_i32, %c0_i32_0 : i32, i32
  }
  func.func @transform_15(%arg0: i32, %arg1: i32) -> (i32, i32, i32) {
    %c0_i32 = arith.constant 0 : i32
    %c0_i32_0 = arith.constant 0 : i32
    return %arg0, %arg1, %c0_i32 : i32, i32, i32
  }
  func.func @transform_16(%arg0: i32, %arg1: i32) -> (i32, i32, i32, i32) {
    %c0_i32 = arith.constant 0 : i32
    %c0_i32_0 = arith.constant 0 : i32
    %c0_i32_1 = arith.constant 0 : i32
    return %arg0, %c0_i32, %arg1, %c0_i32_0 : i32, i32, i32, i32
  }
}

</mosaic_0001>

<bundles_post_ra>
// kernel: tpu_custom_call.1
= control target key start
LH: loop header
LB: loop body
LE: loop exit
PB: predicated region body
PF: predicated region fallthrough
CT: control target
= control target key end

     0   :  { %s3322_s0 = inlined_call_operand.vmem [shape: f32[2,8,32], index: 0, kind: input, shape index: {}]   ;;  %s3323_s1 = inlined_call_operand.vmem [shape: bf16[32,32], index: 1, kind: input, shape index: {}]   ;;  %s3324_s2 = inlined_call_operand.vmem [shape: f32[1,32], index: 2, kind: input, shape index: {}]   ;;  %s3325_s3 = inlined_call_operand.vmem [shape: bf16[32,64], index: 3, kind: input, shape index: {}]   ;;  %s3326_s4 = inlined_call_operand.vmem [shape: f32[1,64], index: 4, kind: input, shape index: {}]   ;;  %s3327_s5 = inlined_call_operand.hbm [shape: bf16[32,32], index: 5, kind: input, shape index: {}]   ;;  %s3328_s6 = inlined_call_operand.hbm [shape: f32[1,32], index: 6, kind: input, shape index: {}]   ;;  %s3329_s7 = inlined_call_operand.hbm [shape: f32[1,32], index: 7, kind: input, shape index: {}]   ;;  %s3330_s8 = inlined_call_operand.hbm [shape: f32[1,32], index: 8, kind: input, shape index: {}]   ;;  %s3331_s9 = inlined_call_operand.vmem [shape: bf16[32,64], index: 9, kind: input, shape index: {}]   ;;  %s3332_s10 = inlined_call_operand.vmem [shape: f32[1,64], index: 10, kind: input, shape index: {}]   ;;  %s3333_s11 = inlined_call_operand.vmem [shape: bf16[64,32], index: 11, kind: input, shape index: {}]   ;;  %s3334_s12 = inlined_call_operand.vmem [shape: f32[1,32], index: 12, kind: input, shape index: {}]   ;;  %s3335_s13 = inlined_call_operand.vmem [shape: f32[1,32], index: 13, kind: input, shape index: {}]   ;;  %s3336_s14 = inlined_call_operand.vmem [shape: f32[1,32], index: 14, kind: input, shape index: {}]   ;;  %s3337_s15 = inlined_call_operand.hbm [shape: f32[2,8,32], index: 15, kind: output, shape index: {0}]   ;;  %s3338_s16 = inlined_call_operand.hbm [shape: bf16[2,4,8,8], index: 16, kind: output, shape index: {1}]  }
   0x1   :  { %3354 = sst [smem:[#allocation28_spill]] %s3322_s0 }
   0x2   :  { %3355 = sst [smem:[#allocation29_spill]] %s3328_s6 }
   0x3   :  { %3356 = sst [smem:[#allocation30_spill]] %s3332_s10 }
   0x4   :  { %3357 = sst [smem:[#allocation31_spill]] %s3334_s12 }
   0x5   :  { %3358 = sst [smem:[#allocation32_spill]] %s3335_s13 }
   0x6   :  { %3359 = sst [smem:[#allocation33_spill]] %s3336_s14 }
   0x7   :  { %3360 = sst [smem:[#allocation34_spill]] %s3337_s15 }
   0x8   :  { %3361 = sst [smem:[#allocation35_spill]] %s3338_s16 }
   0x9   :  { %22 = vsyncpa [#allocation5], 0 }
   0xa   :  { %23 = vsyncpa [#allocation8], 0 }
   0xb   :  { %24 = vsyncpa [#allocation11], 0 }
   0xc   :  { %25 = vsyncpa [#allocation6], 0 }
   0xd   :  { %27 = vsyncpa [#allocation6 + $0x1], 0 }
   0xe   :  { %28 = vsyncpa [#allocation14], 0 }
   0xf   :  { %30 = vsyncpa [#allocation14 + $0x1], 0  ;;  %s2858_s21 = smov 0   ;;  %s2860_s22 = smov 0  }
  0x10   :  { %s2862_s23 = smov 0   ;;  %s2864_s24 = smov 0  }
  0x11   :  { %s2866_s25 = smov 0   ;;  %s2868_s26 = smov 0  }
  0x12 LB: > { %3362 = sst [smem:[#allocation20_spill]] %s2726_s21  ;;  %s2169_s27 = sadd.s32 4294967295, %s2746_s26   ;;  %s2746_s26 = sphi %s2868_s26, %s36_s26   ;;  %s2742_s25 = sphi %s2866_s25, %s3395_s25   ;;  %s2738_s24 = sphi %s2864_s24, %s3394_s24   ;;  %s2734_s23 = sphi %s2862_s23, %s3393_s23   ;;  %s2730_s22 = sphi %s2860_s22, %s3397_s22   ;;  %s2726_s21 = sphi %s2858_s21, %s3396_s21  }
  0x13   : > { %3363 = sst [smem:[#allocation21_spill]] %s2734_s23  ;;  %s2170_s28 = sadd.s32 4294967294, %s2746_s26  }
  0x14   : > { %3364 = sst [smem:[#allocation22_spill]] %s2742_s25  ;;  %s48_s29 = sadd.s32 1, %s2742_s25 }
  0x15   : > { %3365 = sst [smem:[#allocation23_spill]] %s2746_s26  ;;  %s377_s30 = sadd.s32 1, %s2734_s23 }
  0x16   : > { %p50_p0 = scmp.ge.s32.totalorder %s48_s29, 2  ;;  %p387_p1 = scmp.ne.s32.totalorder %s2734_s23, %s2730_s22 }
  0x17   : > { %p388_p2 = scmp.eq.s32.totalorder %s2169_s27, 1  ;;  %p393_p3 = scmp.ne.s32.totalorder %s2730_s22, %s2726_s21 }
  0x18   : > { %s3399_s29 = smov (%p50_p0, %s48_s29), 0  ;;  %p394_p5 = scmp.eq.s32.totalorder %s2170_s28, 1 }
  0x19   : > { %3366 = sst [smem:[#allocation24_spill]] %s3399_s29  ;;  %p2898_p4 = por %p388_p2, %p387_p1 }
  0x1a   : > { %s372_s17 = ssub.s32 %s2742_s25, %s3399_s29  ;;  %p2171_p6 = scmp.ge.s32.totalorder %s2746_s26, 1 }
  0x1b   : > { %s3367_s0 = scalar_select %p2898_p4, 1, 0 }
  0x1c   : > { %p375_p7 = scmp.eq.s32.totalorder %s372_s17, 0  ;;  %p2905_p8 = por %p394_p5, %p393_p3 }
  0x1d   : > { %3368 = sst [smem:[#allocation25_spill]] %s3367_s0  ;;  %p429_p9 = scmp.lt.s32.totalorder %s2746_s26, 3 }
  0x1e   : > { %s3369_s18 = scalar_select %p2905_p8, 1, 0 }
  0x1f   : > { %s2911_s19 = scalar_select %p375_p7, %s2734_s23, %s377_s30  }
  0x20   : > { %3370 = sst [smem:[#allocation26_spill]] %s3369_s18  ;;  %p2913_p10 = pnand %p2171_p6, %p429_p9 }
  0x21   : > { %3371 = sst [smem:[#allocation27_spill]] %s2911_s19  ;;  %p2917_p11 = scmp.eq.s32.totalorder %s2169_s27, 0 }
  0x22   : > { %s3372_s20 = scalar_select %p2913_p10, 1, 0 }
  0x23   : > { %s3373_s21 = scalar_select %p2917_p11, 1, 0 }
  0x24   : > { %p2380_p12 = pneg %p2913_p10  ;;  %s2748_s28 = smov [#allocation7]  }
  0x25   : > { %s467_s17 = sshll.u32 %s2748_s28, 4  ;;  %s2749_s30 = smov [#allocation4]   ;;  %s468_s17 = int_to_ptr.vmem [resolvable:$true] %s467_s17 }
  0x26   : > { %p2925_p13 = pnand %p2917_p11, %p2380_p12  ;;  %s453_s25 = sshll.u32 %s2749_s30, 4  ;;  %s2929_s25 = int_to_ptr.vmem [resolvable:$true] %s453_s25 }
  0x27   : > { %s3375_s6 = sld [smem:[#allocation29_spill]] }
  0x28   : > { %p2939_p1 = pneg %p2925_p13 }
  0x2d   : > { %s2512_s23 = scalar_lea.hbm %s3375_s6, 16 }
  0x2e   : > { %p2513_p0 = scmp.ne.s32.totalorder %s3375_s6, %s2512_s23  ;;  %p2519_p5 = scmp.lt.u32.totalorder %s2512_s23, %s3375_s6 }
  0x30   : > { %p2515_p2 = pnand %p2939_p1, %p2513_p0 }
  0x32   : > { %p2516_p3 = pneg %p2515_p2 }
  0x34   : > { %p2521_p6 = pnand %p2519_p5, %p2516_p3 }
  0x36   : > { %2524 = shalt.err (!%p2521_p6)
}
  0x37   : > { %s2525_s19 = scalar_lea.vmem %s468_s17, 16  ;;  %s2532_s26 = scalar_lea.vmem %s468_s17, 32 }
  0x38   : > { %p2526_p7 = scmp.ne.s32.totalorder %s468_s17, %s2525_s19  ;;  %p2533_p8 = scmp.lt.s32.totalorder %s468_s17, %s468_s17 }
  0x39   : > { %p2534_p4 = scmp.lt.s32.totalorder %s2532_s26, %s2525_s19 }
  0x3a   : > { %p2528_p9 = pnand %p2526_p7, %p2939_p1 }
  0x3b   : > { %p2535_p11 = por %p2534_p4, %p2533_p8 }
  0x3c   : > { %p2529_p12 = pneg %p2528_p9 }
  0x3e   : > { %p2536_p10 = pnand %p2535_p11, %p2529_p12 }
  0x40   : > { %2539 = shalt.err (!%p2536_p10)
}
  0x41   : > { %2386 = dma.hbm_to_vmem [thread:$0]  (!%p2925_p13), %s3375_s6, 16, %s468_s17, [#allocation8]  }
  0x42   : > { %s2540_s30 = scalar_lea.hbm %s3327_s5, 256 }
  0x43   : > { %p2541_p0 = scmp.ne.s32.totalorder %s3327_s5, %s2540_s30  ;;  %p2547_p8 = scmp.lt.u32.totalorder %s2540_s30, %s3327_s5 }
  0x45   : > { %p2543_p2 = pnand %p2541_p0, %p2939_p1 }
  0x47   : > { %p2544_p4 = pneg %p2543_p2 }
  0x49   : > { %p2549_p10 = pnand %p2547_p8, %p2544_p4 }
  0x4b   : > { %2552 = shalt.err (!%p2549_p10)
}
  0x4c   : > { %s2553_s17 = scalar_lea.vmem %s2929_s25, 256  ;;  %p2561_p6 = scmp.lt.s32.totalorder %s2929_s25, %s2929_s25 }
  0x4d   : > { %p2554_p11 = scmp.ne.s32.totalorder %s2929_s25, %s2553_s17  ;;  %p2562_p7 = scmp.lt.s32.totalorder %s2553_s17, %s2553_s17 }
  0x4f   : > { %p2556_p3 = pnand %p2554_p11, %p2939_p1  ;;  %p2563_p9 = por %p2562_p7, %p2561_p6 }
  0x51   : > { %p2557_p5 = pneg %p2556_p3 }
  0x53   : > { %p2564_p12 = pnand %p2563_p9, %p2557_p5 }
  0x55   : > { %2567 = shalt.err (!%p2564_p12)
}
  0x56   : > { %s2750_s13 = smov 64   ;;  %s2751_s14 = smov 4  }
  0x57   : > { %2383 = dma.hbm_to_vmem [thread:$0]  (!%p2925_p13), %s3327_s5, 256, %s2929_s25, [#allocation5], %s2750_s13, %s2750_s13, %s2751_s14  }
  0x58   : > { %s2752_s15 = smov [#allocation9]   ;;  %s2753_s30 = smov [#allocation10]  }
  0x59   : > { %s478_s23 = sshll.u32 %s2752_s15, 4  ;;  %s489_s19 = sshll.u32 %s2753_s30, 4  ;;  %s479_s23 = int_to_ptr.vmem [resolvable:$true] %s478_s23  ;;  %s490_s19 = int_to_ptr.vmem [resolvable:$true] %s489_s19 }
  0x5a   : > { %s2568_s6 = scalar_lea.hbm %s3329_s7, 16 }
  0x5b   : > { %p2569_p0 = scmp.ne.s32.totalorder %s3329_s7, %s2568_s6  ;;  %p2575_p8 = scmp.lt.u32.totalorder %s2568_s6, %s3329_s7 }
  0x5d   : > { %p2571_p2 = pnand %p2569_p0, %p2939_p1 }
  0x5f   : > { %p2572_p4 = pneg %p2571_p2 }
  0x61   : > { %p2577_p10 = pnand %p2575_p8, %p2572_p4 }
  0x63   : > { %2580 = shalt.err (!%p2577_p10)
}
  0x64   : > { %s2581_s25 = scalar_lea.vmem %s479_s23, 16  ;;  %s2588_s13 = scalar_lea.vmem %s479_s23, 32 }
  0x65   : > { %p2582_p11 = scmp.ne.s32.totalorder %s479_s23, %s2581_s25  ;;  %p2589_p6 = scmp.lt.s32.totalorder %s479_s23, %s479_s23 }
  0x66   : > { %p2590_p7 = scmp.lt.s32.totalorder %s2588_s13, %s2581_s25 }
  0x67   : > { %p2584_p3 = pnand %p2582_p11, %p2939_p1 }
  0x68   : > { %p2591_p9 = por %p2590_p7, %p2589_p6 }
  0x69   : > { %p2585_p5 = pneg %p2584_p3 }
  0x6b   : > { %p2592_p12 = pnand %p2591_p9, %p2585_p5 }
  0x6d   : > { %2595 = shalt.err (!%p2592_p12)
}
  0x6e   : > { %2389 = dma.hbm_to_vmem [thread:$0]  (!%p2925_p13), %s3329_s7, 16, %s479_s23, [#allocation8]  }
  0x6f   : > { %s2596_s12 = scalar_lea.hbm %s3330_s8, 16 }
  0x70   : > { %p2597_p0 = scmp.ne.s32.totalorder %s3330_s8, %s2596_s12  ;;  %p2603_p8 = scmp.lt.u32.totalorder %s2596_s12, %s3330_s8 }
  0x72   : > { %p2599_p2 = pnand %p2597_p0, %p2939_p1 }
  0x74   : > { %p2600_p4 = pneg %p2599_p2 }
  0x76   : > { %p2605_p10 = pnand %p2603_p8, %p2600_p4 }
  0x78   : > { %2608 = shalt.err (!%p2605_p10)
}
  0x79   : > { %s2609_s30 = scalar_lea.vmem %s490_s19, 16  ;;  %s2616_s23 = scalar_lea.vmem %s490_s19, 32 }
  0x7a   : > { %p2610_p11 = scmp.ne.s32.totalorder %s490_s19, %s2609_s30  ;;  %p2617_p6 = scmp.lt.s32.totalorder %s490_s19, %s490_s19 }
  0x7b   : > { %p2618_p7 = scmp.lt.s32.totalorder %s2616_s23, %s2609_s30 }
  0x7c   : > { %p2612_p3 = pnand %p2610_p11, %p2939_p1 }
  0x7d   : > { %p2619_p9 = por %p2618_p7, %p2617_p6 }
  0x7e   : > { %p2613_p5 = pneg %p2612_p3 }
  0x80   : > { %p2620_p12 = pnand %p2619_p9, %p2613_p5 }
  0x82   : > { %2623 = shalt.err (!%p2620_p12)
}
  0x83   : > { %2392 = dma.hbm_to_vmem [thread:$0]  (!%p2925_p13), %s3330_s8, 16, %s490_s19, [#allocation11]  }
  0x84   : > { %p3377_p0 = scmp.ne.s32.totalorder %s3372_s20, 0 }
  0x85   : > { %p3378_p2 = scmp.ne.s32.totalorder (!%p3377_p0), %s3373_s21, 0 }
  0x86   : > { %527 = sbr.rel (%p3377_p0) target bundleno = 2840 (0xb18), region = 80 }
  0x8d   : > { %2705 = dma.done.wait (%p3378_p2), [#allocation5], 256  }
  0x8e   : > { %2707 = vsyncadd (%p3378_p2), [#allocation5], 4294967040 }
  0x8f   : > { %2709 = dma.done.wait (%p3378_p2), [#allocation8], 32  }
  0x90   : > { %2711 = vsyncadd (%p3378_p2), [#allocation8], 4294967264 }
  0x91   : > { %2713 = dma.done.wait (%p3378_p2), [#allocation11], 16  }
  0x92   : > { %2715 = vsyncadd (%p3378_p2), [#allocation11], 4294967280  ;;  %p593_p13 = scmp.lt.s32.totalorder %s2738_s24, 1  ;;  %v2754_v0 = vmov 0.0   ;;  %vm2755_vm0 = vmmov 0   ;;  %s3379_s19 = sld [smem:[#allocation28_spill]]  ;;  %v798_v25 = vlaneseq }
  0x93   : > { %2268 = vmatprep.subr.bf16.mxu1 %v2754_v0  ;;  %2272 = vmatprep.mubr.msk.bf16.mxu1 %vm2755_vm0, %v2754_v0  ;;  %v2480_v1 = vld [vmem:[%s3325_s3] sm:$0xff]   ;;  %v2481_v2 = vld [vmem:[%s3325_s3 + $0x8] sm:$0xff]   ;;  %vm628_vm1 = vcmask 261120   ;;  %vm673_vm2 = vcmask 60416   ;;  %vm935_vm3 = vcmask 64512   ;;  %s2756_s26 = smov 104  }
  0x94   : > { %s594_s29 = scalar_select %p593_p13, %s2738_s24, 1  ;;  %2284 = vmatprep.subr.bf16.mxu0 %v2754_v0  ;;  %2286 = vmatprep.mubr.msk.bf16.mxu0 %vm2755_vm0, %v2754_v0  ;;  %v2482_v4 = vld [vmem:[%s3323_s1] sm:$0xff]   ;;  %v2483_v6 = vld [vmem:[%s3323_s1 + $0x8] sm:$0xff]   ;;  %v2759_v23 = vmov 1983009808   ;;  %v799_v29 = vshrl.u32 %v798_v25, 7 }
  0x95   : > { %2269 = vmatpush3.bf16.msra.mxu1 %v2480_v1  ;;  %v2185_v7 = vld [vmem:[%s3326_s4] ss:$0 sm:$0xff]  ;;  %s2757_s17 = smov 120   ;;  %v796_v24 = vunpack.c.l.s4 %v2759_v23  ;;  %v2760_v26 = vmov 1934713408   ;;  %s2763_s28 = smov 80  }
  0x96   : > { %s2184_s20 = sshll.u32 %s594_s29, 3  ;;  %2270 = vmatprep.subr.bf16.mxu1 %v2754_v0  ;;  %v2190_v14 = vld [vmem:[%s3324_s2] ss:$0 sm:$0xff]  ;;  %s2758_s29 = smov 112   ;;  %v828_v27 = vunpack.c.l.s4 %v2760_v26  ;;  %vm1702_vm4 = vcmask 130048   ;;  %vm1704_vm5 = vcmask 195584  }
  0x97   : > { %v797_v28 = vunpack.c.0.s8 %v796_v24  ;;  %s2764_s21 = smov 72   ;;  %s2766_s0 = smov 16   ;;  %vm1912_vm6 = vcmask 523264  }
  0x98   : > { %s596_s25 = scalar_lea.vmem %s3379_s19, %s2184_s20  ;;  %v829_v32 = vunpack.c.0.s8 %v828_v27  ;;  %s2762_s20 = smov 96  }
  0x99   : > { %v3045_v3 = vld [vmem:[%s596_s25] sm:$0xff]  ;;  %2271 = vmatpush3.bf16.msra.mxu1 %v2481_v2  ;;  %v3080_v33 = vsub.s32 %v797_v28, %v799_v29  ;;  %s2765_s19 = smov 88   ;;  %s3140_s25 = sand.u32 1, %s2730_s22  }
  0x9a   : > { %v604_v5 = vpack.c.bf16 %v3045_v3, %v3045_v3  ;;  %2276 = vmatprep.subr.bf16.mxu1 %v2754_v0  ;;  %v3083_v40 = vsub.s32 %v829_v32, %v799_v29  ;;  %s2183_s13 = sshll.u32 %s3140_s25, 4  ;;  %s2767_s6 = smov 8  }
  0x9b   : > { %s3144_s16 = scalar_lea.vmem [#allocation13], %s2183_s13  ;;  %s2768_s10 = smov 24  }
  0x9c   : > { %2273 = vmatmul.mubr.msk.bf16.vlgmr.msra.gmra.mrb[0].mxu1 %vm628_vm1, %v604_v5  ;;  %s3380_s13 = sld [smem:[#allocation30_spill]]  ;;  %s3382_s12 = sld [smem:[#allocation25_spill]] }
  0x9d   : > { %2277 = vmatpush3.bf16.msra.mxu1 %v2482_v4  ;;  %2280 = vmatprep.mubr.msk.bf16.mxu1 %vm2755_vm0, %v2754_v0  ;;  %s2021_s14 = sshll.u32 %s3144_s16, 4  ;;  %s2234_s18 = sshll.u32 %s2738_s24, 8  ;;  %s3231_s14 = int_to_ptr.vmem [resolvable:$true] %s2021_s14 }
  0x9e   : > { %2278 = vmatprep.subr.bf16.mxu1 %v2754_v0  ;;  %s3383_s30 = sld [smem:[#allocation35_spill]] }
  0xa1   : > { %2279 = vmatpush3.bf16.msra.mxu1 %v2483_v6 }
  0xa2   : > { %2290 = vmatprep.subr.bf16.mxu1 %v2754_v0  ;;  %p3384_p4 = scmp.ne.s32.totalorder %s3382_s12, 0 }
  0xa4   : > { %2281 = vmatmul.mubr.msk.bf16.vlgmr.msra.gmra.mrb[4].mxu1 %vm628_vm1, %v604_v5  ;;  %s3236_s23 = scalar_lea.hbm %s3383_s30, %s2234_s18 }
  0xa5   : > { %2292 = vmatprep.mubr.msk.bf16.mxu1 %vm2755_vm0, %v2754_v0 }
 0x16f   : > { %v666_v8 = vpop.f32.mrb[0].mxu1 }
 0x170   : > { %v667_v9 = vadd.f32 %v2185_v7, %v666_v8  ;;  %v2274_v10 = vpop.f32.mrb[1].mxu1 }
 0x171   : > { %v669_v11 = vpop.f32.mrb[2].mxu1 }
 0x172   : > { %v3068_v12 = vpack.c.bf16 %v667_v9, %v667_v9  ;;  %v2275_v13 = vpop.f32.mrb[3].mxu1 }
 0x174   : > { %674 = vst.msk [vmem:[#allocation2] sm:$0xf] %vm673_vm2, %v3068_v12 }
 0x177   : > { %v776_v15 = vpop.f32.mrb[4].mxu1 }
 0x178   : > { %v777_v16 = vadd.f32 %v2190_v14, %v776_v15  ;;  %v2282_v17 = vpop.f32.mrb[5].mxu1 }
 0x179   : > { %v779_v18 = vpop.f32.mrb[6].mxu1 }
 0x17a   : > { %v782_v19 = vmul.f32 0.35355338, %v777_v16  ;;  %v2283_v20 = vpop.f32.mrb[7].mxu1 }
 0x17b   : > { %v869_v21 = vld [vmem:[#allocation2] sm:$0xf] }
 0x17c   : > { %790 = vrot.lane.b32.xlu1 %v782_v19, %s2756_s26  ;;  %784 = vrot.lane.b32.xlu0 %v782_v19, %s2757_s17  ;;  %v940_v22 = vsel %vm935_vm3, %v869_v21, 0 }
 0x17d   : > { %2285 = vmatpush3.bf16.xpose.msra.mxu0 %v940_v22 }
 0x17e   : > { %2296 = vmatprep.subr.bf16.mxu0 %v2754_v0 }
 0x180   : > { %682 = vrot.lane.b32.xlu1 %v3068_v12, %s2757_s17  ;;  %787 = vrot.lane.b32.xlu0 %v782_v19, %s2758_s29  ;;  %s2624_s17 = scalar_lea.vmem %s3231_s14, 256 }
 0x181   : > { %p2625_p1 = scmp.ne.s32.totalorder %s3231_s14, %s2624_s17 }
 0x183   : > { %p2626_p8 = pnand %p2625_p1, %p3384_p4 }
 0x184   : > { %702 = vrot.lane.b32.xlu1 %v3068_v12, %s2756_s26  ;;  %692 = vrot.lane.b32.xlu0 %v3068_v12, %s2758_s29  ;;  %s1993_s26 = scalar_lea.sflag [#allocation14], %s3140_s25  ;;  %s2769_s29 = smov [#allocation13]  }
 0x185   : > { %p2627_p10 = pneg %p2626_p8 }
 0x1ee   : > { %v791_v30 = vpop.permute.xlu1 %790  ;;  %v785_v31 = vpop.permute.xlu0 %784 }
 0x1ef   : > { %v809_v34 = vcombine.low %v785_v31, %v791_v30  ;;  %v810_v35 = vcombine.high %v785_v31, %v791_v30 }
 0x1f1   : > { %v817_v41 = vrot.slane %v809_v34, %v3080_v33  ;;  %v824_v42 = vrot.slane %v810_v35, %v3080_v33 }
 0x1f2   : > { %v683_v36 = vpop.permute.xlu1 %682  ;;  %v788_v37 = vpop.permute.xlu0 %787 }
 0x1f3   : > { %686 = vst.msk [vmem:[#allocation2 + $0x4] sm:$0xf] %vm673_vm2, %v683_v36  ;;  %v793_v38 = vcombine.low %v782_v19, %v788_v37  ;;  %v794_v39 = vcombine.high %v782_v19, %v788_v37  ;;  %v2761_v19 = vmov 0  }
 0x1f5   : > { %v801_v43 = vrot.slane %v793_v38, %v3080_v33  ;;  %v808_v44 = vrot.slane %v794_v39, %v3080_v33 }
 0x1f6   : > { %v703_v45 = vpop.permute.xlu1 %702  ;;  %v693_v46 = vpop.permute.xlu0 %692 }
 0x1f7   : > { %v825_v47 = vcombine.low %v801_v43, %v817_v41  ;;  %v826_v48 = vcombine.high %v801_v43, %v817_v41  ;;  %v841_v49 = vcombine.low %v808_v44, %v824_v42  ;;  %v842_v50 = vcombine.high %v808_v44, %v824_v42  ;;  %706 = vst.msk [vmem:[#allocation2 + $0xc] sm:$0xf] %vm673_vm2, %v703_v45 }
 0x1f8   : > { %696 = vst.msk [vmem:[#allocation2 + $0x8] sm:$0xf] %vm673_vm2, %v693_v46 }
 0x1f9   : > { %v833_v51 = vrot.slane %v825_v47, %v3083_v40  ;;  %v840_v52 = vrot.slane %v826_v48, %v3083_v40  ;;  %v849_v53 = vrot.slane %v841_v49, %v3083_v40  ;;  %v856_v54 = vrot.slane %v842_v50, %v3083_v40 }
 0x1fa   : > { %v870_v55 = vld [vmem:[#allocation2 + $0x4] sm:$0xf] }
 0x1fb   : > { %v857_v56 = vcombine.high %v833_v51, %v2754_v0  ;;  %v858_v57 = vcombine.high %v840_v52, %v2754_v0  ;;  %v859_v58 = vcombine.high %v849_v53, %v2754_v0  ;;  %v860_v59 = vcombine.high %v856_v54, %v2754_v0 }
 0x1fc   : > { %v2194_v60 = vpack.c.bf16 %v849_v53, %v833_v51  ;;  %v2195_v61 = vpack.c.bf16 %v856_v54, %v840_v52  ;;  %v986_v62 = vsel %vm935_vm3, %v870_v55, 0 }
 0x1fd   : > { %v2196_v63 = vpack.c.bf16 %v859_v58, %v857_v56  ;;  %v2197_v1 = vpack.c.bf16 %v860_v59, %v858_v57  ;;  %2291 = vmatpush3.bf16.xpose.msra.mxu1 %v986_v62 }
 0x1fe   : > { %v880_v2 = vrot.slane %v2194_v60, %v3080_v33  ;;  %v888_v4 = vrot.slane %v2195_v61, %v3080_v33  ;;  %2302 = vmatprep.subr.bf16.mxu1 %v2754_v0  ;;  %v872_v16 = vld [vmem:[#allocation2 + $0xc] sm:$0xf] }
 0x1ff   : > { %v905_v5 = vrot.slane %v2196_v63, %v3080_v33  ;;  %v913_v6 = vrot.slane %v2197_v1, %v3080_v33  ;;  %v871_v11 = vld [vmem:[#allocation2 + $0x8] sm:$0xf]  ;;  %v1078_v21 = vsel %vm935_vm3, %v872_v16, 0 }
 0x200   : > { %v889_v7 = vcombine.low %v880_v2, %v888_v4  ;;  %v1032_v17 = vsel %vm935_vm3, %v871_v11, 0 }
 0x201   : > { %v914_v8 = vcombine.low %v905_v5, %v913_v6 }
 0x202   : > { %v896_v9 = vrot.slane %v889_v7, %v3083_v40 }
 0x203   : > { %v921_v10 = vrot.slane %v914_v8, %v3083_v40 }
 0x204   : > { %v926_v14 = vshrl.u32 %v896_v9, 16  ;;  %v897_v22 = vcombine.high %v896_v9, %v2761_v19 }
 0x205   : > { %v925_v13 = vpack.i.b16 %v921_v10, %v896_v9  ;;  %v927_v15 = vshrl.u32 %v921_v10, 16  ;;  %v922_v20 = vcombine.high %v921_v10, %v2761_v19 }
 0x206   : > { %v932_v25 = vshrl.u32 %v897_v22, 16 }
 0x207   : > { %2287 = vmatmul.mubr.msk.bf16.vlgmr.msra.gmra.mrb[0].mxu0 %vm935_vm3, %v925_v13  ;;  %v928_v18 = vpack.i.b16 %v927_v15, %v926_v14  ;;  %v933_v23 = vshrl.u32 %v922_v20, 16  ;;  %v931_v24 = vpack.i.b16 %v922_v20, %v897_v22 }
 0x208   : > { %2297 = vmatpush3.bf16.xpose.msra.mxu0 %v1032_v17  ;;  %2298 = vmatprep.mubr.msk.bf16.mxu0 %vm2755_vm0, %v2754_v0 }
 0x209   : > { %2293 = vmatmul.mubr.msk.bf16.vlgmr.msra.gmra.mrb[8].mxu1 %vm935_vm3, %v928_v18  ;;  %2308 = vmatprep.subr.bf16.mxu0 %v2754_v0  ;;  %v934_v26 = vpack.i.b16 %v933_v23, %v932_v25 }
 0x20a   : > { %2303 = vmatpush3.bf16.xpose.msra.mxu1 %v1078_v21  ;;  %2304 = vmatprep.mubr.msk.bf16.mxu1 %vm2755_vm0, %v2754_v0 }
 0x20b   : > { %2314 = vmatprep.subr.bf16.mxu1 %v2754_v0 }
 0x20f   : > { %2299 = vmatmul.mubr.msk.bf16.vlgmr.msra.gmra.mrb[4].mxu0 %vm935_vm3, %v931_v24 }
 0x210   : > { %2310 = vmatprep.mubr.msk.bf16.mxu0 %vm2755_vm0, %v2754_v0 }
 0x211   : > { %2305 = vmatmul.mubr.msk.bf16.vlgmr.msra.gmra.mrb[12].mxu1 %vm935_vm3, %v934_v26 }
 0x212   : > { %2316 = vmatprep.mubr.msk.bf16.mxu1 %vm2755_vm0, %v2754_v0 }
 0x2da   : > { %v976_v27 = vpop.f32.mrb[0].mxu0 }
 0x2db   : > { %v2288_v28 = vpop.f32.mrb[1].mxu0  ;;  %v1120_v29 = vsel %vm935_vm3, %v976_v27, -inf }
 0x2dc   : > { %1121 = vmax.xlane.f32.xlu0 %v1120_v29  ;;  %v979_v30 = vpop.f32.mrb[2].mxu0  ;;  %v1022_v31 = vpop.f32.mrb[8].mxu1 }
 0x2dd   : > { %v2289_v32 = vpop.f32.mrb[3].mxu0  ;;  %v2294_v34 = vpop.f32.mrb[9].mxu1  ;;  %v1123_v35 = vsel %vm935_vm3, %v1022_v31, -inf }
 0x2de   : > { %1124 = vmax.xlane.f32.xlu1 %v1123_v35  ;;  %v1025_v36 = vpop.f32.mrb[10].mxu1 }
 0x2df   : > { %v2295_v37 = vpop.f32.mrb[11].mxu1 }
 0x2e2   : > { %v1068_v38 = vpop.f32.mrb[4].mxu0 }
 0x2e3   : > { %v2300_v39 = vpop.f32.mrb[5].mxu0  ;;  %v1126_v41 = vsel %vm935_vm3, %v1068_v38, -inf }
 0x2e4   : > { %1127 = vmax.xlane.f32.xlu0 %v1126_v41  ;;  %v1071_v42 = vpop.f32.mrb[6].mxu0  ;;  %v1114_v43 = vpop.f32.mrb[12].mxu1 }
 0x2e5   : > { %v2301_v44 = vpop.f32.mrb[7].mxu0  ;;  %v2306_v45 = vpop.f32.mrb[13].mxu1  ;;  %v1129_v48 = vsel %vm935_vm3, %v1114_v43, -inf }
 0x2e6   : > { %v1117_v46 = vpop.f32.mrb[14].mxu1 }
 0x2e7   : > { %v2307_v47 = vpop.f32.mrb[15].mxu1 }
 0x2e8   : > { %1130 = vmax.xlane.f32.xlu0 %v1129_v48 }
 0x2ef   : > { %678 = vrot.lane.b32.xlu1 %v3068_v12, %s2762_s20  ;;  %s2628_s20 = sshll.u32 %s2769_s29, 4  ;;  %s2629_s20 = int_to_ptr.vmem [resolvable:$false] %s2628_s20 }
 0x2f0   : > { %p2631_p11 = scmp.lt.s32.totalorder %s3231_s14, %s2629_s20 }
 0x2f3   : > { %697 = vrot.lane.b32.xlu1 %v3068_v12, %s2763_s28 }
 0x2f7   : > { %707 = vrot.lane.b32.xlu1 %v3068_v12, %s2764_s21 }
 0x2fe   : > { %687 = vrot.lane.b32.xlu0 %v3068_v12, %s2765_s19 }
 0x369   : > { %v1122_v49 = vpop.xlane.xlu0 %1121 }
 0x36a   : > { %v1132_v50 = vsub.f32 %v976_v27, %v1122_v49 }
 0x36b   : > { %v1125_v51 = vpop.xlane.xlu1 %1124 }
 0x36c   : > { %v1136_v52 = vmul.f32 1.442695, %v1132_v50  ;;  %v1133_v53 = vsub.f32 %v1022_v31, %v1125_v51 }
 0x36e   : > { %2492 = vpow2.f32 %v1136_v52  ;;  %v1138_v54 = vmul.f32 1.442695, %v1133_v53 }
 0x36f   : > { %v679_v55 = vpop.permute.xlu1 %678 }
 0x370   : > { %2494 = vpow2.f32 %v1138_v54  ;;  %681 = vst.msk [vmem:[#allocation3] sm:$0xf] %vm673_vm2, %v679_v55 }
 0x371   : > { %v1128_v56 = vpop.xlane.xlu0 %1127 }
 0x372   : > { %v1134_v57 = vsub.f32 %v1068_v38, %v1128_v56 }
 0x373   : > { %v698_v58 = vpop.permute.xlu1 %697 }
 0x374   : > { %v1140_v59 = vmul.f32 1.442695, %v1134_v57  ;;  %701 = vst.msk [vmem:[#allocation3 + $0x8] sm:$0xf] %vm673_vm2, %v698_v58 }
 0x375   : > { %v1131_v60 = vpop.xlane.xlu0 %1130 }
 0x376   : > { %2496 = vpow2.f32 %v1140_v59  ;;  %v1135_v12 = vsub.f32 %v1114_v43, %v1131_v60 }
 0x377   : > { %v708_v61 = vpop.permute.xlu1 %707  ;;  %v1173_v10 = vld [vmem:[#allocation3] sm:$0xf] }
 0x378   : > { %v2493_v62 = vpop.eup %2492  ;;  %v1142_v63 = vmul.f32 1.442695, %v1135_v12  ;;  %711 = vst.msk [vmem:[#allocation3 + $0xc] sm:$0xf] %vm673_vm2, %v708_v61 }
 0x379   : > { %v688_v1 = vpop.permute.xlu0 %687  ;;  %v1144_v2 = vsel %vm935_vm3, %v2493_v62, 0.0 }
 0x37a   : > { %v2495_v4 = vpop.eup %2494  ;;  %2498 = vpow2.f32 %v1142_v63  ;;  %691 = vst.msk [vmem:[#allocation3 + $0x4] sm:$0xf] %vm673_vm2, %v688_v1  ;;  %1145 = vadd.xlane.f32.xlu0 %v1144_v2 }
 0x37b   : > { %v1147_v5 = vsel %vm935_vm3, %v2495_v4, 0.0  ;;  %v1175_v11 = vld [vmem:[#allocation3 + $0x8] sm:$0xf] }
 0x37c   : > { %1148 = vadd.xlane.f32.xlu1 %v1147_v5 }
 0x37f   : > { %v1176_v14 = vld [vmem:[#allocation3 + $0xc] sm:$0xf] }
 0x380   : > { %v2497_v6 = vpop.eup %2496 }
 0x381   : > { %v1150_v7 = vsel %vm935_vm3, %v2497_v6, 0.0  ;;  %v1174_v13 = vld [vmem:[#allocation3 + $0x4] sm:$0xf] }
 0x382   : > { %1151 = vadd.xlane.f32.xlu0 %v1150_v7 }
 0x384   : > { %v2499_v8 = vpop.eup %2498 }
 0x385   : > { %v1153_v9 = vsel %vm935_vm3, %v2499_v8, 0.0 }
 0x386   : > { %1154 = vadd.xlane.f32.xlu0 %v1153_v9 }
 0x3a9   : > { %1177 = vxpose.xlu1.c.b16.start.end [1/1] (short) (narrow) %v1173_v10, 16  ;;  %v2484_v10 = vld [vmem:[#allocation4] sm:$0xff]  }
 0x3ad   : > { %1301 = vxpose.xlu1.c.b16.start.end [1/1] (short) (narrow) %v1175_v11, 16 }
 0x3b3   : > { %1239 = vxpose.xlu0.c.b16.start.end [1/1] (short) (narrow) %v1174_v13, 16 }
 0x3b7   : > { %1363 = vxpose.xlu0.c.b16.start.end [1/1] (short) (narrow) %v1176_v14, 16 }
 0x407   : > { %v1146_v15 = vpop.xlane.xlu0 %1145 }
 0x408   : > { %2500 = vrcp.f32 %v1146_v15 }
 0x409   : > { %v1149_v16 = vpop.xlane.xlu1 %1148 }
 0x40a   : > { %2502 = vrcp.f32 %v1149_v16 }
 0x40f   : > { %v1152_v17 = vpop.xlane.xlu0 %1151  ;;  %v1185_v29 = vpop.trf.xlu1 }
 0x410   : > { %2504 = vrcp.f32 %v1152_v17 }
 0x412   : > { %v2501_v18 = vpop.eup %2500 }
 0x413   : > { %v1155_v19 = vpop.xlane.xlu0 %1154  ;;  %v1160_v20 = vmul.f32 %v2501_v18, %v2493_v62  ;;  %v1309_v38 = vpop.trf.xlu1 }
 0x414   : > { %v2503_v21 = vpop.eup %2502  ;;  %2506 = vrcp.f32 %v1155_v19 }
 0x415   : > { %v1164_v22 = vpack.c.bf16 %v1160_v20, %v1160_v20  ;;  %v1161_v23 = vmul.f32 %v2503_v21, %v2495_v4  ;;  %v2485_v20 = vld [vmem:[#allocation4 + $0x8] sm:$0xff]  }
 0x417   : > { %v1197_v24 = vsel %vm935_vm3, %v1164_v22, 0  ;;  %v1165_v25 = vpack.c.bf16 %v1161_v23, %v1161_v23  ;;  %1169 = vst.msk [vmem:[%s3144_s16] sm:$0xf] %vm673_vm2, %v1164_v22 }
 0x418   : > { %2309 = vmatpush3.bf16.xpose.msra.mxu0 %v1197_v24 }
 0x419   : > { %v1259_v26 = vsel %vm935_vm3, %v1165_v25, 0  ;;  %2320 = vmatprep.subr.bf16.mxu0 %v2754_v0  ;;  %1170 = vst.msk [vmem:[%s3144_s16 + $0x4] sm:$0xf] %vm673_vm2, %v1165_v25  ;;  %v1247_v32 = vpop.trf.xlu0 }
 0x41a   : > { %v2505_v27 = vpop.eup %2504  ;;  %2315 = vmatpush3.bf16.xpose.msra.mxu1 %v1259_v26 }
 0x41b   : > { %v1162_v28 = vmul.f32 %v2505_v27, %v2497_v6  ;;  %2326 = vmatprep.subr.bf16.mxu1 %v2754_v0 }
 0x41d   : > { %v1166_v30 = vpack.c.bf16 %v1162_v28, %v1162_v28  ;;  %v1371_v39 = vpop.trf.xlu0 }
 0x41e   : > { %v2507_v31 = vpop.eup %2506 }
 0x41f   : > { %2311 = vmatmul.mubr.msk.bf16.vlgmr.msra.gmra.mrb[8].mxu0 %vm935_vm3, %v1185_v29  ;;  %v1321_v34 = vsel %vm935_vm3, %v1166_v30, 0  ;;  %v1163_v35 = vmul.f32 %v2507_v31, %v2499_v8  ;;  %1171 = vst.msk [vmem:[%s3144_s16 + $0x8] sm:$0xf] %vm673_vm2, %v1166_v30 }
 0x420   : > { %2321 = vmatpush3.bf16.xpose.msra.mxu0 %v1321_v34  ;;  %2322 = vmatprep.mubr.msk.bf16.mxu0 %vm2755_vm0, %v2754_v0 }
 0x421   : > { %2317 = vmatmul.mubr.msk.bf16.vlgmr.msra.gmra.mrb[16].mxu1 %vm935_vm3, %v1247_v32  ;;  %v1167_v36 = vpack.c.bf16 %v1163_v35, %v1163_v35  ;;  %2332 = vmatprep.subr.bf16.mxu0 %v2754_v0 }
 0x422   : > { %2328 = vmatprep.mubr.msk.bf16.mxu1 %vm2755_vm0, %v2754_v0 }
 0x423   : > { %v1383_v37 = vsel %vm935_vm3, %v1167_v36, 0  ;;  %1172 = vst.msk [vmem:[%s3144_s16 + $0xc] sm:$0xf] %vm673_vm2, %v1167_v36  ;;  %s2630_s16 = scalar_lea.vmem %s2629_s20, 512 }
 0x424   : > { %2327 = vmatpush3.bf16.xpose.msra.mxu1 %v1383_v37  ;;  %p2632_p3 = scmp.lt.s32.totalorder %s2630_s16, %s2624_s17 }
 0x425   : > { %2340 = vmatprep.subr.bf16.mxu1 %v2754_v0 }
 0x426   : > { %p2633_p5 = por %p2632_p3, %p2631_p11 }
 0x427   : > { %2323 = vmatmul.mubr.msk.bf16.vlgmr.msra.gmra.mrb[12].mxu0 %vm935_vm3, %v1309_v38 }
 0x428   : > { %2336 = vmatprep.mubr.msk.bf16.mxu0 %vm2755_vm0, %v2754_v0  ;;  %2333 = vmatpush3.bf16.msra.mxu0 %v2484_v10  ;;  %p2634_p6 = pnand %p2633_p5, %p2627_p10 }
 0x429   : > { %2334 = vmatprep.subr.bf16.mxu0 %v2754_v0 }
 0x42b   : > { %2329 = vmatmul.mubr.msk.bf16.vlgmr.msra.gmra.mrb[20].mxu1 %vm935_vm3, %v1371_v39 }
 0x42c   : > { %2344 = vmatprep.mubr.msk.bf16.mxu1 %vm2755_vm0, %v2754_v0  ;;  %2335 = vmatpush3.bf16.msra.mxu0 %v2485_v20 }
 0x42d   : > { %2348 = vmatprep.subr.bf16.mxu0 %v2754_v0 }
 0x4f2   : > { %v1233_v41 = vpop.f32.mrb[8].mxu0 }
 0x4f3   : > { %v2312_v42 = vpop.f32.mrb[9].mxu0  ;;  %1425 = vxpose.xlu1.b32.start.end [1/1] (short) (narrow) %v1233_v41, 8 }
 0x4f4   : > { %v1295_v43 = vpop.f32.mrb[16].mxu1  ;;  %v1236_v44 = vpop.f32.mrb[10].mxu0 }
 0x4f5   : > { %v2318_v45 = vpop.f32.mrb[17].mxu1  ;;  %v2313_v46 = vpop.f32.mrb[11].mxu0  ;;  %1457 = vxpose.xlu0.b32.start.end [1/1] (short) (narrow) %v1295_v43, 8  ;;  %v2208_v44 = vld [vmem:[#allocation7] ss:$0 sm:$0xff] }
 0x4f6   : > { %v1298_v47 = vpop.f32.mrb[18].mxu1 }
 0x4f7   : > { %v2319_v48 = vpop.f32.mrb[19].mxu1 }
 0x4fa   : > { %v1357_v49 = vpop.f32.mrb[12].mxu0 }
 0x4fb   : > { %1489 = vxpose.xlu0.b32.start.end [1/1] (short) (narrow) %v1357_v49, 8  ;;  %v2324_v50 = vpop.f32.mrb[13].mxu0 }
 0x4fc   : > { %v1360_v51 = vpop.f32.mrb[14].mxu0 }
 0x4fd   : > { %v2325_v52 = vpop.f32.mrb[15].mxu0 }
 0x4fe   : > { %v1419_v53 = vpop.f32.mrb[20].mxu1 }
 0x4ff   : > { %1521 = vxpose.xlu1.b32.start.end [1/1] (short) (narrow) %v1419_v53, 8  ;;  %v2330_v54 = vpop.f32.mrb[21].mxu1 }
 0x500   : > { %v1422_v55 = vpop.f32.mrb[22].mxu1 }
 0x501   : > { %v2331_v56 = vpop.f32.mrb[23].mxu1 }
 0x573   : > { %v1441_v58 = vpop.trf.xlu1 }
 0x575   : > { %v1473_v57 = vpop.trf.xlu0 }
 0x57b   : > { %v1505_v59 = vpop.trf.xlu0 }
 0x57c   : > { %v1553_v60 = vcombine.low %v1441_v58, %v1505_v59  ;;  %v1554_v12 = vcombine.high %v1441_v58, %v1505_v59  ;;  %v2487_v58 = vld [vmem:[%s3331_s9 + $0x8] sm:$0xff]  }
 0x57d   : > { %v2489_v59 = vld [vmem:[%s3333_s11 + $0x8] sm:$0xff]  }
 0x57e   : > { %v1561_v1 = vrot.slane %v1553_v60, %v3080_v33  ;;  %v1568_v2 = vrot.slane %v1554_v12, %v3080_v33 }
 0x57f   : > { %v1537_v61 = vpop.trf.xlu1 }
 0x580   : > { %v1569_v62 = vcombine.low %v1473_v57, %v1537_v61  ;;  %v1570_v63 = vcombine.high %v1473_v57, %v1537_v61  ;;  %v2486_v57 = vld [vmem:[%s3331_s9] sm:$0xff]  }
 0x581   : > { %2341 = vmatpush3.bf16.msra.mxu1 %v2486_v57 }
 0x582   : > { %v1577_v4 = vrot.slane %v1569_v62, %v3080_v33  ;;  %v1584_v5 = vrot.slane %v1570_v63, %v3080_v33  ;;  %2342 = vmatprep.subr.bf16.mxu1 %v2754_v0  ;;  %v2212_v63 = vld [vmem:[#allocation9] ss:$0 sm:$0xff] }
 0x584   : > { %v1585_v6 = vcombine.low %v1561_v1, %v1577_v4  ;;  %v1586_v7 = vcombine.high %v1561_v1, %v1577_v4  ;;  %v1601_v8 = vcombine.low %v1568_v2, %v1584_v5  ;;  %v1602_v9 = vcombine.high %v1568_v2, %v1584_v5  ;;  %v2213_v2 = vld [vmem:[#allocation10] ss:$0 sm:$0xff] }
 0x585   : > { %2343 = vmatpush3.bf16.msra.mxu1 %v2487_v58 }
 0x586   : > { %v1593_v11 = vrot.slane %v1585_v6, %v3083_v40  ;;  %v1600_v13 = vrot.slane %v1586_v7, %v3083_v40  ;;  %v1609_v14 = vrot.slane %v1601_v8, %v3083_v40  ;;  %v1616_v15 = vrot.slane %v1602_v9, %v3083_v40  ;;  %v2490_v7 = vld [vmem:[%s3333_s11 + $0x10] sm:$0xff]   ;;  %v2491_v8 = vld [vmem:[%s3333_s11 + $0x18] sm:$0xff]   ;;  %v2214_v9 = vld [vmem:[%s3380_s13] ss:$0 sm:$0xff] }
 0x588   : > { %v1621_v16 = vcombine.low %v1593_v11, %v1600_v13  ;;  %v2206_v17 = vcombine.high %v1593_v11, %v1600_v13  ;;  %v1637_v18 = vcombine.low %v1609_v14, %v1616_v15  ;;  %v2207_v19 = vcombine.high %v1609_v14, %v1616_v15 }
 0x58a   : > { %v1628_v21 = vrot.slane %v1621_v16, %v3080_v33  ;;  %v1636_v22 = vrot.slane %v2206_v17, %v3080_v33  ;;  %v1644_v23 = vrot.slane %v1637_v18, %v3080_v33  ;;  %v1652_v24 = vrot.slane %v2207_v19, %v3080_v33 }
 0x58c   : > { %v1654_v25 = vcombine.high %v1628_v21, %v1636_v22  ;;  %v1670_v26 = vcombine.high %v1644_v23, %v1652_v24  ;;  %v1653_v27 = vcombine.low %v1628_v21, %v1636_v22  ;;  %v1669_v28 = vcombine.low %v1644_v23, %v1652_v24 }
 0x58e   : > { %v1668_v29 = vrot.slane %v1654_v25, %v3083_v40  ;;  %v1684_v30 = vrot.slane %v1670_v26, %v3083_v40  ;;  %v1661_v31 = vrot.slane %v1653_v27, %v3083_v40  ;;  %v1677_v32 = vrot.slane %v1669_v28, %v3083_v40 }
 0x590   : > { %v1687_v34 = vcombine.low %v1668_v29, %v1684_v30  ;;  %v1686_v35 = vcombine.high %v1661_v31, %v1677_v32  ;;  %v1685_v36 = vcombine.low %v1661_v31, %v1677_v32  ;;  %v1688_v33 = vcombine.high %v1668_v29, %v1684_v30 }
 0x592   : > { %1694 = vrot.lane.b32.xlu1 %v1687_v34, %s2766_s0  ;;  %1690 = vrot.lane.b32.xlu0 %v1686_v35, %s2767_s6 }
 0x596   : > { %1698 = vrot.lane.b32.xlu1 %v1688_v33, %s2768_s10  ;;  %s3381_s10 = sld [smem:[#allocation31_spill]] }
 0x604   : > { %v1695_v37 = vpop.permute.xlu1 %1694  ;;  %v1691_v38 = vpop.permute.xlu0 %1690 }
 0x605   : > { %v1701_v39 = vsel %vm935_vm3, %v1685_v36, %v1691_v38 }
 0x606   : > { %v1703_v42 = vsel %vm1702_vm4, %v1701_v39, %v1695_v37 }
 0x608   : > { %v1699_v41 = vpop.permute.xlu1 %1698 }
 0x609   : > { %v1705_v43 = vsel %vm1704_vm5, %v1703_v42, %v1699_v41 }
 0x60a   : > { %v1706_v40 = vpack.c.bf16 %v1705_v43, %v1705_v43 }
 0x60c   : > { %2337 = vmatmul.mubr.msk.bf16.vlgmr.msra.gmra.mrb[16].mxu0 %vm628_vm1, %v1706_v40 }
 0x60d   : > { %2356 = vmatprep.mubr.msk.bf16.mxu0 %vm2755_vm0, %v2754_v0 }
 0x6df   : > { %v1767_v45 = vpop.f32.mrb[16].mxu0 }
 0x6e0   : > { %v1768_v46 = vadd.f32 %v2208_v44, %v1767_v45  ;;  %v2338_v47 = vpop.f32.mrb[17].mxu0 }
 0x6e1   : > { %v1770_v48 = vpop.f32.mrb[18].mxu0 }
 0x6e2   : > { %v2339_v49 = vpop.f32.mrb[19].mxu0  ;;  %v1773_v50 = vadd.f32 %v1768_v46, %v3045_v3  ;;  %v2488_v3 = vld [vmem:[%s3333_s11] sm:$0xff]  }
 0x6e3   : > { %2349 = vmatpush3.bf16.msra.mxu0 %v2488_v3 }
 0x6e4   : > { %v1774_v51 = vsel %vm628_vm1, %v1773_v50, 0.0  ;;  %2350 = vmatprep.subr.bf16.mxu0 %v2754_v0 }
 0x6e5   : > { %1775 = vadd.xlane.f32.xlu1 %v1774_v51 }
 0x6e7   : > { %2351 = vmatpush3.bf16.msra.mxu0 %v2489_v59 }
 0x6e8   : > { %2352 = vmatprep.subr.bf16.mxu0 %v2754_v0 }
 0x6eb   : > { %2353 = vmatpush3.bf16.msra.mxu0 %v2490_v7 }
 0x6ec   : > { %2354 = vmatprep.subr.bf16.mxu0 %v2754_v0  ;;  %v2218_v0 = vld [vmem:[%s3381_s10] ss:$0 sm:$0xff] }
 0x6ef   : > { %2355 = vmatpush3.bf16.msra.mxu0 %v2491_v8 }
 0x772   : > { %v1776_v52 = vpop.xlane.xlu1 %1775 }
 0x773   : > { %v1778_v53 = vmul.f32 0.03125, %v1776_v52 }
 0x775   : > { %v1779_v54 = vsub.f32 %v1773_v50, %v1778_v53 }
 0x777   : > { %v1780_v55 = vmul.f32 %v1779_v54, %v1779_v54 }
 0x779   : > { %v1781_v56 = vsel %vm628_vm1, %v1780_v55, 0.0 }
 0x77a   : > { %1782 = vadd.xlane.f32.xlu0 %v1781_v56 }
 0x807   : > { %v1783_v60 = vpop.xlane.xlu0 %1782 }
 0x808   : > { %v1784_v12 = vmul.f32 0.03125, %v1783_v60 }
 0x80a   : > { %v1785_v61 = vadd.f32 1e-05, %v1784_v12 }
 0x80c   : > { %2508 = vrsqrt.f32 %v1785_v61 }
 0x816   : > { %v2509_v62 = vpop.eup %2508 }
 0x817   : > { %v1787_v1 = vmul.f32 %v2509_v62, %v1779_v54 }
 0x819   : > { %v1795_v4 = vmul.f32 %v2212_v63, %v1787_v1 }
 0x81b   : > { %v1803_v5 = vadd.f32 %v2213_v2, %v1795_v4 }
 0x81d   : > { %v1804_v6 = vpack.c.bf16 %v1803_v5, %v1803_v5 }
 0x81f   : > { %2345 = vmatmul.mubr.msk.bf16.vlgmr.msra.gmra.mrb[24].mxu1 %vm628_vm1, %v1804_v6 }
 0x8f2   : > { %v1865_v10 = vpop.f32.mrb[24].mxu1 }
 0x8f3   : > { %v1866_v11 = vadd.f32 %v2214_v9, %v1865_v10  ;;  %v2346_v13 = vpop.f32.mrb[25].mxu1 }
 0x8f4   : > { %v1868_v14 = vpop.f32.mrb[26].mxu1 }
 0x8f5   : > { %v1871_v15 = vmax.f32 %v1866_v11, 0.0  ;;  %v2347_v16 = vpop.f32.mrb[27].mxu1 }
 0x8f7   : > { %v1872_v17 = vpack.c.bf16 %v1871_v15, %v1871_v15 }
 0x8f9   : > { %2357 = vmatmul.mubr.msk.bf16.vlgmr.msra.gmra.mrb[20].mxu0 %vm1912_vm6, %v1872_v17 }
 0x9cc   : > { %v1950_v18 = vpop.f32.mrb[20].mxu0 }
 0x9cd   : > { %v1951_v19 = vadd.f32 %v2218_v0, %v1950_v18  ;;  %v2358_v20 = vpop.f32.mrb[21].mxu0 }
 0x9ce   : > { %v1953_v21 = vpop.f32.mrb[22].mxu0 }
 0x9cf   : > { %v2359_v22 = vpop.f32.mrb[23].mxu0  ;;  %v1956_v23 = vadd.f32 %v1951_v19, %v1803_v5 }
 0x9d1   : > { %v1957_v24 = vsel %vm628_vm1, %v1956_v23, 0.0 }
 0x9d2   : > { %1958 = vadd.xlane.f32.xlu0 %v1957_v24 }
 0xa5f   : > { %v1959_v25 = vpop.xlane.xlu0 %1958 }
 0xa60   : > { %v1960_v26 = vmul.f32 0.03125, %v1959_v25 }
 0xa62   : > { %v1961_v27 = vsub.f32 %v1956_v23, %v1960_v26 }
 0xa64   : > { %v1962_v28 = vmul.f32 %v1961_v27, %v1961_v27 }
 0xa66   : > { %v1963_v29 = vsel %vm628_vm1, %v1962_v28, 0.0 }
 0xa67   : > { %1964 = vadd.xlane.f32.xlu1 %v1963_v29 }
 0xa68   : > { %2637 = shalt.err (!%p2634_p6)
}
 0xa69   : > { %s2638_s28 = scalar_lea.hbm %s3236_s23, 256  ;;  %s2642_s13 = scalar_lea.hbm %s3383_s30, 512 }
 0xa6a   : > { %p2639_p7 = scmp.ne.s32.totalorder %s3236_s23, %s2638_s28  ;;  %p2643_p0 = scmp.lt.u32.totalorder %s3236_s23, %s3383_s30 }
 0xa6b   : > { %p2644_p2 = scmp.lt.u32.totalorder %s2642_s13, %s2638_s28  ;;  %p2646_p1 = scmp.lt.u32.totalorder %s2638_s28, %s3236_s23 }
 0xa6c   : > { %p2640_p9 = pnand %p2639_p7, %p3384_p4 }
 0xa6d   : > { %p2645_p13 = por %p2644_p2, %p2643_p0 }
 0xa6e   : > { %p2641_p12 = pneg %p2640_p9 }
 0xa6f   : > { %p2647_p8 = por %p2646_p1, %p2645_p13 }
 0xa71   : > { %p2648_p10 = pnand %p2647_p8, %p2641_p12 }
 0xa73   : > { %2651 = shalt.err (!%p2648_p10)
}
 0xa74   : > { %s2770_s10 = smov 64   ;;  %s2771_s18 = smov 4  }
 0xa75   : > { %2377 = dma.vmem_to_hbm [thread:$0]  (%p3384_p4), %s3231_s14, 256, %s3236_s23, %s1993_s26, %s2770_s10, %s2770_s10, %s2771_s18  }
 0xa76   : > { %s2182_s27 = sshll.u32 %s3140_s25, 3  ;;  %s3385_s29 = sld [smem:[#allocation32_spill]] }
 0xa77   : > { %s3386_s28 = sld [smem:[#allocation33_spill]]  ;;  %s2228_s21 = sshll.u32 %s2738_s24, 7 }
 0xa78   : > { %s585_s19 = scalar_lea.vmem [#allocation12], %s2182_s27  ;;  %s3387_s13 = sld [smem:[#allocation34_spill]] }
 0xa79   : > { %s2007_s14 = sshll.u32 %s585_s19, 4  ;;  %s1988_s6 = scalar_lea.sflag [#allocation6], %s3140_s25  ;;  %s3275_s14 = int_to_ptr.vmem [resolvable:$true] %s2007_s14 }
 0xa7a   : > { %s2652_s10 = scalar_lea.vmem %s3275_s14, 128  ;;  %s2772_s24 = smov [#allocation12]  }
 0xa7b   : > { %p2653_p11 = scmp.ne.s32.totalorder %s3275_s14, %s2652_s10  ;;  %s2656_s18 = sshll.u32 %s2772_s24, 4  ;;  %s2657_s18 = int_to_ptr.vmem [resolvable:$false] %s2656_s18 }
 0xa7c   : > { %v2224_v35 = vld [vmem:[%s3385_s29] ss:$0 sm:$0xff]  ;;  %s2658_s27 = scalar_lea.vmem %s2657_s18, 256  ;;  %p2659_p6 = scmp.lt.s32.totalorder %s3275_s14, %s2657_s18 }
 0xa7d   : > { %v2225_v33 = vld [vmem:[%s3386_s28] ss:$0 sm:$0xff]  ;;  %p2654_p3 = pnand %p2653_p11, %p3384_p4  ;;  %p2660_p7 = scmp.lt.s32.totalorder %s2658_s27, %s2652_s10 }
 0xa7e   : > { %s3273_s0 = scalar_lea.hbm %s3387_s13, %s2228_s21 }
 0xa7f   : > { %p2655_p5 = pneg %p2654_p3  ;;  %p2661_p9 = por %p2660_p7, %p2659_p6 }
 0xa81   : > { %p2662_p12 = pnand %p2661_p9, %p2655_p5 }
 0xaf4   : > { %v1965_v30 = vpop.xlane.xlu1 %1964 }
 0xaf5   : > { %v1966_v31 = vmul.f32 0.03125, %v1965_v30 }
 0xaf7   : > { %v1967_v32 = vadd.f32 1e-05, %v1966_v31 }
 0xaf9   : > { %2510 = vrsqrt.f32 %v1967_v32 }
 0xb03   : > { %v2511_v34 = vpop.eup %2510 }
 0xb04   : > { %v1969_v36 = vmul.f32 %v2511_v34, %v1961_v27 }
 0xb06   : > { %v1977_v37 = vmul.f32 %v2224_v35, %v1969_v36 }
 0xb08   : > { %v1985_v38 = vadd.f32 %v2225_v33, %v1977_v37 }
 0xb0a   : > { %1986 = vst.msk [vmem:[%s585_s19] sm:$0xff] %vm628_vm1, %v1985_v38 }
 0xb0b   : > { %2665 = shalt.err (!%p2662_p12)
}
 0xb0c   : > { %s2666_s25 = scalar_lea.hbm %s3273_s0, 128  ;;  %s2670_s29 = scalar_lea.hbm %s3387_s13, 256 }
 0xb0d   : > { %p2667_p0 = scmp.ne.s32.totalorder %s3273_s0, %s2666_s25  ;;  %p2671_p1 = scmp.lt.u32.totalorder %s3273_s0, %s3387_s13 }
 0xb0e   : > { %p2672_p8 = scmp.lt.u32.totalorder %s2670_s29, %s2666_s25  ;;  %p2674_p11 = scmp.lt.u32.totalorder %s2666_s25, %s3273_s0 }
 0xb0f   : > { %p2668_p2 = pnand %p2667_p0, %p3384_p4 }
 0xb10   : > { %p2673_p10 = por %p2672_p8, %p2671_p1 }
 0xb11   : > { %p2669_p13 = pneg %p2668_p2 }
 0xb12   : > { %p2675_p3 = por %p2674_p11, %p2673_p10 }
 0xb14   : > { %p2676_p5 = pnand %p2675_p3, %p2669_p13 }
 0xb16   : > { %2679 = shalt.err (!%p2676_p5)
}
 0xb17   : > { %2376 = dma.vmem_to_hbm [thread:$0]  (%p3384_p4), %s3275_s14, 128, %s3273_s0, %s1988_s6  }
 0xb18 PF: > { %s3388_s28 = sld [smem:[#allocation23_spill]]  ;;  %s3389_s21 = sld [smem:[#allocation20_spill]] }
 0xb19   : > { %s3390_s19 = sld [smem:[#allocation26_spill]] }
 0xb1e   : > { %p2408_p6 = scmp.ge.s32.totalorder %s3388_s28, 2  ;;  %s2036_s23 = sand.u32 1, %s3389_s21  }
 0xb1f   : > { %p3391_p7 = scmp.ne.s32.totalorder %s3390_s19, 0  ;;  %s2037_s26 = scalar_lea.sflag [#allocation6], %s2036_s23 }
 0xb21   : > { %p2394_p9 = pnand %p2408_p6, %p3391_p7 }
 0xb23   : > { %2717 = dma.done.wait (!%p2394_p9), %s2037_s26, 128  }
 0xb24   : > { %2719 = vsyncadd (!%p2394_p9), %s2037_s26, 4294967168  ;;  %s2046_s10 = scalar_lea.sflag [#allocation14], %s2036_s23 }
 0xb25   : > { %2721 = dma.done.wait (!%p2394_p9), %s2046_s10, 256  }
 0xb26   : > { %2723 = vsyncadd (!%p2394_p9), %s2046_s10, 4294967040  ;;  %s36_s26 = sadd.s32 1, %s3388_s28   ;;  %s3392_s12 = sld [smem:[#allocation21_spill]] }
 0xb27   : > { %p33_p12 = scmp.ge.s32.totalorder %s36_s26, 4   ;;  %s3393_s23 = sld [smem:[#allocation27_spill]] }
 0xb28   : > { %s3394_s24 = sld [smem:[#allocation22_spill]]  ;;  %s3395_s25 = sld [smem:[#allocation24_spill]] }
 0xb29   : > { %s3396_s21 = smov %s2730_s22  ;;  %35 = sbr.rel (!%p33_p12) target bundleno = 18 (0x12), region = 160 }
 0xb2c   : > { %s3397_s22 = smov %s3392_s12 }
 0xb30   :  { %2051 = vsyncpa [#allocation5], 1 }
 0xb31   :  { %2053 = vsyncpa [#allocation5 + $0x1], 1 }
 0xb32   :  { %2054 = vsyncpa [#allocation8], 1 }
 0xb33   :  { %2055 = vsyncpa [#allocation11], 1 }
 0xb34   :  { %2056 = vsyncpa [#allocation6], 1 }
 0xb35   :  { %2058 = vsyncpa [#allocation6 + $0x1], 1 }
 0xb36   :  { %2059 = vsyncpa [#allocation14], 1 }
 0xb37   :  { %2061 = vsyncpa [#allocation14 + $0x1], 1 }

// kernel: tpu_custom_call.1
= control target key start
LH: loop header
LB: loop body
LE: loop exit
PB: predicated region body
PF: predicated region fallthrough
CT: control target
= control target key end

     0   :  { %s3322_s0 = inlined_call_operand.vmem [shape: f32[2,8,32], index: 0, kind: input, shape index: {}]   ;;  %s3323_s1 = inlined_call_operand.vmem [shape: bf16[32,32], index: 1, kind: input, shape index: {}]   ;;  %s3324_s2 = inlined_call_operand.vmem [shape: f32[1,32], index: 2, kind: input, shape index: {}]   ;;  %s3325_s3 = inlined_call_operand.vmem [shape: bf16[32,64], index: 3, kind: input, shape index: {}]   ;;  %s3326_s4 = inlined_call_operand.vmem [shape: f32[1,64], index: 4, kind: input, shape index: {}]   ;;  %s3327_s5 = inlined_call_operand.hbm [shape: bf16[32,32], index: 5, kind: input, shape index: {}]   ;;  %s3328_s6 = inlined_call_operand.hbm [shape: f32[1,32], index: 6, kind: input, shape index: {}]   ;;  %s3329_s7 = inlined_call_operand.hbm [shape: f32[1,32], index: 7, kind: input, shape index: {}]   ;;  %s3330_s8 = inlined_call_operand.hbm [shape: f32[1,32], index: 8, kind: input, shape index: {}]   ;;  %s3331_s9 = inlined_call_operand.vmem [shape: bf16[32,64], index: 9, kind: input, shape index: {}]   ;;  %s3332_s10 = inlined_call_operand.vmem [shape: f32[1,64], index: 10, kind: input, shape index: {}]   ;;  %s3333_s11 = inlined_call_operand.vmem [shape: bf16[64,32], index: 11, kind: input, shape index: {}]   ;;  %s3334_s12 = inlined_call_operand.vmem [shape: f32[1,32], index: 12, kind: input, shape index: {}]   ;;  %s3335_s13 = inlined_call_operand.vmem [shape: f32[1,32], index: 13, kind: input, shape index: {}]   ;;  %s3336_s14 = inlined_call_operand.vmem [shape: f32[1,32], index: 14, kind: input, shape index: {}]   ;;  %s3337_s15 = inlined_call_operand.hbm [shape: f32[2,8,32], index: 15, kind: output, shape index: {0}]   ;;  %s3338_s16 = inlined_call_operand.hbm [shape: bf16[2,4,8,8], index: 16, kind: output, shape index: {1}]  }
   0x1   :  { %3354 = sst [smem:[#allocation28_spill]] %s3322_s0 }
   0x2   :  { %3355 = sst [smem:[#allocation29_spill]] %s3328_s6 }
   0x3   :  { %3356 = sst [smem:[#allocation30_spill]] %s3332_s10 }
   0x4   :  { %3357 = sst [smem:[#allocation31_spill]] %s3334_s12 }
   0x5   :  { %3358 = sst [smem:[#allocation32_spill]] %s3335_s13 }
   0x6   :  { %3359 = sst [smem:[#allocation33_spill]] %s3336_s14 }
   0x7   :  { %3360 = sst [smem:[#allocation34_spill]] %s3337_s15 }
   0x8   :  { %3361 = sst [smem:[#allocation35_spill]] %s3338_s16 }
   0x9   :  { %22 = vsyncpa [#allocation5], 0 }
   0xa   :  { %23 = vsyncpa [#allocation8], 0 }
   0xb   :  { %24 = vsyncpa [#allocation11], 0 }
   0xc   :  { %25 = vsyncpa [#allocation6], 0 }
   0xd   :  { %27 = vsyncpa [#allocation6 + $0x1], 0 }
   0xe   :  { %28 = vsyncpa [#allocation14], 0 }
   0xf   :  { %30 = vsyncpa [#allocation14 + $0x1], 0  ;;  %s2858_s21 = smov 0   ;;  %s2860_s22 = smov 0  }
  0x10   :  { %s2862_s23 = smov 0   ;;  %s2864_s24 = smov 0  }
  0x11   :  { %s2866_s25 = smov 0   ;;  %s2868_s26 = smov 0  }
  0x12 LB: > { %3362 = sst [smem:[#allocation20_spill]] %s2726_s21  ;;  %s2169_s27 = sadd.s32 4294967295, %s2746_s26   ;;  %s2746_s26 = sphi %s2868_s26, %s36_s26   ;;  %s2742_s25 = sphi %s2866_s25, %s3395_s25   ;;  %s2738_s24 = sphi %s2864_s24, %s3394_s24   ;;  %s2734_s23 = sphi %s2862_s23, %s3393_s23   ;;  %s2730_s22 = sphi %s2860_s22, %s3397_s22   ;;  %s2726_s21 = sphi %s2858_s21, %s3396_s21  }
  0x13   : > { %3363 = sst [smem:[#allocation21_spill]] %s2734_s23  ;;  %s2170_s28 = sadd.s32 4294967294, %s2746_s26  }
  0x14   : > { %3364 = sst [smem:[#allocation22_spill]] %s2742_s25  ;;  %s48_s29 = sadd.s32 1, %s2742_s25 }
  0x15   : > { %3365 = sst [smem:[#allocation23_spill]] %s2746_s26  ;;  %s377_s30 = sadd.s32 1, %s2734_s23 }
  0x16   : > { %p50_p0 = scmp.ge.s32.totalorder %s48_s29, 2  ;;  %p387_p1 = scmp.ne.s32.totalorder %s2734_s23, %s2730_s22 }
  0x17   : > { %p388_p2 = scmp.eq.s32.totalorder %s2169_s27, 1  ;;  %p393_p3 = scmp.ne.s32.totalorder %s2730_s22, %s2726_s21 }
  0x18   : > { %s3399_s29 = smov (%p50_p0, %s48_s29), 0  ;;  %p394_p5 = scmp.eq.s32.totalorder %s2170_s28, 1 }
  0x19   : > { %3366 = sst [smem:[#allocation24_spill]] %s3399_s29  ;;  %p2898_p4 = por %p388_p2, %p387_p1 }
  0x1a   : > { %s372_s17 = ssub.s32 %s2742_s25, %s3399_s29  ;;  %p2171_p6 = scmp.ge.s32.totalorder %s2746_s26, 1 }
  0x1b   : > { %s3367_s0 = scalar_select %p2898_p4, 1, 0 }
  0x1c   : > { %p375_p7 = scmp.eq.s32.totalorder %s372_s17, 0  ;;  %p2905_p8 = por %p394_p5, %p393_p3 }
  0x1d   : > { %3368 = sst [smem:[#allocation25_spill]] %s3367_s0  ;;  %p429_p9 = scmp.lt.s32.totalorder %s2746_s26, 3 }
  0x1e   : > { %s3369_s18 = scalar_select %p2905_p8, 1, 0 }
  0x1f   : > { %s2911_s19 = scalar_select %p375_p7, %s2734_s23, %s377_s30  }
  0x20   : > { %3370 = sst [smem:[#allocation26_spill]] %s3369_s18  ;;  %p2913_p10 = pnand %p2171_p6, %p429_p9 }
  0x21   : > { %3371 = sst [smem:[#allocation27_spill]] %s2911_s19  ;;  %p2917_p11 = scmp.eq.s32.totalorder %s2169_s27, 0 }
  0x22   : > { %s3372_s20 = scalar_select %p2913_p10, 1, 0 }
  0x23   : > { %s3373_s21 = scalar_select %p2917_p11, 1, 0 }
  0x24   : > { %p2380_p12 = pneg %p2913_p10  ;;  %s2748_s28 = smov [#allocation7]  }
  0x25   : > { %s467_s17 = sshll.u32 %s2748_s28, 4  ;;  %s2749_s30 = smov [#allocation4]   ;;  %s468_s17 = int_to_ptr.vmem [resolvable:$true] %s467_s17 }
  0x26   : > { %p2925_p13 = pnand %p2917_p11, %p2380_p12  ;;  %s453_s25 = sshll.u32 %s2749_s30, 4  ;;  %s2929_s25 = int_to_ptr.vmem [resolvable:$true] %s453_s25 }
  0x27   : > { %s3375_s6 = sld [smem:[#allocation29_spill]] }
  0x28   : > { %p2939_p1 = pneg %p2925_p13 }
  0x2d   : > { %s2512_s23 = scalar_lea.hbm %s3375_s6, 16 }
  0x2e   : > { %p2513_p0 = scmp.ne.s32.totalorder %s3375_s6, %s2512_s23  ;;  %p2519_p5 = scmp.lt.u32.totalorder %s2512_s23, %s3375_s6 }
  0x30   : > { %p2515_p2 = pnand %p2939_p1, %p2513_p0 }
  0x32   : > { %p2516_p3 = pneg %p2515_p2 }
  0x34   : > { %p2521_p6 = pnand %p2519_p5, %p2516_p3 }
  0x36   : > { %2524 = shalt.err (!%p2521_p6)
}
  0x37   : > { %s2525_s19 = scalar_lea.vmem %s468_s17, 16  ;;  %s2532_s26 = scalar_lea.vmem %s468_s17, 32 }
  0x38   : > { %p2526_p7 = scmp.ne.s32.totalorder %s468_s17, %s2525_s19  ;;  %p2533_p8 = scmp.lt.s32.totalorder %s468_s17, %s468_s17 }
  0x39   : > { %p2534_p4 = scmp.lt.s32.totalorder %s2532_s26, %s2525_s19 }
  0x3a   : > { %p2528_p9 = pnand %p2526_p7, %p2939_p1 }
  0x3b   : > { %p2535_p11 = por %p2534_p4, %p2533_p8 }
  0x3c   : > { %p2529_p12 = pneg %p2528_p9 }
  0x3e   : > { %p2536_p10 = pnand %p2535_p11, %p2529_p12 }
  0x40   : > { %2539 = shalt.err (!%p2536_p10)
}
  0x41   : > { %2386 = dma.hbm_to_vmem [thread:$0]  (!%p2925_p13), %s3375_s6, 16, %s468_s17, [#allocation8]  }
  0x42   : > { %s2540_s30 = scalar_lea.hbm %s3327_s5, 256 }
  0x43   : > { %p2541_p0 = scmp.ne.s32.totalorder %s3327_s5, %s2540_s30  ;;  %p2547_p8 = scmp.lt.u32.totalorder %s2540_s30, %s3327_s5 }
  0x45   : > { %p2543_p2 = pnand %p2541_p0, %p2939_p1 }
  0x47   : > { %p2544_p4 = pneg %p2543_p2 }
  0x49   : > { %p2549_p10 = pnand %p2547_p8, %p2544_p4 }
  0x4b   : > { %2552 = shalt.err (!%p2549_p10)
}
  0x4c   : > { %s2553_s17 = scalar_lea.vmem %s2929_s25, 256  ;;  %p2561_p6 = scmp.lt.s32.totalorder %s2929_s25, %s2929_s25 }
  0x4d   : > { %p2554_p11 = scmp.ne.s32.totalorder %s2929_s25, %s2553_s17  ;;  %p2562_p7 = scmp.lt.s32.totalorder %s2553_s17, %s2553_s17 }
  0x4f   : > { %p2556_p3 = pnand %p2554_p11, %p2939_p1  ;;  %p2563_p9 = por %p2562_p7, %p2561_p6 }
  0x51   : > { %p2557_p5 = pneg %p2556_p3 }
  0x53   : > { %p2564_p12 = pnand %p2563_p9, %p2557_p5 }
  0x55   : > { %2567 = shalt.err (!%p2564_p12)
}
  0x56   : > { %s2750_s13 = smov 64   ;;  %s2751_s14 = smov 4  }
  0x57   : > { %2383 = dma.hbm_to_vmem [thread:$0]  (!%p2925_p13), %s3327_s5, 256, %s2929_s25, [#allocation5], %s2750_s13, %s2750_s13, %s2751_s14  }
  0x58   : > { %s2752_s15 = smov [#allocation9]   ;;  %s2753_s30 = smov [#allocation10]  }
  0x59   : > { %s478_s23 = sshll.u32 %s2752_s15, 4  ;;  %s489_s19 = sshll.u32 %s2753_s30, 4  ;;  %s479_s23 = int_to_ptr.vmem [resolvable:$true] %s478_s23  ;;  %s490_s19 = int_to_ptr.vmem [resolvable:$true] %s489_s19 }
  0x5a   : > { %s2568_s6 = scalar_lea.hbm %s3329_s7, 16 }
  0x5b   : > { %p2569_p0 = scmp.ne.s32.totalorder %s3329_s7, %s2568_s6  ;;  %p2575_p8 = scmp.lt.u32.totalorder %s2568_s6, %s3329_s7 }
  0x5d   : > { %p2571_p2 = pnand %p2569_p0, %p2939_p1 }
  0x5f   : > { %p2572_p4 = pneg %p2571_p2 }
  0x61   : > { %p2577_p10 = pnand %p2575_p8, %p2572_p4 }
  0x63   : > { %2580 = shalt.err (!%p2577_p10)
}
  0x64   : > { %s2581_s25 = scalar_lea.vmem %s479_s23, 16  ;;  %s2588_s13 = scalar_lea.vmem %s479_s23, 32 }
  0x65   : > { %p2582_p11 = scmp.ne.s32.totalorder %s479_s23, %s2581_s25  ;;  %p2589_p6 = scmp.lt.s32.totalorder %s479_s23, %s479_s23 }
  0x66   : > { %p2590_p7 = scmp.lt.s32.totalorder %s2588_s13, %s2581_s25 }
  0x67   : > { %p2584_p3 = pnand %p2582_p11, %p2939_p1 }
  0x68   : > { %p2591_p9 = por %p2590_p7, %p2589_p6 }
  0x69   : > { %p2585_p5 = pneg %p2584_p3 }
  0x6b   : > { %p2592_p12 = pnand %p2591_p9, %p2585_p5 }
  0x6d   : > { %2595 = shalt.err (!%p2592_p12)
}
  0x6e   : > { %2389 = dma.hbm_to_vmem [thread:$0]  (!%p2925_p13), %s3329_s7, 16, %s479_s23, [#allocation8]  }
  0x6f   : > { %s2596_s12 = scalar_lea.hbm %s3330_s8, 16 }
  0x70   : > { %p2597_p0 = scmp.ne.s32.totalorder %s3330_s8, %s2596_s12  ;;  %p2603_p8 = scmp.lt.u32.totalorder %s2596_s12, %s3330_s8 }
  0x72   : > { %p2599_p2 = pnand %p2597_p0, %p2939_p1 }
  0x74   : > { %p2600_p4 = pneg %p2599_p2 }
  0x76   : > { %p2605_p10 = pnand %p2603_p8, %p2600_p4 }
  0x78   : > { %2608 = shalt.err (!%p2605_p10)
}
  0x79   : > { %s2609_s30 = scalar_lea.vmem %s490_s19, 16  ;;  %s2616_s23 = scalar_lea.vmem %s490_s19, 32 }
  0x7a   : > { %p2610_p11 = scmp.ne.s32.totalorder %s490_s19, %s2609_s30  ;;  %p2617_p6 = scmp.lt.s32.totalorder %s490_s19, %s490_s19 }
  0x7b   : > { %p2618_p7 = scmp.lt.s32.totalorder %s2616_s23, %s2609_s30 }
  0x7c   : > { %p2612_p3 = pnand %p2610_p11, %p2939_p1 }
  0x7d   : > { %p2619_p9 = por %p2618_p7, %p2617_p6 }
  0x7e   : > { %p2613_p5 = pneg %p2612_p3 }
  0x80   : > { %p2620_p12 = pnand %p2619_p9, %p2613_p5 }
  0x82   : > { %2623 = shalt.err (!%p2620_p12)
}
  0x83   : > { %2392 = dma.hbm_to_vmem [thread:$0]  (!%p2925_p13), %s3330_s8, 16, %s490_s19, [#allocation11]  }
  0x84   : > { %p3377_p0 = scmp.ne.s32.totalorder %s3372_s20, 0 }
  0x85   : > { %p3378_p2 = scmp.ne.s32.totalorder (!%p3377_p0), %s3373_s21, 0 }
  0x86   : > { %527 = sbr.rel (%p3377_p0) target bundleno = 2840 (0xb18), region = 80 }
  0x8d   : > { %2705 = dma.done.wait (%p3378_p2), [#allocation5], 256  }
  0x8e   : > { %2707 = vsyncadd (%p3378_p2), [#allocation5], 4294967040 }
  0x8f   : > { %2709 = dma.done.wait (%p3378_p2), [#allocation8], 32  }
  0x90   : > { %2711 = vsyncadd (%p3378_p2), [#allocation8], 4294967264 }
  0x91   : > { %2713 = dma.done.wait (%p3378_p2), [#allocation11], 16  }
  0x92   : > { %2715 = vsyncadd (%p3378_p2), [#allocation11], 4294967280  ;;  %p593_p13 = scmp.lt.s32.totalorder %s2738_s24, 1  ;;  %v2754_v0 = vmov 0.0   ;;  %vm2755_vm0 = vmmov 0   ;;  %s3379_s19 = sld [smem:[#allocation28_spill]]  ;;  %v798_v25 = vlaneseq }
  0x93   : > { %2268 = vmatprep.subr.bf16.mxu1 %v2754_v0  ;;  %2272 = vmatprep.mubr.msk.bf16.mxu1 %vm2755_vm0, %v2754_v0  ;;  %v2480_v1 = vld [vmem:[%s3325_s3] sm:$0xff]   ;;  %v2481_v2 = vld [vmem:[%s3325_s3 + $0x8] sm:$0xff]   ;;  %vm628_vm1 = vcmask 261120   ;;  %vm673_vm2 = vcmask 60416   ;;  %vm935_vm3 = vcmask 64512   ;;  %s2756_s26 = smov 104  }
  0x94   : > { %s594_s29 = scalar_select %p593_p13, %s2738_s24, 1  ;;  %2284 = vmatprep.subr.bf16.mxu0 %v2754_v0  ;;  %2286 = vmatprep.mubr.msk.bf16.mxu0 %vm2755_vm0, %v2754_v0  ;;  %v2482_v4 = vld [vmem:[%s3323_s1] sm:$0xff]   ;;  %v2483_v6 = vld [vmem:[%s3323_s1 + $0x8] sm:$0xff]   ;;  %v2759_v23 = vmov 1983009808   ;;  %v799_v29 = vshrl.u32 %v798_v25, 7 }
  0x95   : > { %2269 = vmatpush3.bf16.msra.mxu1 %v2480_v1  ;;  %v2185_v7 = vld [vmem:[%s3326_s4] ss:$0 sm:$0xff]  ;;  %s2757_s17 = smov 120   ;;  %v796_v24 = vunpack.c.l.s4 %v2759_v23  ;;  %v2760_v26 = vmov 1934713408   ;;  %s2763_s28 = smov 80  }
  0x96   : > { %s2184_s20 = sshll.u32 %s594_s29, 3  ;;  %2270 = vmatprep.subr.bf16.mxu1 %v2754_v0  ;;  %v2190_v14 = vld [vmem:[%s3324_s2] ss:$0 sm:$0xff]  ;;  %s2758_s29 = smov 112   ;;  %v828_v27 = vunpack.c.l.s4 %v2760_v26  ;;  %vm1702_vm4 = vcmask 130048   ;;  %vm1704_vm5 = vcmask 195584  }
  0x97   : > { %v797_v28 = vunpack.c.0.s8 %v796_v24  ;;  %s2764_s21 = smov 72   ;;  %s2766_s0 = smov 16   ;;  %vm1912_vm6 = vcmask 523264  }
  0x98   : > { %s596_s25 = scalar_lea.vmem %s3379_s19, %s2184_s20  ;;  %v829_v32 = vunpack.c.0.s8 %v828_v27  ;;  %s2762_s20 = smov 96  }
  0x99   : > { %v3045_v3 = vld [vmem:[%s596_s25] sm:$0xff]  ;;  %2271 = vmatpush3.bf16.msra.mxu1 %v2481_v2  ;;  %v3080_v33 = vsub.s32 %v797_v28, %v799_v29  ;;  %s2765_s19 = smov 88   ;;  %s3140_s25 = sand.u32 1, %s2730_s22  }
  0x9a   : > { %v604_v5 = vpack.c.bf16 %v3045_v3, %v3045_v3  ;;  %2276 = vmatprep.subr.bf16.mxu1 %v2754_v0  ;;  %v3083_v40 = vsub.s32 %v829_v32, %v799_v29  ;;  %s2183_s13 = sshll.u32 %s3140_s25, 4  ;;  %s2767_s6 = smov 8  }
  0x9b   : > { %s3144_s16 = scalar_lea.vmem [#allocation13], %s2183_s13  ;;  %s2768_s10 = smov 24  }
  0x9c   : > { %2273 = vmatmul.mubr.msk.bf16.vlgmr.msra.gmra.mrb[0].mxu1 %vm628_vm1, %v604_v5  ;;  %s3380_s13 = sld [smem:[#allocation30_spill]]  ;;  %s3382_s12 = sld [smem:[#allocation25_spill]] }
  0x9d   : > { %2277 = vmatpush3.bf16.msra.mxu1 %v2482_v4  ;;  %2280 = vmatprep.mubr.msk.bf16.mxu1 %vm2755_vm0, %v2754_v0  ;;  %s2021_s14 = sshll.u32 %s3144_s16, 4  ;;  %s2234_s18 = sshll.u32 %s2738_s24, 8  ;;  %s3231_s14 = int_to_ptr.vmem [resolvable:$true] %s2021_s14 }
  0x9e   : > { %2278 = vmatprep.subr.bf16.mxu1 %v2754_v0  ;;  %s3383_s30 = sld [smem:[#allocation35_spill]] }
  0xa1   : > { %2279 = vmatpush3.bf16.msra.mxu1 %v2483_v6 }
  0xa2   : > { %2290 = vmatprep.subr.bf16.mxu1 %v2754_v0  ;;  %p3384_p4 = scmp.ne.s32.totalorder %s3382_s12, 0 }
  0xa4   : > { %2281 = vmatmul.mubr.msk.bf16.vlgmr.msra.gmra.mrb[4].mxu1 %vm628_vm1, %v604_v5  ;;  %s3236_s23 = scalar_lea.hbm %s3383_s30, %s2234_s18 }
  0xa5   : > { %2292 = vmatprep.mubr.msk.bf16.mxu1 %vm2755_vm0, %v2754_v0 }
 0x16f   : > { %v666_v8 = vpop.f32.mrb[0].mxu1 }
 0x170   : > { %v667_v9 = vadd.f32 %v2185_v7, %v666_v8  ;;  %v2274_v10 = vpop.f32.mrb[1].mxu1 }
 0x171   : > { %v669_v11 = vpop.f32.mrb[2].mxu1 }
 0x172   : > { %v3068_v12 = vpack.c.bf16 %v667_v9, %v667_v9  ;;  %v2275_v13 = vpop.f32.mrb[3].mxu1 }
 0x174   : > { %674 = vst.msk [vmem:[#allocation2] sm:$0xf] %vm673_vm2, %v3068_v12 }
 0x177   : > { %v776_v15 = vpop.f32.mrb[4].mxu1 }
 0x178   : > { %v777_v16 = vadd.f32 %v2190_v14, %v776_v15  ;;  %v2282_v17 = vpop.f32.mrb[5].mxu1 }
 0x179   : > { %v779_v18 = vpop.f32.mrb[6].mxu1 }
 0x17a   : > { %v782_v19 = vmul.f32 0.35355338, %v777_v16  ;;  %v2283_v20 = vpop.f32.mrb[7].mxu1 }
 0x17b   : > { %v869_v21 = vld [vmem:[#allocation2] sm:$0xf] }
 0x17c   : > { %790 = vrot.lane.b32.xlu1 %v782_v19, %s2756_s26  ;;  %784 = vrot.lane.b32.xlu0 %v782_v19, %s2757_s17  ;;  %v940_v22 = vsel %vm935_vm3, %v869_v21, 0 }
 0x17d   : > { %2285 = vmatpush3.bf16.xpose.msra.mxu0 %v940_v22 }
 0x17e   : > { %2296 = vmatprep.subr.bf16.mxu0 %v2754_v0 }
 0x180   : > { %682 = vrot.lane.b32.xlu1 %v3068_v12, %s2757_s17  ;;  %787 = vrot.lane.b32.xlu0 %v782_v19, %s2758_s29  ;;  %s2624_s17 = scalar_lea.vmem %s3231_s14, 256 }
 0x181   : > { %p2625_p1 = scmp.ne.s32.totalorder %s3231_s14, %s2624_s17 }
 0x183   : > { %p2626_p8 = pnand %p2625_p1, %p3384_p4 }
 0x184   : > { %702 = vrot.lane.b32.xlu1 %v3068_v12, %s2756_s26  ;;  %692 = vrot.lane.b32.xlu0 %v3068_v12, %s2758_s29  ;;  %s1993_s26 = scalar_lea.sflag [#allocation14], %s3140_s25  ;;  %s2769_s29 = smov [#allocation13]  }
 0x185   : > { %p2627_p10 = pneg %p2626_p8 }
 0x1ee   : > { %v791_v30 = vpop.permute.xlu1 %790  ;;  %v785_v31 = vpop.permute.xlu0 %784 }
 0x1ef   : > { %v809_v34 = vcombine.low %v785_v31, %v791_v30  ;;  %v810_v35 = vcombine.high %v785_v31, %v791_v30 }
 0x1f1   : > { %v817_v41 = vrot.slane %v809_v34, %v3080_v33  ;;  %v824_v42 = vrot.slane %v810_v35, %v3080_v33 }
 0x1f2   : > { %v683_v36 = vpop.permute.xlu1 %682  ;;  %v788_v37 = vpop.permute.xlu0 %787 }
 0x1f3   : > { %686 = vst.msk [vmem:[#allocation2 + $0x4] sm:$0xf] %vm673_vm2, %v683_v36  ;;  %v793_v38 = vcombine.low %v782_v19, %v788_v37  ;;  %v794_v39 = vcombine.high %v782_v19, %v788_v37  ;;  %v2761_v19 = vmov 0  }
 0x1f5   : > { %v801_v43 = vrot.slane %v793_v38, %v3080_v33  ;;  %v808_v44 = vrot.slane %v794_v39, %v3080_v33 }
 0x1f6   : > { %v703_v45 = vpop.permute.xlu1 %702  ;;  %v693_v46 = vpop.permute.xlu0 %692 }
 0x1f7   : > { %v825_v47 = vcombine.low %v801_v43, %v817_v41  ;;  %v826_v48 = vcombine.high %v801_v43, %v817_v41  ;;  %v841_v49 = vcombine.low %v808_v44, %v824_v42  ;;  %v842_v50 = vcombine.high %v808_v44, %v824_v42  ;;  %706 = vst.msk [vmem:[#allocation2 + $0xc] sm:$0xf] %vm673_vm2, %v703_v45 }
 0x1f8   : > { %696 = vst.msk [vmem:[#allocation2 + $0x8] sm:$0xf] %vm673_vm2, %v693_v46 }
 0x1f9   : > { %v833_v51 = vrot.slane %v825_v47, %v3083_v40  ;;  %v840_v52 = vrot.slane %v826_v48, %v3083_v40  ;;  %v849_v53 = vrot.slane %v841_v49, %v3083_v40  ;;  %v856_v54 = vrot.slane %v842_v50, %v3083_v40 }
 0x1fa   : > { %v870_v55 = vld [vmem:[#allocation2 + $0x4] sm:$0xf] }
 0x1fb   : > { %v857_v56 = vcombine.high %v833_v51, %v2754_v0  ;;  %v858_v57 = vcombine.high %v840_v52, %v2754_v0  ;;  %v859_v58 = vcombine.high %v849_v53, %v2754_v0  ;;  %v860_v59 = vcombine.high %v856_v54, %v2754_v0 }
 0x1fc   : > { %v2194_v60 = vpack.c.bf16 %v849_v53, %v833_v51  ;;  %v2195_v61 = vpack.c.bf16 %v856_v54, %v840_v52  ;;  %v986_v62 = vsel %vm935_vm3, %v870_v55, 0 }
 0x1fd   : > { %v2196_v63 = vpack.c.bf16 %v859_v58, %v857_v56  ;;  %v2197_v1 = vpack.c.bf16 %v860_v59, %v858_v57  ;;  %2291 = vmatpush3.bf16.xpose.msra.mxu1 %v986_v62 }
 0x1fe   : > { %v880_v2 = vrot.slane %v2194_v60, %v3080_v33  ;;  %v888_v4 = vrot.slane %v2195_v61, %v3080_v33  ;;  %2302 = vmatprep.subr.bf16.mxu1 %v2754_v0  ;;  %v872_v16 = vld [vmem:[#allocation2 + $0xc] sm:$0xf] }
 0x1ff   : > { %v905_v5 = vrot.slane %v2196_v63, %v3080_v33  ;;  %v913_v6 = vrot.slane %v2197_v1, %v3080_v33  ;;  %v871_v11 = vld [vmem:[#allocation2 + $0x8] sm:$0xf]  ;;  %v1078_v21 = vsel %vm935_vm3, %v872_v16, 0 }
 0x200   : > { %v889_v7 = vcombine.low %v880_v2, %v888_v4  ;;  %v1032_v17 = vsel %vm935_vm3, %v871_v11, 0 }
 0x201   : > { %v914_v8 = vcombine.low %v905_v5, %v913_v6 }
 0x202   : > { %v896_v9 = vrot.slane %v889_v7, %v3083_v40 }
 0x203   : > { %v921_v10 = vrot.slane %v914_v8, %v3083_v40 }
 0x204   : > { %v926_v14 = vshrl.u32 %v896_v9, 16  ;;  %v897_v22 = vcombine.high %v896_v9, %v2761_v19 }
 0x205   : > { %v925_v13 = vpack.i.b16 %v921_v10, %v896_v9  ;;  %v927_v15 = vshrl.u32 %v921_v10, 16  ;;  %v922_v20 = vcombine.high %v921_v10, %v2761_v19 }
 0x206   : > { %v932_v25 = vshrl.u32 %v897_v22, 16 }
 0x207   : > { %2287 = vmatmul.mubr.msk.bf16.vlgmr.msra.gmra.mrb[0].mxu0 %vm935_vm3, %v925_v13  ;;  %v928_v18 = vpack.i.b16 %v927_v15, %v926_v14  ;;  %v933_v23 = vshrl.u32 %v922_v20, 16  ;;  %v931_v24 = vpack.i.b16 %v922_v20, %v897_v22 }
 0x208   : > { %2297 = vmatpush3.bf16.xpose.msra.mxu0 %v1032_v17  ;;  %2298 = vmatprep.mubr.msk.bf16.mxu0 %vm2755_vm0, %v2754_v0 }
 0x209   : > { %2293 = vmatmul.mubr.msk.bf16.vlgmr.msra.gmra.mrb[8].mxu1 %vm935_vm3, %v928_v18  ;;  %2308 = vmatprep.subr.bf16.mxu0 %v2754_v0  ;;  %v934_v26 = vpack.i.b16 %v933_v23, %v932_v25 }
 0x20a   : > { %2303 = vmatpush3.bf16.xpose.msra.mxu1 %v1078_v21  ;;  %2304 = vmatprep.mubr.msk.bf16.mxu1 %vm2755_vm0, %v2754_v0 }
 0x20b   : > { %2314 = vmatprep.subr.bf16.mxu1 %v2754_v0 }
 0x20f   : > { %2299 = vmatmul.mubr.msk.bf16.vlgmr.msra.gmra.mrb[4].mxu0 %vm935_vm3, %v931_v24 }
 0x210   : > { %2310 = vmatprep.mubr.msk.bf16.mxu0 %vm2755_vm0, %v2754_v0 }
 0x211   : > { %2305 = vmatmul.mubr.msk.bf16.vlgmr.msra.gmra.mrb[12].mxu1 %vm935_vm3, %v934_v26 }
 0x212   : > { %2316 = vmatprep.mubr.msk.bf16.mxu1 %vm2755_vm0, %v2754_v0 }
 0x2da   : > { %v976_v27 = vpop.f32.mrb[0].mxu0 }
 0x2db   : > { %v2288_v28 = vpop.f32.mrb[1].mxu0  ;;  %v1120_v29 = vsel %vm935_vm3, %v976_v27, -inf }
 0x2dc   : > { %1121 = vmax.xlane.f32.xlu0 %v1120_v29  ;;  %v979_v30 = vpop.f32.mrb[2].mxu0  ;;  %v1022_v31 = vpop.f32.mrb[8].mxu1 }
 0x2dd   : > { %v2289_v32 = vpop.f32.mrb[3].mxu0  ;;  %v2294_v34 = vpop.f32.mrb[9].mxu1  ;;  %v1123_v35 = vsel %vm935_vm3, %v1022_v31, -inf }
 0x2de   : > { %1124 = vmax.xlane.f32.xlu1 %v1123_v35  ;;  %v1025_v36 = vpop.f32.mrb[10].mxu1 }
 0x2df   : > { %v2295_v37 = vpop.f32.mrb[11].mxu1 }
 0x2e2   : > { %v1068_v38 = vpop.f32.mrb[4].mxu0 }
 0x2e3   : > { %v2300_v39 = vpop.f32.mrb[5].mxu0  ;;  %v1126_v41 = vsel %vm935_vm3, %v1068_v38, -inf }
 0x2e4   : > { %1127 = vmax.xlane.f32.xlu0 %v1126_v41  ;;  %v1071_v42 = vpop.f32.mrb[6].mxu0  ;;  %v1114_v43 = vpop.f32.mrb[12].mxu1 }
 0x2e5   : > { %v2301_v44 = vpop.f32.mrb[7].mxu0  ;;  %v2306_v45 = vpop.f32.mrb[13].mxu1  ;;  %v1129_v48 = vsel %vm935_vm3, %v1114_v43, -inf }
 0x2e6   : > { %v1117_v46 = vpop.f32.mrb[14].mxu1 }
 0x2e7   : > { %v2307_v47 = vpop.f32.mrb[15].mxu1 }
 0x2e8   : > { %1130 = vmax.xlane.f32.xlu0 %v1129_v48 }
 0x2ef   : > { %678 = vrot.lane.b32.xlu1 %v3068_v12, %s2762_s20  ;;  %s2628_s20 = sshll.u32 %s2769_s29, 4  ;;  %s2629_s20 = int_to_ptr.vmem [resolvable:$false] %s2628_s20 }
 0x2f0   : > { %p2631_p11 = scmp.lt.s32.totalorder %s3231_s14, %s2629_s20 }
 0x2f3   : > { %697 = vrot.lane.b32.xlu1 %v3068_v12, %s2763_s28 }
 0x2f7   : > { %707 = vrot.lane.b32.xlu1 %v3068_v12, %s2764_s21 }
 0x2fe   : > { %687 = vrot.lane.b32.xlu0 %v3068_v12, %s2765_s19 }
 0x369   : > { %v1122_v49 = vpop.xlane.xlu0 %1121 }
 0x36a   : > { %v1132_v50 = vsub.f32 %v976_v27, %v1122_v49 }
 0x36b   : > { %v1125_v51 = vpop.xlane.xlu1 %1124 }
 0x36c   : > { %v1136_v52 = vmul.f32 1.442695, %v1132_v50  ;;  %v1133_v53 = vsub.f32 %v1022_v31, %v1125_v51 }
 0x36e   : > { %2492 = vpow2.f32 %v1136_v52  ;;  %v1138_v54 = vmul.f32 1.442695, %v1133_v53 }
 0x36f   : > { %v679_v55 = vpop.permute.xlu1 %678 }
 0x370   : > { %2494 = vpow2.f32 %v1138_v54  ;;  %681 = vst.msk [vmem:[#allocation3] sm:$0xf] %vm673_vm2, %v679_v55 }
 0x371   : > { %v1128_v56 = vpop.xlane.xlu0 %1127 }
 0x372   : > { %v1134_v57 = vsub.f32 %v1068_v38, %v1128_v56 }
 0x373   : > { %v698_v58 = vpop.permute.xlu1 %697 }
 0x374   : > { %v1140_v59 = vmul.f32 1.442695, %v1134_v57  ;;  %701 = vst.msk [vmem:[#allocation3 + $0x8] sm:$0xf] %vm673_vm2, %v698_v58 }
 0x375   : > { %v1131_v60 = vpop.xlane.xlu0 %1130 }
 0x376   : > { %2496 = vpow2.f32 %v1140_v59  ;;  %v1135_v12 = vsub.f32 %v1114_v43, %v1131_v60 }
 0x377   : > { %v708_v61 = vpop.permute.xlu1 %707  ;;  %v1173_v10 = vld [vmem:[#allocation3] sm:$0xf] }
 0x378   : > { %v2493_v62 = vpop.eup %2492  ;;  %v1142_v63 = vmul.f32 1.442695, %v1135_v12  ;;  %711 = vst.msk [vmem:[#allocation3 + $0xc] sm:$0xf] %vm673_vm2, %v708_v61 }
 0x379   : > { %v688_v1 = vpop.permute.xlu0 %687  ;;  %v1144_v2 = vsel %vm935_vm3, %v2493_v62, 0.0 }
 0x37a   : > { %v2495_v4 = vpop.eup %2494  ;;  %2498 = vpow2.f32 %v1142_v63  ;;  %691 = vst.msk [vmem:[#allocation3 + $0x4] sm:$0xf] %vm673_vm2, %v688_v1  ;;  %1145 = vadd.xlane.f32.xlu0 %v1144_v2 }
 0x37b   : > { %v1147_v5 = vsel %vm935_vm3, %v2495_v4, 0.0  ;;  %v1175_v11 = vld [vmem:[#allocation3 + $0x8] sm:$0xf] }
 0x37c   : > { %1148 = vadd.xlane.f32.xlu1 %v1147_v5 }
 0x37f   : > { %v1176_v14 = vld [vmem:[#allocation3 + $0xc] sm:$0xf] }
 0x380   : > { %v2497_v6 = vpop.eup %2496 }
 0x381   : > { %v1150_v7 = vsel %vm935_vm3, %v2497_v6, 0.0  ;;  %v1174_v13 = vld [vmem:[#allocation3 + $0x4] sm:$0xf] }
 0x382   : > { %1151 = vadd.xlane.f32.xlu0 %v1150_v7 }
 0x384   : > { %v2499_v8 = vpop.eup %2498 }
 0x385   : > { %v1153_v9 = vsel %vm935_vm3, %v2499_v8, 0.0 }
 0x386   : > { %1154 = vadd.xlane.f32.xlu0 %v1153_v9 }
 0x3a9   : > { %1177 = vxpose.xlu1.c.b16.start.end [1/1] (short) (narrow) %v1173_v10, 16  ;;  %v2484_v10 = vld [vmem:[#allocation4] sm:$0xff]  }
 0x3ad   : > { %1301 = vxpose.xlu1.c.b16.start.end [1/1] (short) (narrow) %v1175_v11, 16 }
 0x3b3   : > { %1239 = vxpose.xlu0.c.b16.start.end [1/1] (short) (narrow) %v1174_v13, 16 }
 0x3b7   : > { %1363 = vxpose.xlu0.c.b16.start.end [1/1] (short) (narrow) %v1176_v14, 16 }
 0x407   : > { %v1146_v15 = vpop.xlane.xlu0 %1145 }
 0x408   : > { %2500 = vrcp.f32 %v1146_v15 }
 0x409   : > { %v1149_v16 = vpop.xlane.xlu1 %1148 }
 0x40a   : > { %2502 = vrcp.f32 %v1149_v16 }
 0x40f   : > { %v1152_v17 = vpop.xlane.xlu0 %1151  ;;  %v1185_v29 = vpop.trf.xlu1 }
 0x410   : > { %2504 = vrcp.f32 %v1152_v17 }
 0x412   : > { %v2501_v18 = vpop.eup %2500 }
 0x413   : > { %v1155_v19 = vpop.xlane.xlu0 %1154  ;;  %v1160_v20 = vmul.f32 %v2501_v18, %v2493_v62  ;;  %v1309_v38 = vpop.trf.xlu1 }
 0x414   : > { %v2503_v21 = vpop.eup %2502  ;;  %2506 = vrcp.f32 %v1155_v19 }
 0x415   : > { %v1164_v22 = vpack.c.bf16 %v1160_v20, %v1160_v20  ;;  %v1161_v23 = vmul.f32 %v2503_v21, %v2495_v4  ;;  %v2485_v20 = vld [vmem:[#allocation4 + $0x8] sm:$0xff]  }
 0x417   : > { %v1197_v24 = vsel %vm935_vm3, %v1164_v22, 0  ;;  %v1165_v25 = vpack.c.bf16 %v1161_v23, %v1161_v23  ;;  %1169 = vst.msk [vmem:[%s3144_s16] sm:$0xf] %vm673_vm2, %v1164_v22 }
 0x418   : > { %2309 = vmatpush3.bf16.xpose.msra.mxu0 %v1197_v24 }
 0x419   : > { %v1259_v26 = vsel %vm935_vm3, %v1165_v25, 0  ;;  %2320 = vmatprep.subr.bf16.mxu0 %v2754_v0  ;;  %1170 = vst.msk [vmem:[%s3144_s16 + $0x4] sm:$0xf] %vm673_vm2, %v1165_v25  ;;  %v1247_v32 = vpop.trf.xlu0 }
 0x41a   : > { %v2505_v27 = vpop.eup %2504  ;;  %2315 = vmatpush3.bf16.xpose.msra.mxu1 %v1259_v26 }
 0x41b   : > { %v1162_v28 = vmul.f32 %v2505_v27, %v2497_v6  ;;  %2326 = vmatprep.subr.bf16.mxu1 %v2754_v0 }
 0x41d   : > { %v1166_v30 = vpack.c.bf16 %v1162_v28, %v1162_v28  ;;  %v1371_v39 = vpop.trf.xlu0 }
 0x41e   : > { %v2507_v31 = vpop.eup %2506 }
 0x41f   : > { %2311 = vmatmul.mubr.msk.bf16.vlgmr.msra.gmra.mrb[8].mxu0 %vm935_vm3, %v1185_v29  ;;  %v1321_v34 = vsel %vm935_vm3, %v1166_v30, 0  ;;  %v1163_v35 = vmul.f32 %v2507_v31, %v2499_v8  ;;  %1171 = vst.msk [vmem:[%s3144_s16 + $0x8] sm:$0xf] %vm673_vm2, %v1166_v30 }
 0x420   : > { %2321 = vmatpush3.bf16.xpose.msra.mxu0 %v1321_v34  ;;  %2322 = vmatprep.mubr.msk.bf16.mxu0 %vm2755_vm0, %v2754_v0 }
 0x421   : > { %2317 = vmatmul.mubr.msk.bf16.vlgmr.msra.gmra.mrb[16].mxu1 %vm935_vm3, %v1247_v32  ;;  %v1167_v36 = vpack.c.bf16 %v1163_v35, %v1163_v35  ;;  %2332 = vmatprep.subr.bf16.mxu0 %v2754_v0 }
 0x422   : > { %2328 = vmatprep.mubr.msk.bf16.mxu1 %vm2755_vm0, %v2754_v0 }
 0x423   : > { %v1383_v37 = vsel %vm935_vm3, %v1167_v36, 0  ;;  %1172 = vst.msk [vmem:[%s3144_s16 + $0xc] sm:$0xf] %vm673_vm2, %v1167_v36  ;;  %s2630_s16 = scalar_lea.vmem %s2629_s20, 512 }
 0x424   : > { %2327 = vmatpush3.bf16.xpose.msra.mxu1 %v1383_v37  ;;  %p2632_p3 = scmp.lt.s32.totalorder %s2630_s16, %s2624_s17 }
 0x425   : > { %2340 = vmatprep.subr.bf16.mxu1 %v2754_v0 }
 0x426   : > { %p2633_p5 = por %p2632_p3, %p2631_p11 }
 0x427   : > { %2323 = vmatmul.mubr.msk.bf16.vlgmr.msra.gmra.mrb[12].mxu0 %vm935_vm3, %v1309_v38 }
 0x428   : > { %2336 = vmatprep.mubr.msk.bf16.mxu0 %vm2755_vm0, %v2754_v0  ;;  %2333 = vmatpush3.bf16.msra.mxu0 %v2484_v10  ;;  %p2634_p6 = pnand %p2633_p5, %p2627_p10 }
 0x429   : > { %2334 = vmatprep.subr.bf16.mxu0 %v2754_v0 }
 0x42b   : > { %2329 = vmatmul.mubr.msk.bf16.vlgmr.msra.gmra.mrb[20].mxu1 %vm935_vm3, %v1371_v39 }
 0x42c   : > { %2344 = vmatprep.mubr.msk.bf16.mxu1 %vm2755_vm0, %v2754_v0  ;;  %2335 = vmatpush3.bf16.msra.mxu0 %v2485_v20 }
 0x42d   : > { %2348 = vmatprep.subr.bf16.mxu0 %v2754_v0 }
 0x4f2   : > { %v1233_v41 = vpop.f32.mrb[8].mxu0 }
 0x4f3   : > { %v2312_v42 = vpop.f32.mrb[9].mxu0  ;;  %1425 = vxpose.xlu1.b32.start.end [1/1] (short) (narrow) %v1233_v41, 8 }
 0x4f4   : > { %v1295_v43 = vpop.f32.mrb[16].mxu1  ;;  %v1236_v44 = vpop.f32.mrb[10].mxu0 }
 0x4f5   : > { %v2318_v45 = vpop.f32.mrb[17].mxu1  ;;  %v2313_v46 = vpop.f32.mrb[11].mxu0  ;;  %1457 = vxpose.xlu0.b32.start.end [1/1] (short) (narrow) %v1295_v43, 8  ;;  %v2208_v44 = vld [vmem:[#allocation7] ss:$0 sm:$0xff] }
 0x4f6   : > { %v1298_v47 = vpop.f32.mrb[18].mxu1 }
 0x4f7   : > { %v2319_v48 = vpop.f32.mrb[19].mxu1 }
 0x4fa   : > { %v1357_v49 = vpop.f32.mrb[12].mxu0 }
 0x4fb   : > { %1489 = vxpose.xlu0.b32.start.end [1/1] (short) (narrow) %v1357_v49, 8  ;;  %v2324_v50 = vpop.f32.mrb[13].mxu0 }
 0x4fc   : > { %v1360_v51 = vpop.f32.mrb[14].mxu0 }
 0x4fd   : > { %v2325_v52 = vpop.f32.mrb[15].mxu0 }
 0x4fe   : > { %v1419_v53 = vpop.f32.mrb[20].mxu1 }
 0x4ff   : > { %1521 = vxpose.xlu1.b32.start.end [1/1] (short) (narrow) %v1419_v53, 8  ;;  %v2330_v54 = vpop.f32.mrb[21].mxu1 }
 0x500   : > { %v1422_v55 = vpop.f32.mrb[22].mxu1 }
 0x501   : > { %v2331_v56 = vpop.f32.mrb[23].mxu1 }
 0x573   : > { %v1441_v58 = vpop.trf.xlu1 }
 0x575   : > { %v1473_v57 = vpop.trf.xlu0 }
 0x57b   : > { %v1505_v59 = vpop.trf.xlu0 }
 0x57c   : > { %v1553_v60 = vcombine.low %v1441_v58, %v1505_v59  ;;  %v1554_v12 = vcombine.high %v1441_v58, %v1505_v59  ;;  %v2487_v58 = vld [vmem:[%s3331_s9 + $0x8] sm:$0xff]  }
 0x57d   : > { %v2489_v59 = vld [vmem:[%s3333_s11 + $0x8] sm:$0xff]  }
 0x57e   : > { %v1561_v1 = vrot.slane %v1553_v60, %v3080_v33  ;;  %v1568_v2 = vrot.slane %v1554_v12, %v3080_v33 }
 0x57f   : > { %v1537_v61 = vpop.trf.xlu1 }
 0x580   : > { %v1569_v62 = vcombine.low %v1473_v57, %v1537_v61  ;;  %v1570_v63 = vcombine.high %v1473_v57, %v1537_v61  ;;  %v2486_v57 = vld [vmem:[%s3331_s9] sm:$0xff]  }
 0x581   : > { %2341 = vmatpush3.bf16.msra.mxu1 %v2486_v57 }
 0x582   : > { %v1577_v4 = vrot.slane %v1569_v62, %v3080_v33  ;;  %v1584_v5 = vrot.slane %v1570_v63, %v3080_v33  ;;  %2342 = vmatprep.subr.bf16.mxu1 %v2754_v0  ;;  %v2212_v63 = vld [vmem:[#allocation9] ss:$0 sm:$0xff] }
 0x584   : > { %v1585_v6 = vcombine.low %v1561_v1, %v1577_v4  ;;  %v1586_v7 = vcombine.high %v1561_v1, %v1577_v4  ;;  %v1601_v8 = vcombine.low %v1568_v2, %v1584_v5  ;;  %v1602_v9 = vcombine.high %v1568_v2, %v1584_v5  ;;  %v2213_v2 = vld [vmem:[#allocation10] ss:$0 sm:$0xff] }
 0x585   : > { %2343 = vmatpush3.bf16.msra.mxu1 %v2487_v58 }
 0x586   : > { %v1593_v11 = vrot.slane %v1585_v6, %v3083_v40  ;;  %v1600_v13 = vrot.slane %v1586_v7, %v3083_v40  ;;  %v1609_v14 = vrot.slane %v1601_v8, %v3083_v40  ;;  %v1616_v15 = vrot.slane %v1602_v9, %v3083_v40  ;;  %v2490_v7 = vld [vmem:[%s3333_s11 + $0x10] sm:$0xff]   ;;  %v2491_v8 = vld [vmem:[%s3333_s11 + $0x18] sm:$0xff]   ;;  %v2214_v9 = vld [vmem:[%s3380_s13] ss:$0 sm:$0xff] }
 0x588   : > { %v1621_v16 = vcombine.low %v1593_v11, %v1600_v13  ;;  %v2206_v17 = vcombine.high %v1593_v11, %v1600_v13  ;;  %v1637_v18 = vcombine.low %v1609_v14, %v1616_v15  ;;  %v2207_v19 = vcombine.high %v1609_v14, %v1616_v15 }
 0x58a   : > { %v1628_v21 = vrot.slane %v1621_v16, %v3080_v33  ;;  %v1636_v22 = vrot.slane %v2206_v17, %v3080_v33  ;;  %v1644_v23 = vrot.slane %v1637_v18, %v3080_v33  ;;  %v1652_v24 = vrot.slane %v2207_v19, %v3080_v33 }
 0x58c   : > { %v1654_v25 = vcombine.high %v1628_v21, %v1636_v22  ;;  %v1670_v26 = vcombine.high %v1644_v23, %v1652_v24  ;;  %v1653_v27 = vcombine.low %v1628_v21, %v1636_v22  ;;  %v1669_v28 = vcombine.low %v1644_v23, %v1652_v24 }
 0x58e   : > { %v1668_v29 = vrot.slane %v1654_v25, %v3083_v40  ;;  %v1684_v30 = vrot.slane %v1670_v26, %v3083_v40  ;;  %v1661_v31 = vrot.slane %v1653_v27, %v3083_v40  ;;  %v1677_v32 = vrot.slane %v1669_v28, %v3083_v40 }
 0x590   : > { %v1687_v34 = vcombine.low %v1668_v29, %v1684_v30  ;;  %v1686_v35 = vcombine.high %v1661_v31, %v1677_v32  ;;  %v1685_v36 = vcombine.low %v1661_v31, %v1677_v32  ;;  %v1688_v33 = vcombine.high %v1668_v29, %v1684_v30 }
 0x592   : > { %1694 = vrot.lane.b32.xlu1 %v1687_v34, %s2766_s0  ;;  %1690 = vrot.lane.b32.xlu0 %v1686_v35, %s2767_s6 }
 0x596   : > { %1698 = vrot.lane.b32.xlu1 %v1688_v33, %s2768_s10  ;;  %s3381_s10 = sld [smem:[#allocation31_spill]] }
 0x604   : > { %v1695_v37 = vpop.permute.xlu1 %1694  ;;  %v1691_v38 = vpop.permute.xlu0 %1690 }
 0x605   : > { %v1701_v39 = vsel %vm935_vm3, %v1685_v36, %v1691_v38 }
 0x606   : > { %v1703_v42 = vsel %vm1702_vm4, %v1701_v39, %v1695_v37 }
 0x608   : > { %v1699_v41 = vpop.permute.xlu1 %1698 }
 0x609   : > { %v1705_v43 = vsel %vm1704_vm5, %v1703_v42, %v1699_v41 }
 0x60a   : > { %v1706_v40 = vpack.c.bf16 %v1705_v43, %v1705_v43 }
 0x60c   : > { %2337 = vmatmul.mubr.msk.bf16.vlgmr.msra.gmra.mrb[16].mxu0 %vm628_vm1, %v1706_v40 }
 0x60d   : > { %2356 = vmatprep.mubr.msk.bf16.mxu0 %vm2755_vm0, %v2754_v0 }
 0x6df   : > { %v1767_v45 = vpop.f32.mrb[16].mxu0 }
 0x6e0   : > { %v1768_v46 = vadd.f32 %v2208_v44, %v1767_v45  ;;  %v2338_v47 = vpop.f32.mrb[17].mxu0 }
 0x6e1   : > { %v1770_v48 = vpop.f32.mrb[18].mxu0 }
 0x6e2   : > { %v2339_v49 = vpop.f32.mrb[19].mxu0  ;;  %v1773_v50 = vadd.f32 %v1768_v46, %v3045_v3  ;;  %v2488_v3 = vld [vmem:[%s3333_s11] sm:$0xff]  }
 0x6e3   : > { %2349 = vmatpush3.bf16.msra.mxu0 %v2488_v3 }
 0x6e4   : > { %v1774_v51 = vsel %vm628_vm1, %v1773_v50, 0.0  ;;  %2350 = vmatprep.subr.bf16.mxu0 %v2754_v0 }
 0x6e5   : > { %1775 = vadd.xlane.f32.xlu1 %v1774_v51 }
 0x6e7   : > { %2351 = vmatpush3.bf16.msra.mxu0 %v2489_v59 }
 0x6e8   : > { %2352 = vmatprep.subr.bf16.mxu0 %v2754_v0 }
 0x6eb   : > { %2353 = vmatpush3.bf16.msra.mxu0 %v2490_v7 }
 0x6ec   : > { %2354 = vmatprep.subr.bf16.mxu0 %v2754_v0  ;;  %v2218_v0 = vld [vmem:[%s3381_s10] ss:$0 sm:$0xff] }
 0x6ef   : > { %2355 = vmatpush3.bf16.msra.mxu0 %v2491_v8 }
 0x772   : > { %v1776_v52 = vpop.xlane.xlu1 %1775 }
 0x773   : > { %v1778_v53 = vmul.f32 0.03125, %v1776_v52 }
 0x775   : > { %v1779_v54 = vsub.f32 %v1773_v50, %v1778_v53 }
 0x777   : > { %v1780_v55 = vmul.f32 %v1779_v54, %v1779_v54 }
 0x779   : > { %v1781_v56 = vsel %vm628_vm1, %v1780_v55, 0.0 }
 0x77a   : > { %1782 = vadd.xlane.f32.xlu0 %v1781_v56 }
 0x807   : > { %v1783_v60 = vpop.xlane.xlu0 %1782 }
 0x808   : > { %v1784_v12 = vmul.f32 0.03125, %v1783_v60 }
 0x80a   : > { %v1785_v61 = vadd.f32 1e-05, %v1784_v12 }
 0x80c   : > { %2508 = vrsqrt.f32 %v1785_v61 }
 0x816   : > { %v2509_v62 = vpop.eup %2508 }
 0x817   : > { %v1787_v1 = vmul.f32 %v2509_v62, %v1779_v54 }
 0x819   : > { %v1795_v4 = vmul.f32 %v2212_v63, %v1787_v1 }
 0x81b   : > { %v1803_v5 = vadd.f32 %v2213_v2, %v1795_v4 }
 0x81d   : > { %v1804_v6 = vpack.c.bf16 %v1803_v5, %v1803_v5 }
 0x81f   : > { %2345 = vmatmul.mubr.msk.bf16.vlgmr.msra.gmra.mrb[24].mxu1 %vm628_vm1, %v1804_v6 }
 0x8f2   : > { %v1865_v10 = vpop.f32.mrb[24].mxu1 }
 0x8f3   : > { %v1866_v11 = vadd.f32 %v2214_v9, %v1865_v10  ;;  %v2346_v13 = vpop.f32.mrb[25].mxu1 }
 0x8f4   : > { %v1868_v14 = vpop.f32.mrb[26].mxu1 }
 0x8f5   : > { %v1871_v15 = vmax.f32 %v1866_v11, 0.0  ;;  %v2347_v16 = vpop.f32.mrb[27].mxu1 }
 0x8f7   : > { %v1872_v17 = vpack.c.bf16 %v1871_v15, %v1871_v15 }
 0x8f9   : > { %2357 = vmatmul.mubr.msk.bf16.vlgmr.msra.gmra.mrb[20].mxu0 %vm1912_vm6, %v1872_v17 }
 0x9cc   : > { %v1950_v18 = vpop.f32.mrb[20].mxu0 }
 0x9cd   : > { %v1951_v19 = vadd.f32 %v2218_v0, %v1950_v18  ;;  %v2358_v20 = vpop.f32.mrb[21].mxu0 }
 0x9ce   : > { %v1953_v21 = vpop.f32.mrb[22].mxu0 }
 0x9cf   : > { %v2359_v22 = vpop.f32.mrb[23].mxu0  ;;  %v1956_v23 = vadd.f32 %v1951_v19, %v1803_v5 }
 0x9d1   : > { %v1957_v24 = vsel %vm628_vm1, %v1956_v23, 0.0 }
 0x9d2   : > { %1958 = vadd.xlane.f32.xlu0 %v1957_v24 }
 0xa5f   : > { %v1959_v25 = vpop.xlane.xlu0 %1958 }
 0xa60   : > { %v1960_v26 = vmul.f32 0.03125, %v1959_v25 }
 0xa62   : > { %v1961_v27 = vsub.f32 %v1956_v23, %v1960_v26 }
 0xa64   : > { %v1962_v28 = vmul.f32 %v1961_v27, %v1961_v27 }
 0xa66   : > { %v1963_v29 = vsel %vm628_vm1, %v1962_v28, 0.0 }
 0xa67   : > { %1964 = vadd.xlane.f32.xlu1 %v1963_v29 }
 0xa68   : > { %2637 = shalt.err (!%p2634_p6)
}
 0xa69   : > { %s2638_s28 = scalar_lea.hbm %s3236_s23, 256  ;;  %s2642_s13 = scalar_lea.hbm %s3383_s30, 512 }
 0xa6a   : > { %p2639_p7 = scmp.ne.s32.totalorder %s3236_s23, %s2638_s28  ;;  %p2643_p0 = scmp.lt.u32.totalorder %s3236_s23, %s3383_s30 }
 0xa6b   : > { %p2644_p2 = scmp.lt.u32.totalorder %s2642_s13, %s2638_s28  ;;  %p2646_p1 = scmp.lt.u32.totalorder %s2638_s28, %s3236_s23 }
 0xa6c   : > { %p2640_p9 = pnand %p2639_p7, %p3384_p4 }
 0xa6d   : > { %p2645_p13 = por %p2644_p2, %p2643_p0 }
 0xa6e   : > { %p2641_p12 = pneg %p2640_p9 }
 0xa6f   : > { %p2647_p8 = por %p2646_p1, %p2645_p13 }
 0xa71   : > { %p2648_p10 = pnand %p2647_p8, %p2641_p12 }
 0xa73   : > { %2651 = shalt.err (!%p2648_p10)
}
 0xa74   : > { %s2770_s10 = smov 64   ;;  %s2771_s18 = smov 4  }
 0xa75   : > { %2377 = dma.vmem_to_hbm [thread:$0]  (%p3384_p4), %s3231_s14, 256, %s3236_s23, %s1993_s26, %s2770_s10, %s2770_s10, %s2771_s18  }
 0xa76   : > { %s2182_s27 = sshll.u32 %s3140_s25, 3  ;;  %s3385_s29 = sld [smem:[#allocation32_spill]] }
 0xa77   : > { %s3386_s28 = sld [smem:[#allocation33_spill]]  ;;  %s2228_s21 = sshll.u32 %s2738_s24, 7 }
 0xa78   : > { %s585_s19 = scalar_lea.vmem [#allocation12], %s2182_s27  ;;  %s3387_s13 = sld [smem:[#allocation34_spill]] }
 0xa79   : > { %s2007_s14 = sshll.u32 %s585_s19, 4  ;;  %s1988_s6 = scalar_lea.sflag [#allocation6], %s3140_s25  ;;  %s3275_s14 = int_to_ptr.vmem [resolvable:$true] %s2007_s14 }
 0xa7a   : > { %s2652_s10 = scalar_lea.vmem %s3275_s14, 128  ;;  %s2772_s24 = smov [#allocation12]  }
 0xa7b   : > { %p2653_p11 = scmp.ne.s32.totalorder %s3275_s14, %s2652_s10  ;;  %s2656_s18 = sshll.u32 %s2772_s24, 4  ;;  %s2657_s18 = int_to_ptr.vmem [resolvable:$false] %s2656_s18 }
 0xa7c   : > { %v2224_v35 = vld [vmem:[%s3385_s29] ss:$0 sm:$0xff]  ;;  %s2658_s27 = scalar_lea.vmem %s2657_s18, 256  ;;  %p2659_p6 = scmp.lt.s32.totalorder %s3275_s14, %s2657_s18 }
 0xa7d   : > { %v2225_v33 = vld [vmem:[%s3386_s28] ss:$0 sm:$0xff]  ;;  %p2654_p3 = pnand %p2653_p11, %p3384_p4  ;;  %p2660_p7 = scmp.lt.s32.totalorder %s2658_s27, %s2652_s10 }
 0xa7e   : > { %s3273_s0 = scalar_lea.hbm %s3387_s13, %s2228_s21 }
 0xa7f   : > { %p2655_p5 = pneg %p2654_p3  ;;  %p2661_p9 = por %p2660_p7, %p2659_p6 }
 0xa81   : > { %p2662_p12 = pnand %p2661_p9, %p2655_p5 }
 0xaf4   : > { %v1965_v30 = vpop.xlane.xlu1 %1964 }
 0xaf5   : > { %v1966_v31 = vmul.f32 0.03125, %v1965_v30 }
 0xaf7   : > { %v1967_v32 = vadd.f32 1e-05, %v1966_v31 }
 0xaf9   : > { %2510 = vrsqrt.f32 %v1967_v32 }
 0xb03   : > { %v2511_v34 = vpop.eup %2510 }
 0xb04   : > { %v1969_v36 = vmul.f32 %v2511_v34, %v1961_v27 }
 0xb06   : > { %v1977_v37 = vmul.f32 %v2224_v35, %v1969_v36 }
 0xb08   : > { %v1985_v38 = vadd.f32 %v2225_v33, %v1977_v37 }
 0xb0a   : > { %1986 = vst.msk [vmem:[%s585_s19] sm:$0xff] %vm628_vm1, %v1985_v38 }
 0xb0b   : > { %2665 = shalt.err (!%p2662_p12)
}
 0xb0c   : > { %s2666_s25 = scalar_lea.hbm %s3273_s0, 128  ;;  %s2670_s29 = scalar_lea.hbm %s3387_s13, 256 }
 0xb0d   : > { %p2667_p0 = scmp.ne.s32.totalorder %s3273_s0, %s2666_s25  ;;  %p2671_p1 = scmp.lt.u32.totalorder %s3273_s0, %s3387_s13 }
 0xb0e   : > { %p2672_p8 = scmp.lt.u32.totalorder %s2670_s29, %s2666_s25  ;;  %p2674_p11 = scmp.lt.u32.totalorder %s2666_s25, %s3273_s0 }
 0xb0f   : > { %p2668_p2 = pnand %p2667_p0, %p3384_p4 }
 0xb10   : > { %p2673_p10 = por %p2672_p8, %p2671_p1 }
 0xb11   : > { %p2669_p13 = pneg %p2668_p2 }
 0xb12   : > { %p2675_p3 = por %p2674_p11, %p2673_p10 }
 0xb14   : > { %p2676_p5 = pnand %p2675_p3, %p2669_p13 }
 0xb16   : > { %2679 = shalt.err (!%p2676_p5)
}
 0xb17   : > { %2376 = dma.vmem_to_hbm [thread:$0]  (%p3384_p4), %s3275_s14, 128, %s3273_s0, %s1988_s6  }
 0xb18 PF: > { %s3388_s28 = sld [smem:[#allocation23_spill]]  ;;  %s3389_s21 = sld [smem:[#allocation20_spill]] }
 0xb19   : > { %s3390_s19 = sld [smem:[#allocation26_spill]] }
 0xb1e   : > { %p2408_p6 = scmp.ge.s32.totalorder %s3388_s28, 2  ;;  %s2036_s23 = sand.u32 1, %s3389_s21  }
 0xb1f   : > { %p3391_p7 = scmp.ne.s32.totalorder %s3390_s19, 0  ;;  %s2037_s26 = scalar_lea.sflag [#allocation6], %s2036_s23 }
 0xb21   : > { %p2394_p9 = pnand %p2408_p6, %p3391_p7 }
 0xb23   : > { %2717 = dma.done.wait (!%p2394_p9), %s2037_s26, 128  }
 0xb24   : > { %2719 = vsyncadd (!%p2394_p9), %s2037_s26, 4294967168  ;;  %s2046_s10 = scalar_lea.sflag [#allocation14], %s2036_s23 }
 0xb25   : > { %2721 = dma.done.wait (!%p2394_p9), %s2046_s10, 256  }
 0xb26   : > { %2723 = vsyncadd (!%p2394_p9), %s2046_s10, 4294967040  ;;  %s36_s26 = sadd.s32 1, %s3388_s28   ;;  %s3392_s12 = sld [smem:[#allocation21_spill]] }
 0xb27   : > { %p33_p12 = scmp.ge.s32.totalorder %s36_s26, 4   ;;  %s3393_s23 = sld [smem:[#allocation27_spill]] }
 0xb28   : > { %s3394_s24 = sld [smem:[#allocation22_spill]]  ;;  %s3395_s25 = sld [smem:[#allocation24_spill]] }
 0xb29   : > { %s3396_s21 = smov %s2730_s22  ;;  %35 = sbr.rel (!%p33_p12) target bundleno = 18 (0x12), region = 160 }
 0xb2c   : > { %s3397_s22 = smov %s3392_s12 }
 0xb30   :  { %2051 = vsyncpa [#allocation5], 1 }
 0xb31   :  { %2053 = vsyncpa [#allocation5 + $0x1], 1 }
 0xb32   :  { %2054 = vsyncpa [#allocation8], 1 }
 0xb33   :  { %2055 = vsyncpa [#allocation11], 1 }
 0xb34   :  { %2056 = vsyncpa [#allocation6], 1 }
 0xb35   :  { %2058 = vsyncpa [#allocation6 + $0x1], 1 }
 0xb36   :  { %2059 = vsyncpa [#allocation14], 1 }
 0xb37   :  { %2061 = vsyncpa [#allocation14 + $0x1], 1 }

</bundles_post_ra>
